<compile_context>
chip_gen: v5e
topology: v5e:2x2
jax: 0.10.0
libtpu: 0.0.40
codegen_flags: <defaults>
</compile_context>

<pallas_src>
import jax
import jax.numpy as jnp
from jax import lax
from jax.experimental import pallas as pl
from jax.experimental.pallas import tpu as pltpu

LANE = 128
_VMEM_LIMIT = 48 * 1024 * 1024  # below v7x's 64 MiB physical VMEM; tiles are tiny anyway


def _round_up(x, m):
    return (x + m - 1) // m * m


def _pick_tm(M, cap=1024):
    """Row-tile size: >=2 tiles whenever possible (v7x: both TCs work),
    multiple of 16 (bf16 sublane packing), capped for VMEM headroom."""
    M = max(int(M), 1)
    if M <= 16:
        return 16
    return min(cap, _round_up((M + 1) // 2, 16))


# ----------------------------------------------------------------------------
# Pallas kernels
# ----------------------------------------------------------------------------
def _mm_bias_kernel(p_ref, w_ref, b_ref, y_ref):
    """y = patches(bf16) @ W(bf16) + bias, stored bf16 (stats-free variant)."""
    y = jnp.dot(p_ref[...], w_ref[...], preferred_element_type=jnp.float32)
    y_ref[...] = (y + b_ref[...]).astype(y_ref.dtype)


def _mm_bias_stats_kernel(p_ref, w_ref, b_ref, y_ref, s_ref):
    """Same as above + per-tile f32 (sum, sum^2) in an 8-sublane stats block."""
    y = jnp.dot(p_ref[...], w_ref[...], preferred_element_type=jnp.float32)
    y = y + b_ref[...]
    y_ref[...] = y.astype(y_ref.dtype)
    s0 = jnp.sum(y, axis=0, keepdims=True)           # (1, C)
    s1 = jnp.sum(y * y, axis=0, keepdims=True)       # (1, C)
    pad = jnp.zeros((6, y.shape[1]), jnp.float32)
    s_ref[...] = jnp.concatenate([s0, s1, pad], axis=0)[None]   # (1, 8, C)


def _affine_kernel(y_ref, scale_ref, shift_ref, o_ref):
    """Per-channel y*scale + shift on a lane-dense (tm, Cpad) tile, bf16 out."""
    o_ref[...] = (y_ref[...].astype(jnp.float32) * scale_ref[...]
                  + shift_ref[...]).astype(o_ref.dtype)


# ----------------------------------------------------------------------------
# Kernel wrappers
# ----------------------------------------------------------------------------
def fused_matmul_bias(patches, w2d, bias, *, want_stats):
    """patches: (M, Kpad); w2d: (Kpad, Cols) bf16; bias: (Cols,) f32.
    Kpad and Cols are multiples of 128.  Returns (y (M, Cols) bf16, stats),
    stats = (sum, sum^2) f32 over the M real rows (padded rows removed)."""
    M, K = patches.shape
    Cols = w2d.shape[1]
    tm = _pick_tm(M)
    Mp = _round_up(M, tm)
    if Mp != M:
        patches = jnp.pad(patches, ((0, Mp - M), (0, 0)))
    patches = patches.astype(jnp.bfloat16)
    n_tiles = Mp // tm

    cost = pl.CostEstimate(
        flops=2 * Mp * K * Cols, transcendentals=0,
        bytes_accessed=Mp * K * 2 + K * Cols * 2 + Mp * Cols * 2)
    common = dict(
        grid=(n_tiles,),
        in_specs=[
            pl.BlockSpec((tm, K), lambda i: (i, 0)),
            pl.BlockSpec((K, Cols), lambda i: (0, 0)),
            pl.BlockSpec((1, Cols), lambda i: (0, 0)),
        ],
        compiler_params=pltpu.CompilerParams(
            dimension_semantics=("parallel",), vmem_limit_bytes=_VMEM_LIMIT),
        cost_estimate=cost)

    if want_stats:
        y, stats = pl.pallas_call(
            _mm_bias_stats_kernel,
            out_specs=(pl.BlockSpec((tm, Cols), lambda i: (i, 0)),
                       pl.BlockSpec((1, 8, Cols), lambda i: (i, 0, 0))),
            out_shape=(jax.ShapeDtypeStruct((Mp, Cols), jnp.bfloat16),
                       jax.ShapeDtypeStruct((n_tiles, 8, Cols), jnp.float32)),
            **common,
        )(patches, w2d, bias.reshape(1, Cols))
        s = jnp.sum(stats, axis=0)                    # (8, Cols); rows 0/1 used
        s0, s1 = s[0], s[1]
        npad = Mp - M
        if npad:
            # zero-padded patch rows produce y_row == bias exactly; remove them.
            s0 = s0 - npad * bias
            s1 = s1 - npad * bias * bias
        return y[:M], (s0, s1)

    y = pl.pallas_call(
        _mm_bias_kernel,
        out_specs=pl.BlockSpec((tm, Cols), lambda i: (i, 0)),
        out_shape=jax.ShapeDtypeStruct((Mp, Cols), jnp.bfloat16),
        **common,
    )(patches, w2d, bias.reshape(1, Cols))
    return y[:M], None


def channel_affine(y, scale, shift):
    """Per-channel affine on a lane-dense (M, Cpad) bf16 matrix."""
    M, C = y.shape
    tm = _pick_tm(M)
    Mp = _round_up(M, tm)
    if Mp != M:
        y = jnp.pad(y, ((0, Mp - M), (0, 0)))
    out = pl.pallas_call(
        _affine_kernel,
        grid=(Mp // tm,),
        in_specs=[
            pl.BlockSpec((tm, C), lambda i: (i, 0)),
            pl.BlockSpec((1, C), lambda i: (0, 0)),
            pl.BlockSpec((1, C), lambda i: (0, 0)),
        ],
        out_specs=pl.BlockSpec((tm, C), lambda i: (i, 0)),
        out_shape=jax.ShapeDtypeStruct((Mp, C), jnp.bfloat16),
        compiler_params=pltpu.CompilerParams(
            dimension_semantics=("parallel",), vmem_limit_bytes=_VMEM_LIMIT),
        cost_estimate=pl.CostEstimate(
            flops=2 * Mp * C, transcendentals=0,
            bytes_accessed=2 * Mp * C * 2 + 2 * C * 4),
    )(y, scale.reshape(1, C), shift.reshape(1, C))
    return out[:M]


# ----------------------------------------------------------------------------
# Plain-JAX glue: activations, BN math, layer wrappers
# ----------------------------------------------------------------------------
def _apply_act(x, act):
    if act == "leaky":
        return jnp.where(x >= 0, x, 0.2 * x)
    if act == "relu":
        return jnp.maximum(x, 0.0)
    return x


def _bn_scale_shift(s0, s1, count, gamma, beta, eps=1e-5):
    mean = s0 / count
    var = jnp.maximum(s1 / count - mean * mean, 0.0)   # biased, train-mode
    scale = gamma * lax.rsqrt(var + eps)
    shift = beta - mean * scale
    return scale, shift


def conv3d_down(x, p, *, act, use_bn):
    """[act] -> Conv3d(Cin, Cout, 3, stride=2, padding=1) -> [BatchNorm3d]."""
    N, D, H, W, cin = x.shape
    OD, OH, OW = (D - 1) // 2 + 1, (H - 1) // 2 + 1, (W - 1) // 2 + 1
    xp = jnp.pad(_apply_act(x, act), ((0, 0), (1, 1), (1, 1), (1, 1), (0, 0)))
    cols = []
    for kd in range(3):
        for kh in range(3):
            for kw in range(3):
                cols.append(xp[:, kd:kd + 2 * OD - 1:2,
                               kh:kh + 2 * OH - 1:2,
                               kw:kw + 2 * OW - 1:2, :])
    M = N * OD * OH * OW
    patches = jnp.stack(cols, axis=4).reshape(M, 27 * cin)   # tap-major, ch-minor
    if patches.shape[1] != p["kpad"]:
        patches = jnp.pad(patches, ((0, 0), (0, p["kpad"] - patches.shape[1])))
    y, stats = fused_matmul_bias(patches, p["w2d"], p["b"], want_stats=use_bn)
    if use_bn:
        scale, shift = _bn_scale_shift(stats[0], stats[1], M,
                                       p["gamma_pad"], p["beta_pad"])
        y = channel_affine(y, scale, shift)
    return y.reshape(N, OD, OH, OW, -1)[..., :p["cout"]]


def convT3d_up(x, p, *, act, use_bn):
    """[act] -> ConvTranspose3d(Cin, Cout, 3, stride=2, padding=1) -> [BN].
    Single merged matmul over 2x2x2 input neighborhoods; output via one
    depth-to-space reshape + crop (cropped boundary parities are discarded)."""
    N, ID, IH, IW, cin = x.shape
    OD, OH, OW = 2 * ID - 1, 2 * IH - 1, 2 * IW - 1
    xp = jnp.pad(_apply_act(x, act), ((0, 0), (0, 1), (0, 1), (0, 1), (0, 0)))
    cols = []
    for od in (0, 1):
        for oh in (0, 1):
            for ow in (0, 1):
                cols.append(xp[:, od:od + ID, oh:oh + IH, ow:ow + IW, :])
    M = N * ID * IH * IW
    patches = jnp.stack(cols, axis=4).reshape(M, 8 * cin)    # offset-major, ch-minor
    if patches.shape[1] != p["kpad"]:
        patches = jnp.pad(patches, ((0, 0), (0, p["kpad"] - patches.shape[1])))
    y, _ = fused_matmul_bias(patches, p["w2d"], p["b"], want_stats=False)
    cb = p["cb"]
    y = y.reshape(N, ID, IH, IW, 2, 2, 2, cb)
    y = jnp.transpose(y, (0, 1, 4, 2, 5, 3, 6, 7)).reshape(N, 2 * ID, 2 * IH, 2 * IW, cb)
    y = y[:, :OD, :OH, :OW, :p["cout"]]
    if use_bn:
        # BN stats must exclude the cropped boundary outputs -> reduce post-crop.
        Mout = N * OD * OH * OW
        s0 = jnp.sum(y, axis=(0, 1, 2, 3), dtype=jnp.float32)
        s1 = jnp.sum(jnp.square(y.astype(jnp.float32)), axis=(0, 1, 2, 3))
        scale, shift = _bn_scale_shift(s0, s1, Mout, p["gamma"], p["beta"])
        y = (y.astype(jnp.float32) * scale + shift).astype(jnp.bfloat16)
    return y


def pad_like_torch_cl(y, x):
    """Channels-last (N, D, H, W, C).  Reproduces the reference F.pad argument
    order exactly: W right-padded by (xD - yD), H by (xH - yH), D by (xW - yW).
    (Identical to the correct pad for the cubic volumes used here.)"""
    return jnp.pad(y, ((0, 0),
                       (0, x.shape[3] - y.shape[3]),   # D gets (xW - yW)  [torch quirk]
                       (0, x.shape[2] - y.shape[2]),   # H gets (xH - yH)
                       (0, x.shape[1] - y.shape[1]),   # W gets (xD - yD)  [torch quirk]
                       (0, 0)))


# ----------------------------------------------------------------------------
# Parameter construction (weights reshaped / zero-padded / bf16 once, up front)
# ----------------------------------------------------------------------------
def _make_conv_w2d(w, cpad):
    """w: (Cout, Cin, 3,3,3) -> ((27*Cin rounded to 128), Cpad) bf16."""
    cout, cin = w.shape[0], w.shape[1]
    wr = jnp.transpose(w, (2, 3, 4, 1, 0)).reshape(27 * cin, cout)
    kpad = _round_up(27 * cin, LANE)
    wr = jnp.pad(wr, ((0, kpad - 27 * cin), (0, cpad - cout)))
    return wr.astype(jnp.bfloat16), kpad


def _tap1d(offset, parity):
    """Kernel tap used by (neighborhood offset, output parity) per spatial dim,
    or None for the zero block.  ConvT k=3, s=2, p=1."""
    if parity == 0:
        return 1 if offset == 0 else None
    return 2 if offset == 0 else 0


def _make_convT_w2d_merged(wt, cb):
    """wt: (Cin, Cout, 3,3,3) -> merged ((8*Cin rounded to 128), 8*Cb) bf16.
    Row blocks: 2x2x2 neighborhood offsets; column blocks: output parities."""
    cin, cout = wt.shape[0], wt.shape[1]
    w = jnp.transpose(wt, (2, 3, 4, 0, 1))                       # (3,3,3,Cin,Cout)
    w = jnp.pad(w, ((0, 0), (0, 0), (0, 0), (0, 0), (0, cb - cout)))
    zero = jnp.zeros((cin, cb), jnp.float32)
    row_blocks = []
    for od in (0, 1):
        for oh in (0, 1):
            for ow in (0, 1):
                col_blocks = []
                for pd in (0, 1):
                    for ph in (0, 1):
                        for pw in (0, 1):
                            kd, kh, kw = _tap1d(od, pd), _tap1d(oh, ph), _tap1d(ow, pw)
                            if kd is None or kh is None or kw is None:
                                col_blocks.append(zero)
                            else:
                                col_blocks.append(w[kd, kh, kw])
                row_blocks.append(jnp.concatenate(col_blocks, axis=1))   # (Cin, 8*Cb)
    w2d = jnp.concatenate(row_blocks, axis=0)                            # (8*Cin, 8*Cb)
    kpad = _round_up(8 * cin, LANE)
    if kpad != 8 * cin:
        w2d = jnp.pad(w2d, ((0, kpad - 8 * cin), (0, 0)))
    return w2d.astype(jnp.bfloat16), kpad


def _init_conv(key, cin, cout):
    kw, kb = jax.random.split(key)
    w = 0.02 * jax.random.normal(kw, (cout, cin, 3, 3, 3), jnp.float32)
    b = 0.02 * jax.random.normal(kb, (cout,), jnp.float32)
    return w, b


def _init_convT(key, cin, cout):
    kw, kb = jax.random.split(key)
    w = 0.02 * jax.random.normal(kw, (cin, cout, 3, 3, 3), jnp.float32)
    b = 0.02 * jax.random.normal(kb, (cout,), jnp.float32)
    return w, b


def _down_params(key, cin, cout, use_bn):
    w, b = _init_conv(key, cin, cout)
    cpad = _round_up(cout, LANE)
    w2d, kpad = _make_conv_w2d(w, cpad)
    p = {"w2d": w2d, "b": jnp.pad(b, (0, cpad - cout)),
         "cout": cout, "cpad": cpad, "kpad": kpad}
    if use_bn:
        p["gamma_pad"] = jnp.pad(jnp.ones((cout,), jnp.float32), (0, cpad - cout))
        p["beta_pad"] = jnp.zeros((cpad,), jnp.float32)
    return p


def _up_params(key, cin, cout, use_bn):
    w, b = _init_convT(key, cin, cout)
    cb = _round_up(cout, 16)                      # 8*cb is a multiple of 128
    w2d, kpad = _make_convT_w2d_merged(w, cb)
    p = {"w2d": w2d, "b": jnp.tile(jnp.pad(b, (0, cb - cout)), 8),
         "cout": cout, "cb": cb, "kpad": kpad}
    if use_bn:
        p["gamma"] = jnp.ones((cout,), jnp.float32)
        p["beta"] = jnp.zeros((cout,), jnp.float32)
    return p


def build_unet_generator3d_params(key, input_nc, output_nc, ngf):
    ks = jax.random.split(key, 10)
    blk = {"kind": "innermost",
           "down": _down_params(ks[0], ngf * 8, ngf * 8, use_bn=False),
           "up": _up_params(ks[1], ngf * 8, ngf * 8, use_bn=True),
           "submodule": None}
    ki = 2
    for outer, inner in [(ngf * 4, ngf * 8), (ngf * 2, ngf * 4), (ngf, ngf * 2)]:
        blk = {"kind": "mid",
               "down": _down_params(ks[ki], outer, inner, use_bn=True),
               "up": _up_params(ks[ki + 1], inner * 2, outer, use_bn=True),
               "submodule": blk}
        ki += 2
    return {"kind": "outermost",
            "down": _down_params(ks[8], input_nc, ngf, use_bn=False),
            "up": _up_params(ks[9], ngf * 2, output_nc, use_bn=False),
            "submodule": blk}


# ----------------------------------------------------------------------------
# Forward pass
# ----------------------------------------------------------------------------
def unet_block_forward(x, blk):
    if blk["kind"] == "outermost":
        h = conv3d_down(x, blk["down"], act="none", use_bn=False)
        h = unet_block_forward(h, blk["submodule"])
        return convT3d_up(h, blk["up"], act="relu", use_bn=False)
    if blk["kind"] == "innermost":
        h = conv3d_down(x, blk["down"], act="leaky", use_bn=False)
        y = convT3d_up(h, blk["up"], act="relu", use_bn=True)
    else:
        h = conv3d_down(x, blk["down"], act="leaky", use_bn=True)
        h = unet_block_forward(h, blk["submodule"])
        y = convT3d_up(h, blk["up"], act="relu", use_bn=True)
    y = pad_like_torch_cl(y, x)
    return jnp.concatenate([x, y], axis=-1)


def unet_generator3d_forward(x_ncdhw, params):
    x = jnp.transpose(x_ncdhw, (0, 2, 3, 4, 1)).astype(jnp.bfloat16)  # NCDHW -> NDHWC
    y = unet_block_forward(x, params)
    return jnp.transpose(y, (0, 4, 1, 2, 3)).astype(jnp.float32)      # back to NCDHW


# ----------------------------------------------------------------------------
if __name__ == "__main__":
    key = jax.random.PRNGKey(0)
    pkey, xkey = jax.random.split(key)

    input_nc, output_nc, ngf = 2, 1, 8   # small, shape-consistent with the module
    params = build_unet_generator3d_params(pkey, input_nc, output_nc, ngf)

    # NCDHW input, cubic volume (so the replicated F.pad axis quirk is a no-op).
    x = jax.random.normal(xkey, (1, input_nc, 16, 16, 16), jnp.float32)

    fwd = jax.jit(lambda inp: unet_generator3d_forward(inp, params))
    out = jax.block_until_ready(fwd(x))

    # ConvTranspose3d(k=3, s=2, p=1) on an 8^3 feature map -> 15^3 output
    assert out.shape == (1, output_nc, 15, 15, 15), out.shape
    assert out.dtype == jnp.float32
    assert bool(jnp.all(jnp.isfinite(out)))
    print("KERNEL_OK")
</pallas_src>

<mosaic_0001>
module attributes {stable_mosaic.version = 11 : i64} {
  func.func @_mm_bias_kernel(%arg0: i32, %arg1: memref<256x128xbf16, #tpu.memory_space<vmem>>, %arg2: memref<128x128xbf16, #tpu.memory_space<vmem>>, %arg3: memref<1x128xf32, #tpu.memory_space<vmem>>, %arg4: memref<256x128xbf16, #tpu.memory_space<vmem>>) attributes {dimension_semantics = [#tpu.dimension_semantics<parallel>], iteration_bounds = array<i64: 2>, scalar_prefetch = 0 : i64, scratch_operands = 0 : i64, tpu.core_type = #tpu.core_type<tc>, window_params = [{transform_indices = @transform_0, window_bounds = array<i64: 256, 128>}, {pipeline_mode = #tpu.pipeline_mode<synchronous>, transform_indices = @transform_1, window_bounds = array<i64: 128, 128>}, {pipeline_mode = #tpu.pipeline_mode<synchronous>, transform_indices = @transform_2, window_bounds = array<i64: 1, 128>}, {transform_indices = @transform_3, window_bounds = array<i64: 256, 128>}]} {
    %c0 = arith.constant 0 : index
    %c0_0 = arith.constant 0 : index
    %0 = vector.load %arg1[%c0, %c0_0] : memref<256x128xbf16, #tpu.memory_space<vmem>>, vector<256x128xbf16>
    %c0_1 = arith.constant 0 : index
    %c0_2 = arith.constant 0 : index
    %1 = vector.load %arg2[%c0_1, %c0_2] : memref<128x128xbf16, #tpu.memory_space<vmem>>, vector<128x128xbf16>
    %cst = arith.constant dense<0.000000e+00> : vector<256x128xf32>
    %2 = tpu.matmul %0, %1, %cst {dimension_numbers = #tpu.dot_dimension_numbers<[1], [0], [0], [1], [0, 0, 1, 1], [], []>} : vector<256x128xbf16>, vector<128x128xbf16>, vector<256x128xf32> -> vector<256x128xf32>
    %c0_3 = arith.constant 0 : index
    %c0_4 = arith.constant 0 : index
    %3 = vector.load %arg3[%c0_3, %c0_4] : memref<1x128xf32, #tpu.memory_space<vmem>>, vector<1x128xf32>
    %4 = vector.broadcast %3 : vector<1x128xf32> to vector<256x128xf32>
    %5 = arith.addf %2, %4 : vector<256x128xf32>
    %6 = arith.truncf %5 : vector<256x128xf32> to vector<256x128xbf16>
    %c0_5 = arith.constant 0 : index
    %c0_6 = arith.constant 0 : index
    %7 = vector.load %arg4[%c0_5, %c0_6] : memref<256x128xbf16, #tpu.memory_space<vmem>>, vector<256x128xbf16>
    tpu.vector_store %arg4[%c0_5, %c0_6], %6 {strides = array<i32>} : memref<256x128xbf16, #tpu.memory_space<vmem>>, vector<256x128xbf16>,
    return
  }
  func.func @transform_0(%arg0: i32) -> (i32, i32) {
    %c0_i32 = arith.constant 0 : i32
    %c0_i32_0 = arith.constant 0 : i32
    return %arg0, %c0_i32 : i32, i32
  }
  func.func @transform_1(%arg0: i32) -> (i32, i32) {
    %c0_i32 = arith.constant 0 : i32
    %c0_i32_0 = arith.constant 0 : i32
    %c0_i32_1 = arith.constant 0 : i32
    return %c0_i32, %c0_i32_0 : i32, i32
  }
  func.func @transform_2(%arg0: i32) -> (i32, i32) {
    %c0_i32 = arith.constant 0 : i32
    %c0_i32_0 = arith.constant 0 : i32
    %c0_i32_1 = arith.constant 0 : i32
    return %c0_i32, %c0_i32_0 : i32, i32
  }
  func.func @transform_3(%arg0: i32) -> (i32, i32) {
    %c0_i32 = arith.constant 0 : i32
    %c0_i32_0 = arith.constant 0 : i32
    return %arg0, %c0_i32 : i32, i32
  }
}

module attributes {stable_mosaic.version = 11 : i64} {
  func.func @_mm_bias_stats_kernel(%arg0: i32, %arg1: memref<32x256xbf16, #tpu.memory_space<vmem>>, %arg2: memref<256x128xbf16, #tpu.memory_space<vmem>>, %arg3: memref<1x128xf32, #tpu.memory_space<vmem>>, %arg4: memref<32x128xbf16, #tpu.memory_space<vmem>>, %arg5: memref<1x8x128xf32, #tpu.memory_space<vmem>>) attributes {dimension_semantics = [#tpu.dimension_semantics<parallel>], iteration_bounds = array<i64: 2>, scalar_prefetch = 0 : i64, scratch_operands = 0 : i64, tpu.core_type = #tpu.core_type<tc>, window_params = [{transform_indices = @transform_0, window_bounds = array<i64: 32, 256>}, {pipeline_mode = #tpu.pipeline_mode<synchronous>, transform_indices = @transform_1, window_bounds = array<i64: 256, 128>}, {pipeline_mode = #tpu.pipeline_mode<synchronous>, transform_indices = @transform_2, window_bounds = array<i64: 1, 128>}, {transform_indices = @transform_3, window_bounds = array<i64: 32, 128>}, {transform_indices = @transform_4, window_bounds = array<i64: 1, 8, 128>}]} {
    %c0 = arith.constant 0 : index
    %c0_0 = arith.constant 0 : index
    %0 = vector.load %arg1[%c0, %c0_0] : memref<32x256xbf16, #tpu.memory_space<vmem>>, vector<32x256xbf16>
    %c0_1 = arith.constant 0 : index
    %c0_2 = arith.constant 0 : index
    %1 = vector.load %arg2[%c0_1, %c0_2] : memref<256x128xbf16, #tpu.memory_space<vmem>>, vector<256x128xbf16>
    %cst = arith.constant dense<0.000000e+00> : vector<32x128xf32>
    %2 = tpu.matmul %0, %1, %cst {dimension_numbers = #tpu.dot_dimension_numbers<[1], [0], [0], [1], [0, 0, 1, 1], [], []>} : vector<32x256xbf16>, vector<256x128xbf16>, vector<32x128xf32> -> vector<32x128xf32>
    %c0_3 = arith.constant 0 : index
    %c0_4 = arith.constant 0 : index
    %3 = vector.load %arg3[%c0_3, %c0_4] : memref<1x128xf32, #tpu.memory_space<vmem>>, vector<1x128xf32>
    %4 = vector.broadcast %3 : vector<1x128xf32> to vector<32x128xf32>
    %5 = arith.addf %2, %4 : vector<32x128xf32>
    %6 = arith.truncf %5 : vector<32x128xf32> to vector<32x128xbf16>
    %c0_5 = arith.constant 0 : index
    %c0_6 = arith.constant 0 : index
    %7 = vector.load %arg4[%c0_5, %c0_6] : memref<32x128xbf16, #tpu.memory_space<vmem>>, vector<32x128xbf16>
    tpu.vector_store %arg4[%c0_5, %c0_6], %6 {strides = array<i32>} : memref<32x128xbf16, #tpu.memory_space<vmem>>, vector<32x128xbf16>,
    %cst_7 = arith.constant dense<0.000000e+00> : vector<128xf32>
    %8 = vector.multi_reduction <add>, %5, %cst_7 [0] : vector<32x128xf32> to vector<128xf32>
    %9 = vector.shape_cast %8 : vector<128xf32> to vector<1x128xf32>
    %10 = arith.mulf %5, %5 : vector<32x128xf32>
    %cst_8 = arith.constant dense<0.000000e+00> : vector<128xf32>
    %11 = vector.multi_reduction <add>, %10, %cst_8 [0] : vector<32x128xf32> to vector<128xf32>
    %12 = vector.shape_cast %11 : vector<128xf32> to vector<1x128xf32>
    %cst_9 = arith.constant 0.000000e+00 : f32
    %13 = vector.broadcast %cst_9 : f32 to vector<6x128xf32>
    %14 = tpu.concatenate %9, %12, %13 in 0 : vector<1x128xf32>, vector<1x128xf32>, vector<6x128xf32> -> vector<8x128xf32>
    %15 = vector.shape_cast %14 : vector<8x128xf32> to vector<1x8x128xf32>
    %c0_10 = arith.constant 0 : index
    %c0_11 = arith.constant 0 : index
    %c0_12 = arith.constant 0 : index
    %16 = vector.load %arg5[%c0_10, %c0_11, %c0_12] : memref<1x8x128xf32, #tpu.memory_space<vmem>>, vector<1x8x128xf32>
    tpu.vector_store %arg5[%c0_10, %c0_11, %c0_12], %15 {strides = array<i32>} : memref<1x8x128xf32, #tpu.memory_space<vmem>>, vector<1x8x128xf32>,
    return
  }
  func.func @transform_0(%arg0: i32) -> (i32, i32) {
    %c0_i32 = arith.constant 0 : i32
    %c0_i32_0 = arith.constant 0 : i32
    return %arg0, %c0_i32 : i32, i32
  }
  func.func @transform_1(%arg0: i32) -> (i32, i32) {
    %c0_i32 = arith.constant 0 : i32
    %c0_i32_0 = arith.constant 0 : i32
    %c0_i32_1 = arith.constant 0 : i32
    return %c0_i32, %c0_i32_0 : i32, i32
  }
  func.func @transform_2(%arg0: i32) -> (i32, i32) {
    %c0_i32 = arith.constant 0 : i32
    %c0_i32_0 = arith.constant 0 : i32
    %c0_i32_1 = arith.constant 0 : i32
    return %c0_i32, %c0_i32_0 : i32, i32
  }
  func.func @transform_3(%arg0: i32) -> (i32, i32) {
    %c0_i32 = arith.constant 0 : i32
    %c0_i32_0 = arith.constant 0 : i32
    return %arg0, %c0_i32 : i32, i32
  }
  func.func @transform_4(%arg0: i32) -> (i32, i32, i32) {
    %c0_i32 = arith.constant 0 : i32
    %c0_i32_0 = arith.constant 0 : i32
    %c0_i32_1 = arith.constant 0 : i32
    return %arg0, %c0_i32, %c0_i32_0 : i32, i32, i32
  }
}

module attributes {stable_mosaic.version = 11 : i64} {
  func.func @_affine_kernel(%arg0: i32, %arg1: memref<32x128xbf16, #tpu.memory_space<vmem>>, %arg2: memref<1x128xf32, #tpu.memory_space<vmem>>, %arg3: memref<1x128xf32, #tpu.memory_space<vmem>>, %arg4: memref<32x128xbf16, #tpu.memory_space<vmem>>) attributes {dimension_semantics = [#tpu.dimension_semantics<parallel>], iteration_bounds = array<i64: 2>, scalar_prefetch = 0 : i64, scratch_operands = 0 : i64, tpu.core_type = #tpu.core_type<tc>, window_params = [{transform_indices = @transform_0, window_bounds = array<i64: 32, 128>}, {pipeline_mode = #tpu.pipeline_mode<synchronous>, transform_indices = @transform_1, window_bounds = array<i64: 1, 128>}, {pipeline_mode = #tpu.pipeline_mode<synchronous>, transform_indices = @transform_2, window_bounds = array<i64: 1, 128>}, {transform_indices = @transform_3, window_bounds = array<i64: 32, 128>}]} {
    %c0 = arith.constant 0 : index
    %c0_0 = arith.constant 0 : index
    %0 = vector.load %arg1[%c0, %c0_0] : memref<32x128xbf16, #tpu.memory_space<vmem>>, vector<32x128xbf16>
    %1 = arith.extf %0 : vector<32x128xbf16> to vector<32x128xf32>
    %c0_1 = arith.constant 0 : index
    %c0_2 = arith.constant 0 : index
    %2 = vector.load %arg2[%c0_1, %c0_2] : memref<1x128xf32, #tpu.memory_space<vmem>>, vector<1x128xf32>
    %3 = vector.broadcast %2 : vector<1x128xf32> to vector<32x128xf32>
    %4 = arith.mulf %1, %3 : vector<32x128xf32>
    %c0_3 = arith.constant 0 : index
    %c0_4 = arith.constant 0 : index
    %5 = vector.load %arg3[%c0_3, %c0_4] : memref<1x128xf32, #tpu.memory_space<vmem>>, vector<1x128xf32>
    %6 = vector.broadcast %5 : vector<1x128xf32> to vector<32x128xf32>
    %7 = arith.addf %4, %6 : vector<32x128xf32>
    %8 = arith.truncf %7 : vector<32x128xf32> to vector<32x128xbf16>
    %c0_5 = arith.constant 0 : index
    %c0_6 = arith.constant 0 : index
    %9 = vector.load %arg4[%c0_5, %c0_6] : memref<32x128xbf16, #tpu.memory_space<vmem>>, vector<32x128xbf16>
    tpu.vector_store %arg4[%c0_5, %c0_6], %8 {strides = array<i32>} : memref<32x128xbf16, #tpu.memory_space<vmem>>, vector<32x128xbf16>,
    return
  }
  func.func @transform_0(%arg0: i32) -> (i32, i32) {
    %c0_i32 = arith.constant 0 : i32
    %c0_i32_0 = arith.constant 0 : i32
    return %arg0, %c0_i32 : i32, i32
  }
  func.func @transform_1(%arg0: i32) -> (i32, i32) {
    %c0_i32 = arith.constant 0 : i32
    %c0_i32_0 = arith.constant 0 : i32
    %c0_i32_1 = arith.constant 0 : i32
    return %c0_i32, %c0_i32_0 : i32, i32
  }
  func.func @transform_2(%arg0: i32) -> (i32, i32) {
    %c0_i32 = arith.constant 0 : i32
    %c0_i32_0 = arith.constant 0 : i32
    %c0_i32_1 = arith.constant 0 : i32
    return %c0_i32, %c0_i32_0 : i32, i32
  }
  func.func @transform_3(%arg0: i32) -> (i32, i32) {
    %c0_i32 = arith.constant 0 : i32
    %c0_i32_0 = arith.constant 0 : i32
    return %arg0, %c0_i32 : i32, i32
  }
}

module attributes {stable_mosaic.version = 11 : i64} {
  func.func @_mm_bias_stats_kernel(%arg0: i32, %arg1: memref<16x512xbf16, #tpu.memory_space<vmem>>, %arg2: memref<512x128xbf16, #tpu.memory_space<vmem>>, %arg3: memref<1x128xf32, #tpu.memory_space<vmem>>, %arg4: memref<16x128xbf16, #tpu.memory_space<vmem>>, %arg5: memref<1x8x128xf32, #tpu.memory_space<vmem>>) attributes {dimension_semantics = [#tpu.dimension_semantics<parallel>], iteration_bounds = array<i64: 1>, scalar_prefetch = 0 : i64, scratch_operands = 0 : i64, tpu.core_type = #tpu.core_type<tc>, window_params = [{transform_indices = @transform_0, window_bounds = array<i64: 16, 512>}, {pipeline_mode = #tpu.pipeline_mode<synchronous>, transform_indices = @transform_1, window_bounds = array<i64: 512, 128>}, {pipeline_mode = #tpu.pipeline_mode<synchronous>, transform_indices = @transform_2, window_bounds = array<i64: 1, 128>}, {transform_indices = @transform_3, window_bounds = array<i64: 16, 128>}, {transform_indices = @transform_4, window_bounds = array<i64: 1, 8, 128>}]} {
    %c0 = arith.constant 0 : index
    %c0_0 = arith.constant 0 : index
    %0 = vector.load %arg1[%c0, %c0_0] : memref<16x512xbf16, #tpu.memory_space<vmem>>, vector<16x512xbf16>
    %c0_1 = arith.constant 0 : index
    %c0_2 = arith.constant 0 : index
    %1 = vector.load %arg2[%c0_1, %c0_2] : memref<512x128xbf16, #tpu.memory_space<vmem>>, vector<512x128xbf16>
    %cst = arith.constant dense<0.000000e+00> : vector<16x128xf32>
    %2 = tpu.matmul %0, %1, %cst {dimension_numbers = #tpu.dot_dimension_numbers<[1], [0], [0], [1], [0, 0, 1, 1], [], []>} : vector<16x512xbf16>, vector<512x128xbf16>, vector<16x128xf32> -> vector<16x128xf32>
    %c0_3 = arith.constant 0 : index
    %c0_4 = arith.constant 0 : index
    %3 = vector.load %arg3[%c0_3, %c0_4] : memref<1x128xf32, #tpu.memory_space<vmem>>, vector<1x128xf32>
    %4 = vector.broadcast %3 : vector<1x128xf32> to vector<16x128xf32>
    %5 = arith.addf %2, %4 : vector<16x128xf32>
    %6 = arith.truncf %5 : vector<16x128xf32> to vector<16x128xbf16>
    %c0_5 = arith.constant 0 : index
    %c0_6 = arith.constant 0 : index
    %7 = vector.load %arg4[%c0_5, %c0_6] : memref<16x128xbf16, #tpu.memory_space<vmem>>, vector<16x128xbf16>
    tpu.vector_store %arg4[%c0_5, %c0_6], %6 {strides = array<i32>} : memref<16x128xbf16, #tpu.memory_space<vmem>>, vector<16x128xbf16>,
    %cst_7 = arith.constant dense<0.000000e+00> : vector<128xf32>
    %8 = vector.multi_reduction <add>, %5, %cst_7 [0] : vector<16x128xf32> to vector<128xf32>
    %9 = vector.shape_cast %8 : vector<128xf32> to vector<1x128xf32>
    %10 = arith.mulf %5, %5 : vector<16x128xf32>
    %cst_8 = arith.constant dense<0.000000e+00> : vector<128xf32>
    %11 = vector.multi_reduction <add>, %10, %cst_8 [0] : vector<16x128xf32> to vector<128xf32>
    %12 = vector.shape_cast %11 : vector<128xf32> to vector<1x128xf32>
    %cst_9 = arith.constant 0.000000e+00 : f32
    %13 = vector.broadcast %cst_9 : f32 to vector<6x128xf32>
    %14 = tpu.concatenate %9, %12, %13 in 0 : vector<1x128xf32>, vector<1x128xf32>, vector<6x128xf32> -> vector<8x128xf32>
    %15 = vector.shape_cast %14 : vector<8x128xf32> to vector<1x8x128xf32>
    %c0_10 = arith.constant 0 : index
    %c0_11 = arith.constant 0 : index
    %c0_12 = arith.constant 0 : index
    %16 = vector.load %arg5[%c0_10, %c0_11, %c0_12] : memref<1x8x128xf32, #tpu.memory_space<vmem>>, vector<1x8x128xf32>
    tpu.vector_store %arg5[%c0_10, %c0_11, %c0_12], %15 {strides = array<i32>} : memref<1x8x128xf32, #tpu.memory_space<vmem>>, vector<1x8x128xf32>,
    return
  }
  func.func @transform_0(%arg0: i32) -> (i32, i32) {
    %c0_i32 = arith.constant 0 : i32
    %c0_i32_0 = arith.constant 0 : i32
    return %arg0, %c0_i32 : i32, i32
  }
  func.func @transform_1(%arg0: i32) -> (i32, i32) {
    %c0_i32 = arith.constant 0 : i32
    %c0_i32_0 = arith.constant 0 : i32
    %c0_i32_1 = arith.constant 0 : i32
    return %c0_i32, %c0_i32_0 : i32, i32
  }
  func.func @transform_2(%arg0: i32) -> (i32, i32) {
    %c0_i32 = arith.constant 0 : i32
    %c0_i32_0 = arith.constant 0 : i32
    %c0_i32_1 = arith.constant 0 : i32
    return %c0_i32, %c0_i32_0 : i32, i32
  }
  func.func @transform_3(%arg0: i32) -> (i32, i32) {
    %c0_i32 = arith.constant 0 : i32
    %c0_i32_0 = arith.constant 0 : i32
    return %arg0, %c0_i32 : i32, i32
  }
  func.func @transform_4(%arg0: i32) -> (i32, i32, i32) {
    %c0_i32 = arith.constant 0 : i32
    %c0_i32_0 = arith.constant 0 : i32
    %c0_i32_1 = arith.constant 0 : i32
    return %arg0, %c0_i32, %c0_i32_0 : i32, i32, i32
  }
}

module attributes {stable_mosaic.version = 11 : i64} {
  func.func @_affine_kernel(%arg0: i32, %arg1: memref<16x128xbf16, #tpu.memory_space<vmem>>, %arg2: memref<1x128xf32, #tpu.memory_space<vmem>>, %arg3: memref<1x128xf32, #tpu.memory_space<vmem>>, %arg4: memref<16x128xbf16, #tpu.memory_space<vmem>>) attributes {dimension_semantics = [#tpu.dimension_semantics<parallel>], iteration_bounds = array<i64: 1>, scalar_prefetch = 0 : i64, scratch_operands = 0 : i64, tpu.core_type = #tpu.core_type<tc>, window_params = [{transform_indices = @transform_0, window_bounds = array<i64: 16, 128>}, {pipeline_mode = #tpu.pipeline_mode<synchronous>, transform_indices = @transform_1, window_bounds = array<i64: 1, 128>}, {pipeline_mode = #tpu.pipeline_mode<synchronous>, transform_indices = @transform_2, window_bounds = array<i64: 1, 128>}, {transform_indices = @transform_3, window_bounds = array<i64: 16, 128>}]} {
    %c0 = arith.constant 0 : index
    %c0_0 = arith.constant 0 : index
    %0 = vector.load %arg1[%c0, %c0_0] : memref<16x128xbf16, #tpu.memory_space<vmem>>, vector<16x128xbf16>
    %1 = arith.extf %0 : vector<16x128xbf16> to vector<16x128xf32>
    %c0_1 = arith.constant 0 : index
    %c0_2 = arith.constant 0 : index
    %2 = vector.load %arg2[%c0_1, %c0_2] : memref<1x128xf32, #tpu.memory_space<vmem>>, vector<1x128xf32>
    %3 = vector.broadcast %2 : vector<1x128xf32> to vector<16x128xf32>
    %4 = arith.mulf %1, %3 : vector<16x128xf32>
    %c0_3 = arith.constant 0 : index
    %c0_4 = arith.constant 0 : index
    %5 = vector.load %arg3[%c0_3, %c0_4] : memref<1x128xf32, #tpu.memory_space<vmem>>, vector<1x128xf32>
    %6 = vector.broadcast %5 : vector<1x128xf32> to vector<16x128xf32>
    %7 = arith.addf %4, %6 : vector<16x128xf32>
    %8 = arith.truncf %7 : vector<16x128xf32> to vector<16x128xbf16>
    %c0_5 = arith.constant 0 : index
    %c0_6 = arith.constant 0 : index
    %9 = vector.load %arg4[%c0_5, %c0_6] : memref<16x128xbf16, #tpu.memory_space<vmem>>, vector<16x128xbf16>
    tpu.vector_store %arg4[%c0_5, %c0_6], %8 {strides = array<i32>} : memref<16x128xbf16, #tpu.memory_space<vmem>>, vector<16x128xbf16>,
    return
  }
  func.func @transform_0(%arg0: i32) -> (i32, i32) {
    %c0_i32 = arith.constant 0 : i32
    %c0_i32_0 = arith.constant 0 : i32
    return %arg0, %c0_i32 : i32, i32
  }
  func.func @transform_1(%arg0: i32) -> (i32, i32) {
    %c0_i32 = arith.constant 0 : i32
    %c0_i32_0 = arith.constant 0 : i32
    %c0_i32_1 = arith.constant 0 : i32
    return %c0_i32, %c0_i32_0 : i32, i32
  }
  func.func @transform_2(%arg0: i32) -> (i32, i32) {
    %c0_i32 = arith.constant 0 : i32
    %c0_i32_0 = arith.constant 0 : i32
    %c0_i32_1 = arith.constant 0 : i32
    return %c0_i32, %c0_i32_0 : i32, i32
  }
  func.func @transform_3(%arg0: i32) -> (i32, i32) {
    %c0_i32 = arith.constant 0 : i32
    %c0_i32_0 = arith.constant 0 : i32
    return %arg0, %c0_i32 : i32, i32
  }
}

module attributes {stable_mosaic.version = 11 : i64} {
  func.func @_mm_bias_stats_kernel(%arg0: i32, %arg1: memref<16x896xbf16, #tpu.memory_space<vmem>>, %arg2: memref<896x128xbf16, #tpu.memory_space<vmem>>, %arg3: memref<1x128xf32, #tpu.memory_space<vmem>>, %arg4: memref<16x128xbf16, #tpu.memory_space<vmem>>, %arg5: memref<1x8x128xf32, #tpu.memory_space<vmem>>) attributes {dimension_semantics = [#tpu.dimension_semantics<parallel>], iteration_bounds = array<i64: 1>, scalar_prefetch = 0 : i64, scratch_operands = 0 : i64, tpu.core_type = #tpu.core_type<tc>, window_params = [{transform_indices = @transform_0, window_bounds = array<i64: 16, 896>}, {pipeline_mode = #tpu.pipeline_mode<synchronous>, transform_indices = @transform_1, window_bounds = array<i64: 896, 128>}, {pipeline_mode = #tpu.pipeline_mode<synchronous>, transform_indices = @transform_2, window_bounds = array<i64: 1, 128>}, {transform_indices = @transform_3, window_bounds = array<i64: 16, 128>}, {transform_indices = @transform_4, window_bounds = array<i64: 1, 8, 128>}]} {
    %c0 = arith.constant 0 : index
    %c0_0 = arith.constant 0 : index
    %0 = vector.load %arg1[%c0, %c0_0] : memref<16x896xbf16, #tpu.memory_space<vmem>>, vector<16x896xbf16>
    %c0_1 = arith.constant 0 : index
    %c0_2 = arith.constant 0 : index
    %1 = vector.load %arg2[%c0_1, %c0_2] : memref<896x128xbf16, #tpu.memory_space<vmem>>, vector<896x128xbf16>
    %cst = arith.constant dense<0.000000e+00> : vector<16x128xf32>
    %2 = tpu.matmul %0, %1, %cst {dimension_numbers = #tpu.dot_dimension_numbers<[1], [0], [0], [1], [0, 0, 1, 1], [], []>} : vector<16x896xbf16>, vector<896x128xbf16>, vector<16x128xf32> -> vector<16x128xf32>
    %c0_3 = arith.constant 0 : index
    %c0_4 = arith.constant 0 : index
    %3 = vector.load %arg3[%c0_3, %c0_4] : memref<1x128xf32, #tpu.memory_space<vmem>>, vector<1x128xf32>
    %4 = vector.broadcast %3 : vector<1x128xf32> to vector<16x128xf32>
    %5 = arith.addf %2, %4 : vector<16x128xf32>
    %6 = arith.truncf %5 : vector<16x128xf32> to vector<16x128xbf16>
    %c0_5 = arith.constant 0 : index
    %c0_6 = arith.constant 0 : index
    %7 = vector.load %arg4[%c0_5, %c0_6] : memref<16x128xbf16, #tpu.memory_space<vmem>>, vector<16x128xbf16>
    tpu.vector_store %arg4[%c0_5, %c0_6], %6 {strides = array<i32>} : memref<16x128xbf16, #tpu.memory_space<vmem>>, vector<16x128xbf16>,
    %cst_7 = arith.constant dense<0.000000e+00> : vector<128xf32>
    %8 = vector.multi_reduction <add>, %5, %cst_7 [0] : vector<16x128xf32> to vector<128xf32>
    %9 = vector.shape_cast %8 : vector<128xf32> to vector<1x128xf32>
    %10 = arith.mulf %5, %5 : vector<16x128xf32>
    %cst_8 = arith.constant dense<0.000000e+00> : vector<128xf32>
    %11 = vector.multi_reduction <add>, %10, %cst_8 [0] : vector<16x128xf32> to vector<128xf32>
    %12 = vector.shape_cast %11 : vector<128xf32> to vector<1x128xf32>
    %cst_9 = arith.constant 0.000000e+00 : f32
    %13 = vector.broadcast %cst_9 : f32 to vector<6x128xf32>
    %14 = tpu.concatenate %9, %12, %13 in 0 : vector<1x128xf32>, vector<1x128xf32>, vector<6x128xf32> -> vector<8x128xf32>
    %15 = vector.shape_cast %14 : vector<8x128xf32> to vector<1x8x128xf32>
    %c0_10 = arith.constant 0 : index
    %c0_11 = arith.constant 0 : index
    %c0_12 = arith.constant 0 : index
    %16 = vector.load %arg5[%c0_10, %c0_11, %c0_12] : memref<1x8x128xf32, #tpu.memory_space<vmem>>, vector<1x8x128xf32>
    tpu.vector_store %arg5[%c0_10, %c0_11, %c0_12], %15 {strides = array<i32>} : memref<1x8x128xf32, #tpu.memory_space<vmem>>, vector<1x8x128xf32>,
    return
  }
  func.func @transform_0(%arg0: i32) -> (i32, i32) {
    %c0_i32 = arith.constant 0 : i32
    %c0_i32_0 = arith.constant 0 : i32
    return %arg0, %c0_i32 : i32, i32
  }
  func.func @transform_1(%arg0: i32) -> (i32, i32) {
    %c0_i32 = arith.constant 0 : i32
    %c0_i32_0 = arith.constant 0 : i32
    %c0_i32_1 = arith.constant 0 : i32
    return %c0_i32, %c0_i32_0 : i32, i32
  }
  func.func @transform_2(%arg0: i32) -> (i32, i32) {
    %c0_i32 = arith.constant 0 : i32
    %c0_i32_0 = arith.constant 0 : i32
    %c0_i32_1 = arith.constant 0 : i32
    return %c0_i32, %c0_i32_0 : i32, i32
  }
  func.func @transform_3(%arg0: i32) -> (i32, i32) {
    %c0_i32 = arith.constant 0 : i32
    %c0_i32_0 = arith.constant 0 : i32
    return %arg0, %c0_i32 : i32, i32
  }
  func.func @transform_4(%arg0: i32) -> (i32, i32, i32) {
    %c0_i32 = arith.constant 0 : i32
    %c0_i32_0 = arith.constant 0 : i32
    %c0_i32_1 = arith.constant 0 : i32
    return %arg0, %c0_i32, %c0_i32_0 : i32, i32, i32
  }
}

module attributes {stable_mosaic.version = 11 : i64} {
  func.func @_mm_bias_kernel(%arg0: i32, %arg1: memref<16x1792xbf16, #tpu.memory_space<vmem>>, %arg2: memref<1792x128xbf16, #tpu.memory_space<vmem>>, %arg3: memref<1x128xf32, #tpu.memory_space<vmem>>, %arg4: memref<16x128xbf16, #tpu.memory_space<vmem>>) attributes {dimension_semantics = [#tpu.dimension_semantics<parallel>], iteration_bounds = array<i64: 1>, scalar_prefetch = 0 : i64, scratch_operands = 0 : i64, tpu.core_type = #tpu.core_type<tc>, window_params = [{transform_indices = @transform_0, window_bounds = array<i64: 16, 1792>}, {pipeline_mode = #tpu.pipeline_mode<synchronous>, transform_indices = @transform_1, window_bounds = array<i64: 1792, 128>}, {pipeline_mode = #tpu.pipeline_mode<synchronous>, transform_indices = @transform_2, window_bounds = array<i64: 1, 128>}, {transform_indices = @transform_3, window_bounds = array<i64: 16, 128>}]} {
    %c0 = arith.constant 0 : index
    %c0_0 = arith.constant 0 : index
    %0 = vector.load %arg1[%c0, %c0_0] : memref<16x1792xbf16, #tpu.memory_space<vmem>>, vector<16x1792xbf16>
    %c0_1 = arith.constant 0 : index
    %c0_2 = arith.constant 0 : index
    %1 = vector.load %arg2[%c0_1, %c0_2] : memref<1792x128xbf16, #tpu.memory_space<vmem>>, vector<1792x128xbf16>
    %cst = arith.constant dense<0.000000e+00> : vector<16x128xf32>
    %2 = tpu.matmul %0, %1, %cst {dimension_numbers = #tpu.dot_dimension_numbers<[1], [0], [0], [1], [0, 0, 1, 1], [], []>} : vector<16x1792xbf16>, vector<1792x128xbf16>, vector<16x128xf32> -> vector<16x128xf32>
    %c0_3 = arith.constant 0 : index
    %c0_4 = arith.constant 0 : index
    %3 = vector.load %arg3[%c0_3, %c0_4] : memref<1x128xf32, #tpu.memory_space<vmem>>, vector<1x128xf32>
    %4 = vector.broadcast %3 : vector<1x128xf32> to vector<16x128xf32>
    %5 = arith.addf %2, %4 : vector<16x128xf32>
    %6 = arith.truncf %5 : vector<16x128xf32> to vector<16x128xbf16>
    %c0_5 = arith.constant 0 : index
    %c0_6 = arith.constant 0 : index
    %7 = vector.load %arg4[%c0_5, %c0_6] : memref<16x128xbf16, #tpu.memory_space<vmem>>, vector<16x128xbf16>
    tpu.vector_store %arg4[%c0_5, %c0_6], %6 {strides = array<i32>} : memref<16x128xbf16, #tpu.memory_space<vmem>>, vector<16x128xbf16>,
    return
  }
  func.func @transform_0(%arg0: i32) -> (i32, i32) {
    %c0_i32 = arith.constant 0 : i32
    %c0_i32_0 = arith.constant 0 : i32
    return %arg0, %c0_i32 : i32, i32
  }
  func.func @transform_1(%arg0: i32) -> (i32, i32) {
    %c0_i32 = arith.constant 0 : i32
    %c0_i32_0 = arith.constant 0 : i32
    %c0_i32_1 = arith.constant 0 : i32
    return %c0_i32, %c0_i32_0 : i32, i32
  }
  func.func @transform_2(%arg0: i32) -> (i32, i32) {
    %c0_i32 = arith.constant 0 : i32
    %c0_i32_0 = arith.constant 0 : i32
    %c0_i32_1 = arith.constant 0 : i32
    return %c0_i32, %c0_i32_0 : i32, i32
  }
  func.func @transform_3(%arg0: i32) -> (i32, i32) {
    %c0_i32 = arith.constant 0 : i32
    %c0_i32_0 = arith.constant 0 : i32
    return %arg0, %c0_i32 : i32, i32
  }
}

module attributes {stable_mosaic.version = 11 : i64} {
  func.func @_mm_bias_kernel(%arg0: i32, %arg1: memref<16x512xbf16, #tpu.memory_space<vmem>>, %arg2: memref<512x512xbf16, #tpu.memory_space<vmem>>, %arg3: memref<1x512xf32, #tpu.memory_space<vmem>>, %arg4: memref<16x512xbf16, #tpu.memory_space<vmem>>) attributes {dimension_semantics = [#tpu.dimension_semantics<parallel>], iteration_bounds = array<i64: 1>, scalar_prefetch = 0 : i64, scratch_operands = 0 : i64, tpu.core_type = #tpu.core_type<tc>, window_params = [{transform_indices = @transform_0, window_bounds = array<i64: 16, 512>}, {pipeline_mode = #tpu.pipeline_mode<synchronous>, transform_indices = @transform_1, window_bounds = array<i64: 512, 512>}, {pipeline_mode = #tpu.pipeline_mode<synchronous>, transform_indices = @transform_2, window_bounds = array<i64: 1, 512>}, {transform_indices = @transform_3, window_bounds = array<i64: 16, 512>}]} {
    %c0 = arith.constant 0 : index
    %c0_0 = arith.constant 0 : index
    %0 = vector.load %arg1[%c0, %c0_0] : memref<16x512xbf16, #tpu.memory_space<vmem>>, vector<16x512xbf16>
    %c0_1 = arith.constant 0 : index
    %c0_2 = arith.constant 0 : index
    %1 = vector.load %arg2[%c0_1, %c0_2] : memref<512x512xbf16, #tpu.memory_space<vmem>>, vector<512x512xbf16>
    %cst = arith.constant dense<0.000000e+00> : vector<16x512xf32>
    %2 = tpu.matmul %0, %1, %cst {dimension_numbers = #tpu.dot_dimension_numbers<[1], [0], [0], [1], [0, 0, 1, 1], [], []>} : vector<16x512xbf16>, vector<512x512xbf16>, vector<16x512xf32> -> vector<16x512xf32>
    %c0_3 = arith.constant 0 : index
    %c0_4 = arith.constant 0 : index
    %3 = vector.load %arg3[%c0_3, %c0_4] : memref<1x512xf32, #tpu.memory_space<vmem>>, vector<1x512xf32>
    %4 = vector.broadcast %3 : vector<1x512xf32> to vector<16x512xf32>
    %5 = arith.addf %2, %4 : vector<16x512xf32>
    %6 = arith.truncf %5 : vector<16x512xf32> to vector<16x512xbf16>
    %c0_5 = arith.constant 0 : index
    %c0_6 = arith.constant 0 : index
    %7 = vector.load %arg4[%c0_5, %c0_6] : memref<16x512xbf16, #tpu.memory_space<vmem>>, vector<16x512xbf16>
    tpu.vector_store %arg4[%c0_5, %c0_6], %6 {strides = array<i32>} : memref<16x512xbf16, #tpu.memory_space<vmem>>, vector<16x512xbf16>,
    return
  }
  func.func @transform_0(%arg0: i32) -> (i32, i32) {
    %c0_i32 = arith.constant 0 : i32
    %c0_i32_0 = arith.constant 0 : i32
    return %arg0, %c0_i32 : i32, i32
  }
  func.func @transform_1(%arg0: i32) -> (i32, i32) {
    %c0_i32 = arith.constant 0 : i32
    %c0_i32_0 = arith.constant 0 : i32
    %c0_i32_1 = arith.constant 0 : i32
    return %c0_i32, %c0_i32_0 : i32, i32
  }
  func.func @transform_2(%arg0: i32) -> (i32, i32) {
    %c0_i32 = arith.constant 0 : i32
    %c0_i32_0 = arith.constant 0 : i32
    %c0_i32_1 = arith.constant 0 : i32
    return %c0_i32, %c0_i32_0 : i32, i32
  }
  func.func @transform_3(%arg0: i32) -> (i32, i32) {
    %c0_i32 = arith.constant 0 : i32
    %c0_i32_0 = arith.constant 0 : i32
    return %arg0, %c0_i32 : i32, i32
  }
}

module attributes {stable_mosaic.version = 11 : i64} {
  func.func @_mm_bias_kernel(%arg0: i32, %arg1: memref<16x1024xbf16, #tpu.memory_space<vmem>>, %arg2: memref<1024x256xbf16, #tpu.memory_space<vmem>>, %arg3: memref<1x256xf32, #tpu.memory_space<vmem>>, %arg4: memref<16x256xbf16, #tpu.memory_space<vmem>>) attributes {dimension_semantics = [#tpu.dimension_semantics<parallel>], iteration_bounds = array<i64: 1>, scalar_prefetch = 0 : i64, scratch_operands = 0 : i64, tpu.core_type = #tpu.core_type<tc>, window_params = [{transform_indices = @transform_0, window_bounds = array<i64: 16, 1024>}, {pipeline_mode = #tpu.pipeline_mode<synchronous>, transform_indices = @transform_1, window_bounds = array<i64: 1024, 256>}, {pipeline_mode = #tpu.pipeline_mode<synchronous>, transform_indices = @transform_2, window_bounds = array<i64: 1, 256>}, {transform_indices = @transform_3, window_bounds = array<i64: 16, 256>}]} {
    %c0 = arith.constant 0 : index
    %c0_0 = arith.constant 0 : index
    %0 = vector.load %arg1[%c0, %c0_0] : memref<16x1024xbf16, #tpu.memory_space<vmem>>, vector<16x1024xbf16>
    %c0_1 = arith.constant 0 : index
    %c0_2 = arith.constant 0 : index
    %1 = vector.load %arg2[%c0_1, %c0_2] : memref<1024x256xbf16, #tpu.memory_space<vmem>>, vector<1024x256xbf16>
    %cst = arith.constant dense<0.000000e+00> : vector<16x256xf32>
    %2 = tpu.matmul %0, %1, %cst {dimension_numbers = #tpu.dot_dimension_numbers<[1], [0], [0], [1], [0, 0, 1, 1], [], []>} : vector<16x1024xbf16>, vector<1024x256xbf16>, vector<16x256xf32> -> vector<16x256xf32>
    %c0_3 = arith.constant 0 : index
    %c0_4 = arith.constant 0 : index
    %3 = vector.load %arg3[%c0_3, %c0_4] : memref<1x256xf32, #tpu.memory_space<vmem>>, vector<1x256xf32>
    %4 = vector.broadcast %3 : vector<1x256xf32> to vector<16x256xf32>
    %5 = arith.addf %2, %4 : vector<16x256xf32>
    %6 = arith.truncf %5 : vector<16x256xf32> to vector<16x256xbf16>
    %c0_5 = arith.constant 0 : index
    %c0_6 = arith.constant 0 : index
    %7 = vector.load %arg4[%c0_5, %c0_6] : memref<16x256xbf16, #tpu.memory_space<vmem>>, vector<16x256xbf16>
    tpu.vector_store %arg4[%c0_5, %c0_6], %6 {strides = array<i32>} : memref<16x256xbf16, #tpu.memory_space<vmem>>, vector<16x256xbf16>,
    return
  }
  func.func @transform_0(%arg0: i32) -> (i32, i32) {
    %c0_i32 = arith.constant 0 : i32
    %c0_i32_0 = arith.constant 0 : i32
    return %arg0, %c0_i32 : i32, i32
  }
  func.func @transform_1(%arg0: i32) -> (i32, i32) {
    %c0_i32 = arith.constant 0 : i32
    %c0_i32_0 = arith.constant 0 : i32
    %c0_i32_1 = arith.constant 0 : i32
    return %c0_i32, %c0_i32_0 : i32, i32
  }
  func.func @transform_2(%arg0: i32) -> (i32, i32) {
    %c0_i32 = arith.constant 0 : i32
    %c0_i32_0 = arith.constant 0 : i32
    %c0_i32_1 = arith.constant 0 : i32
    return %c0_i32, %c0_i32_0 : i32, i32
  }
  func.func @transform_3(%arg0: i32) -> (i32, i32) {
    %c0_i32 = arith.constant 0 : i32
    %c0_i32_0 = arith.constant 0 : i32
    return %arg0, %c0_i32 : i32, i32
  }
}

module attributes {stable_mosaic.version = 11 : i64} {
  func.func @_mm_bias_kernel(%arg0: i32, %arg1: memref<16x512xbf16, #tpu.memory_space<vmem>>, %arg2: memref<512x128xbf16, #tpu.memory_space<vmem>>, %arg3: memref<1x128xf32, #tpu.memory_space<vmem>>, %arg4: memref<16x128xbf16, #tpu.memory_space<vmem>>) attributes {dimension_semantics = [#tpu.dimension_semantics<parallel>], iteration_bounds = array<i64: 1>, scalar_prefetch = 0 : i64, scratch_operands = 0 : i64, tpu.core_type = #tpu.core_type<tc>, window_params = [{transform_indices = @transform_0, window_bounds = array<i64: 16, 512>}, {pipeline_mode = #tpu.pipeline_mode<synchronous>, transform_indices = @transform_1, window_bounds = array<i64: 512, 128>}, {pipeline_mode = #tpu.pipeline_mode<synchronous>, transform_indices = @transform_2, window_bounds = array<i64: 1, 128>}, {transform_indices = @transform_3, window_bounds = array<i64: 16, 128>}]} {
    %c0 = arith.constant 0 : index
    %c0_0 = arith.constant 0 : index
    %0 = vector.load %arg1[%c0, %c0_0] : memref<16x512xbf16, #tpu.memory_space<vmem>>, vector<16x512xbf16>
    %c0_1 = arith.constant 0 : index
    %c0_2 = arith.constant 0 : index
    %1 = vector.load %arg2[%c0_1, %c0_2] : memref<512x128xbf16, #tpu.memory_space<vmem>>, vector<512x128xbf16>
    %cst = arith.constant dense<0.000000e+00> : vector<16x128xf32>
    %2 = tpu.matmul %0, %1, %cst {dimension_numbers = #tpu.dot_dimension_numbers<[1], [0], [0], [1], [0, 0, 1, 1], [], []>} : vector<16x512xbf16>, vector<512x128xbf16>, vector<16x128xf32> -> vector<16x128xf32>
    %c0_3 = arith.constant 0 : index
    %c0_4 = arith.constant 0 : index
    %3 = vector.load %arg3[%c0_3, %c0_4] : memref<1x128xf32, #tpu.memory_space<vmem>>, vector<1x128xf32>
    %4 = vector.broadcast %3 : vector<1x128xf32> to vector<16x128xf32>
    %5 = arith.addf %2, %4 : vector<16x128xf32>
    %6 = arith.truncf %5 : vector<16x128xf32> to vector<16x128xbf16>
    %c0_5 = arith.constant 0 : index
    %c0_6 = arith.constant 0 : index
    %7 = vector.load %arg4[%c0_5, %c0_6] : memref<16x128xbf16, #tpu.memory_space<vmem>>, vector<16x128xbf16>
    tpu.vector_store %arg4[%c0_5, %c0_6], %6 {strides = array<i32>} : memref<16x128xbf16, #tpu.memory_space<vmem>>, vector<16x128xbf16>,
    return
  }
  func.func @transform_0(%arg0: i32) -> (i32, i32) {
    %c0_i32 = arith.constant 0 : i32
    %c0_i32_0 = arith.constant 0 : i32
    return %arg0, %c0_i32 : i32, i32
  }
  func.func @transform_1(%arg0: i32) -> (i32, i32) {
    %c0_i32 = arith.constant 0 : i32
    %c0_i32_0 = arith.constant 0 : i32
    %c0_i32_1 = arith.constant 0 : i32
    return %c0_i32, %c0_i32_0 : i32, i32
  }
  func.func @transform_2(%arg0: i32) -> (i32, i32) {
    %c0_i32 = arith.constant 0 : i32
    %c0_i32_0 = arith.constant 0 : i32
    %c0_i32_1 = arith.constant 0 : i32
    return %c0_i32, %c0_i32_0 : i32, i32
  }
  func.func @transform_3(%arg0: i32) -> (i32, i32) {
    %c0_i32 = arith.constant 0 : i32
    %c0_i32_0 = arith.constant 0 : i32
    return %arg0, %c0_i32 : i32, i32
  }
}

module attributes {stable_mosaic.version = 11 : i64} {
  func.func @_mm_bias_kernel(%arg0: i32, %arg1: memref<32x256xbf16, #tpu.memory_space<vmem>>, %arg2: memref<256x128xbf16, #tpu.memory_space<vmem>>, %arg3: memref<1x128xf32, #tpu.memory_space<vmem>>, %arg4: memref<32x128xbf16, #tpu.memory_space<vmem>>) attributes {dimension_semantics = [#tpu.dimension_semantics<parallel>], iteration_bounds = array<i64: 2>, scalar_prefetch = 0 : i64, scratch_operands = 0 : i64, tpu.core_type = #tpu.core_type<tc>, window_params = [{transform_indices = @transform_0, window_bounds = array<i64: 32, 256>}, {pipeline_mode = #tpu.pipeline_mode<synchronous>, transform_indices = @transform_1, window_bounds = array<i64: 256, 128>}, {pipeline_mode = #tpu.pipeline_mode<synchronous>, transform_indices = @transform_2, window_bounds = array<i64: 1, 128>}, {transform_indices = @transform_3, window_bounds = array<i64: 32, 128>}]} {
    %c0 = arith.constant 0 : index
    %c0_0 = arith.constant 0 : index
    %0 = vector.load %arg1[%c0, %c0_0] : memref<32x256xbf16, #tpu.memory_space<vmem>>, vector<32x256xbf16>
    %c0_1 = arith.constant 0 : index
    %c0_2 = arith.constant 0 : index
    %1 = vector.load %arg2[%c0_1, %c0_2] : memref<256x128xbf16, #tpu.memory_space<vmem>>, vector<256x128xbf16>
    %cst = arith.constant dense<0.000000e+00> : vector<32x128xf32>
    %2 = tpu.matmul %0, %1, %cst {dimension_numbers = #tpu.dot_dimension_numbers<[1], [0], [0], [1], [0, 0, 1, 1], [], []>} : vector<32x256xbf16>, vector<256x128xbf16>, vector<32x128xf32> -> vector<32x128xf32>
    %c0_3 = arith.constant 0 : index
    %c0_4 = arith.constant 0 : index
    %3 = vector.load %arg3[%c0_3, %c0_4] : memref<1x128xf32, #tpu.memory_space<vmem>>, vector<1x128xf32>
    %4 = vector.broadcast %3 : vector<1x128xf32> to vector<32x128xf32>
    %5 = arith.addf %2, %4 : vector<32x128xf32>
    %6 = arith.truncf %5 : vector<32x128xf32> to vector<32x128xbf16>
    %c0_5 = arith.constant 0 : index
    %c0_6 = arith.constant 0 : index
    %7 = vector.load %arg4[%c0_5, %c0_6] : memref<32x128xbf16, #tpu.memory_space<vmem>>, vector<32x128xbf16>
    tpu.vector_store %arg4[%c0_5, %c0_6], %6 {strides = array<i32>} : memref<32x128xbf16, #tpu.memory_space<vmem>>, vector<32x128xbf16>,
    return
  }
  func.func @transform_0(%arg0: i32) -> (i32, i32) {
    %c0_i32 = arith.constant 0 : i32
    %c0_i32_0 = arith.constant 0 : i32
    return %arg0, %c0_i32 : i32, i32
  }
  func.func @transform_1(%arg0: i32) -> (i32, i32) {
    %c0_i32 = arith.constant 0 : i32
    %c0_i32_0 = arith.constant 0 : i32
    %c0_i32_1 = arith.constant 0 : i32
    return %c0_i32, %c0_i32_0 : i32, i32
  }
  func.func @transform_2(%arg0: i32) -> (i32, i32) {
    %c0_i32 = arith.constant 0 : i32
    %c0_i32_0 = arith.constant 0 : i32
    %c0_i32_1 = arith.constant 0 : i32
    return %c0_i32, %c0_i32_0 : i32, i32
  }
  func.func @transform_3(%arg0: i32) -> (i32, i32) {
    %c0_i32 = arith.constant 0 : i32
    %c0_i32_0 = arith.constant 0 : i32
    return %arg0, %c0_i32 : i32, i32
  }
}

</mosaic_0001>

<bundles_post_ra>
// kernel: _lambda_.13
= control target key start
LH: loop header
LB: loop body
LE: loop exit
PB: predicated region body
PF: predicated region fallthrough
CT: control target
= control target key end

     0   :  { %s866_s12 = smov 0   ;;  %s987_s0 = inlined_call_operand.vmem [shape: bf16[512,128], index: 0, kind: input, shape index: {}]   ;;  %s988_s1 = inlined_call_operand.vmem [shape: bf16[128,128], index: 1, kind: input, shape index: {}]   ;;  %s989_s2 = inlined_call_operand.vmem [shape: f32[1,128], index: 2, kind: input, shape index: {}]   ;;  %s990_s3 = inlined_call_operand.vmem [shape: bf16[512,128], index: 3, kind: output, shape index: {}]  }
   0x1 LB: > { %s579_s13 = sadd.s32 4294967295, %s844_s12   ;;  %p583_p0 = scmp.ge.s32.totalorder %s844_s12, 1  ;;  %s844_s12 = sphi %s866_s12, %s13_s12  }
   0x2   : > { %p138_p1 = scmp.lt.s32.totalorder %s844_s12, 3 }
   0x4   : > { %p139_p2 = pnand %p583_p0, %p138_p1 }
   0x5   : > { %s584_s22 = sshll.u32 (!%p139_p2), %s579_s13, 5 }
   0x6   : > { %142 = sbr.rel (%p139_p2) target bundleno = 238 (0xee), region = 32  ;;  %p163_p3 = scmp.lt.s32.totalorder (!%p139_p2), %s584_s22, 63 }
   0xb   : > { %v709_v0 = vld [vmem:[%s988_s1 + $0x38] sm:$0xff]  ;;  %v708_v1 = vld [vmem:[%s988_s1 + $0x30] sm:$0xff]  ;;  %v707_v2 = vld [vmem:[%s988_s1 + $0x28] sm:$0xff]  ;;  %s992_s22 = smov (!%p163_p3, %s584_s22), 63 }
   0xc   : > { %370 = vmatpush.bf16.msra.mxu0 %v709_v0  ;;  %805 = vmatpush.bf16.msra.mxu1 %v709_v0  ;;  %v706_v3 = vld [vmem:[%s988_s1 + $0x20] sm:$0xff]  ;;  %v705_v4 = vld [vmem:[%s988_s1 + $0x18] sm:$0xff]  ;;  %v704_v5 = vld [vmem:[%s988_s1 + $0x10] sm:$0xff]  ;;  %s585_s29 = sshll.u32 %s992_s22, 2 }
   0xd   : > { %806 = vmatpush.bf16.msra.mxu2 %v709_v0  ;;  %807 = vmatpush.bf16.msra.mxu3 %v709_v0  ;;  %v703_v6 = vld [vmem:[%s988_s1 + $0x8] sm:$0xff]  ;;  %v702_v7 = vld [vmem:[%s988_s1] sm:$0xff]  ;;  %s906_s7 = scalar_lea.vmem %s987_s0, %s585_s29  ;;  %s938_s13 = scalar_lea.vmem %s990_s3, %s585_s29 }
   0xe   : > { %v686_v8 = vld [vmem:[%s906_s7] sm:$0xff]  ;;  %v687_v12 = vld [vmem:[%s906_s7 + $0x8] sm:$0xff]  ;;  %v688_v16 = vld [vmem:[%s906_s7 + $0x10] sm:$0xff] }
   0xf   : > { %v690_v9 = vld [vmem:[%s906_s7 + $0x20] sm:$0xff]  ;;  %v691_v13 = vld [vmem:[%s906_s7 + $0x28] sm:$0xff]  ;;  %v692_v17 = vld [vmem:[%s906_s7 + $0x30] sm:$0xff] }
  0x10   : > { %371 = vmatpush.bf16.msra.mxu0 %v708_v1  ;;  %808 = vmatpush.bf16.msra.mxu1 %v708_v1  ;;  %v694_v10 = vld [vmem:[%s906_s7 + $0x40] sm:$0xff]  ;;  %v695_v14 = vld [vmem:[%s906_s7 + $0x48] sm:$0xff]  ;;  %v696_v18 = vld [vmem:[%s906_s7 + $0x50] sm:$0xff] }
  0x11   : > { %809 = vmatpush.bf16.msra.mxu2 %v708_v1  ;;  %810 = vmatpush.bf16.msra.mxu3 %v708_v1  ;;  %v698_v11 = vld [vmem:[%s906_s7 + $0x60] sm:$0xff]  ;;  %v699_v15 = vld [vmem:[%s906_s7 + $0x68] sm:$0xff]  ;;  %v700_v19 = vld [vmem:[%s906_s7 + $0x70] sm:$0xff] }
  0x12   : > { %v689_v20 = vld [vmem:[%s906_s7 + $0x18] sm:$0xff]  ;;  %v927_v26 = vld [vmem:[%s989_s2] ss:$0 sm:$0xff] }
  0x13   : > { %v693_v21 = vld [vmem:[%s906_s7 + $0x38] sm:$0xff] }
  0x14   : > { %372 = vmatpush.bf16.msra.mxu0 %v707_v2  ;;  %811 = vmatpush.bf16.msra.mxu1 %v707_v2  ;;  %v697_v22 = vld [vmem:[%s906_s7 + $0x58] sm:$0xff] }
  0x15   : > { %812 = vmatpush.bf16.msra.mxu2 %v707_v2  ;;  %813 = vmatpush.bf16.msra.mxu3 %v707_v2  ;;  %v701_v23 = vld [vmem:[%s906_s7 + $0x78] sm:$0xff] }
  0x18   : > { %373 = vmatpush.bf16.msra.mxu0 %v706_v3  ;;  %814 = vmatpush.bf16.msra.mxu1 %v706_v3 }
  0x19   : > { %815 = vmatpush.bf16.msra.mxu2 %v706_v3  ;;  %816 = vmatpush.bf16.msra.mxu3 %v706_v3 }
  0x1c   : > { %374 = vmatpush.bf16.msra.mxu0 %v705_v4  ;;  %817 = vmatpush.bf16.msra.mxu1 %v705_v4 }
  0x1d   : > { %818 = vmatpush.bf16.msra.mxu2 %v705_v4  ;;  %819 = vmatpush.bf16.msra.mxu3 %v705_v4 }
  0x20   : > { %375 = vmatpush.bf16.msra.mxu0 %v704_v5  ;;  %820 = vmatpush.bf16.msra.mxu1 %v704_v5 }
  0x21   : > { %821 = vmatpush.bf16.msra.mxu2 %v704_v5  ;;  %822 = vmatpush.bf16.msra.mxu3 %v704_v5 }
  0x24   : > { %376 = vmatpush.bf16.msra.mxu0 %v703_v6  ;;  %823 = vmatpush.bf16.msra.mxu1 %v703_v6 }
  0x25   : > { %824 = vmatpush.bf16.msra.mxu2 %v703_v6  ;;  %825 = vmatpush.bf16.msra.mxu3 %v703_v6 }
  0x28   : > { %377 = vmatpush.bf16.msra.mxu0 %v702_v7  ;;  %826 = vmatpush.bf16.msra.mxu1 %v702_v7 }
  0x29   : > { %827 = vmatpush.bf16.msra.mxu2 %v702_v7  ;;  %828 = vmatpush.bf16.msra.mxu3 %v702_v7 }
  0x2b   : > { %378 = vmatmul.bf16.vlgmr.msra.gmra.mxu0 %v686_v8  ;;  %398 = vmatmul.bf16.vlgmr.msra.gmra.mxu1 %v690_v9 }
  0x2c   : > { %418 = vmatmul.bf16.vlgmr.msra.gmra.mxu2 %v694_v10  ;;  %438 = vmatmul.bf16.vlgmr.msra.gmra.mxu3 %v698_v11 }
  0x3b   : > { %383 = vmatmul.bf16.gmra.mxu0 %v687_v12  ;;  %403 = vmatmul.bf16.gmra.mxu1 %v691_v13 }
  0x3c   : > { %423 = vmatmul.bf16.gmra.mxu2 %v695_v14  ;;  %443 = vmatmul.bf16.gmra.mxu3 %v699_v15 }
  0x4b   : > { %388 = vmatmul.bf16.gmra.mxu0 %v688_v16  ;;  %408 = vmatmul.bf16.gmra.mxu1 %v692_v17 }
  0x4c   : > { %428 = vmatmul.bf16.gmra.mxu2 %v696_v18  ;;  %448 = vmatmul.bf16.gmra.mxu3 %v700_v19 }
  0x5b   : > { %393 = vmatmul.bf16.gmra.mxu0 %v689_v20  ;;  %413 = vmatmul.bf16.gmra.mxu1 %v693_v21 }
  0x5c   : > { %433 = vmatmul.bf16.gmra.mxu2 %v697_v22  ;;  %453 = vmatmul.bf16.gmra.mxu3 %v701_v23 }
  0xa8   : > { %v379_v24 = vpop.f32.mrf.mxu0  ;;  %v399_v25 = vpop.f32.mrf.mxu1 }
  0xa9   : > { %v380_v31 = vadd.f32 %v927_v26, %v379_v24  ;;  %v400_v32 = vadd.f32 %v927_v26, %v399_v25 }
  0xaf   : > { %v419_v27 = vpop.f32.mrf.mxu2  ;;  %v439_v28 = vpop.f32.mrf.mxu3 }
  0xb0   : > { %v381_v29 = vpop.f32.mrf.mxu0  ;;  %v401_v30 = vpop.f32.mrf.mxu1  ;;  %v420_v39 = vadd.f32 %v927_v26, %v419_v27  ;;  %v440_v40 = vadd.f32 %v927_v26, %v439_v28 }
  0xb1   : > { %v382_v33 = vadd.f32 %v927_v26, %v381_v29  ;;  %v402_v34 = vadd.f32 %v927_v26, %v401_v30 }
  0xb3   : > { %v713_v35 = vpack.c.bf16 %v382_v33, %v380_v31  ;;  %v733_v36 = vpack.c.bf16 %v402_v34, %v400_v32 }
  0xb5   : > { %714 = vst [vmem:[%s938_s13] sm:$0xff] %v713_v35  }
  0xb6   : > { %793 = vst [vmem:[%s938_s13 + $0x20] sm:$0xff] %v733_v36  }
  0xb7   : > { %v421_v37 = vpop.f32.mrf.mxu2  ;;  %v441_v38 = vpop.f32.mrf.mxu3 }
  0xb8   : > { %v422_v41 = vadd.f32 %v927_v26, %v421_v37  ;;  %v442_v42 = vadd.f32 %v927_v26, %v441_v38  ;;  %v384_v43 = vpop.f32.mrf.mxu0  ;;  %v404_v44 = vpop.f32.mrf.mxu1 }
  0xb9   : > { %v385_v51 = vadd.f32 %v927_v26, %v384_v43  ;;  %v405_v52 = vadd.f32 %v927_v26, %v404_v44 }
  0xba   : > { %v753_v45 = vpack.c.bf16 %v422_v41, %v420_v39  ;;  %v773_v46 = vpack.c.bf16 %v442_v42, %v440_v40 }
  0xbc   : > { %797 = vst [vmem:[%s938_s13 + $0x40] sm:$0xff] %v753_v45  }
  0xbd   : > { %801 = vst [vmem:[%s938_s13 + $0x60] sm:$0xff] %v773_v46  }
  0xbf   : > { %v424_v47 = vpop.f32.mrf.mxu2  ;;  %v444_v48 = vpop.f32.mrf.mxu3 }
  0xc0   : > { %v386_v49 = vpop.f32.mrf.mxu0  ;;  %v406_v50 = vpop.f32.mrf.mxu1  ;;  %v425_v59 = vadd.f32 %v927_v26, %v424_v47  ;;  %v445_v60 = vadd.f32 %v927_v26, %v444_v48 }
  0xc1   : > { %v387_v53 = vadd.f32 %v927_v26, %v386_v49  ;;  %v407_v54 = vadd.f32 %v927_v26, %v406_v50 }
  0xc3   : > { %v718_v55 = vpack.c.bf16 %v387_v53, %v385_v51  ;;  %v738_v56 = vpack.c.bf16 %v407_v54, %v405_v52 }
  0xc5   : > { %790 = vst [vmem:[%s938_s13 + $0x8] sm:$0xff] %v718_v55  }
  0xc6   : > { %794 = vst [vmem:[%s938_s13 + $0x28] sm:$0xff] %v738_v56  }
  0xc7   : > { %v426_v57 = vpop.f32.mrf.mxu2  ;;  %v446_v58 = vpop.f32.mrf.mxu3 }
  0xc8   : > { %v427_v61 = vadd.f32 %v927_v26, %v426_v57  ;;  %v447_v62 = vadd.f32 %v927_v26, %v446_v58  ;;  %v389_v63 = vpop.f32.mrf.mxu0  ;;  %v409_v0 = vpop.f32.mrf.mxu1 }
  0xc9   : > { %v390_v7 = vadd.f32 %v927_v26, %v389_v63  ;;  %v410_v8 = vadd.f32 %v927_v26, %v409_v0 }
  0xca   : > { %v758_v1 = vpack.c.bf16 %v427_v61, %v425_v59  ;;  %v778_v2 = vpack.c.bf16 %v447_v62, %v445_v60 }
  0xcc   : > { %798 = vst [vmem:[%s938_s13 + $0x48] sm:$0xff] %v758_v1  }
  0xcd   : > { %802 = vst [vmem:[%s938_s13 + $0x68] sm:$0xff] %v778_v2  }
  0xcf   : > { %v429_v3 = vpop.f32.mrf.mxu2  ;;  %v449_v4 = vpop.f32.mrf.mxu3 }
  0xd0   : > { %v391_v5 = vpop.f32.mrf.mxu0  ;;  %v411_v6 = vpop.f32.mrf.mxu1  ;;  %v430_v15 = vadd.f32 %v927_v26, %v429_v3  ;;  %v450_v16 = vadd.f32 %v927_v26, %v449_v4 }
  0xd1   : > { %v392_v9 = vadd.f32 %v927_v26, %v391_v5  ;;  %v412_v10 = vadd.f32 %v927_v26, %v411_v6 }
  0xd3   : > { %v723_v11 = vpack.c.bf16 %v392_v9, %v390_v7  ;;  %v743_v12 = vpack.c.bf16 %v412_v10, %v410_v8 }
  0xd5   : > { %791 = vst [vmem:[%s938_s13 + $0x10] sm:$0xff] %v723_v11  }
  0xd6   : > { %795 = vst [vmem:[%s938_s13 + $0x30] sm:$0xff] %v743_v12  }
  0xd7   : > { %v431_v13 = vpop.f32.mrf.mxu2  ;;  %v451_v14 = vpop.f32.mrf.mxu3 }
  0xd8   : > { %v432_v17 = vadd.f32 %v927_v26, %v431_v13  ;;  %v452_v18 = vadd.f32 %v927_v26, %v451_v14  ;;  %v394_v19 = vpop.f32.mrf.mxu0  ;;  %v414_v20 = vpop.f32.mrf.mxu1 }
  0xd9   : > { %v395_v28 = vadd.f32 %v927_v26, %v394_v19  ;;  %v415_v29 = vadd.f32 %v927_v26, %v414_v20 }
  0xda   : > { %v763_v21 = vpack.c.bf16 %v432_v17, %v430_v15  ;;  %v783_v22 = vpack.c.bf16 %v452_v18, %v450_v16 }
  0xdc   : > { %799 = vst [vmem:[%s938_s13 + $0x50] sm:$0xff] %v763_v21  }
  0xdd   : > { %803 = vst [vmem:[%s938_s13 + $0x70] sm:$0xff] %v783_v22  }
  0xdf   : > { %v434_v23 = vpop.f32.mrf.mxu2  ;;  %v454_v24 = vpop.f32.mrf.mxu3 }
  0xe0   : > { %v396_v25 = vpop.f32.mrf.mxu0  ;;  %v416_v27 = vpop.f32.mrf.mxu1  ;;  %v435_v36 = vadd.f32 %v927_v26, %v434_v23  ;;  %v455_v37 = vadd.f32 %v927_v26, %v454_v24 }
  0xe1   : > { %v397_v30 = vadd.f32 %v927_v26, %v396_v25  ;;  %v417_v31 = vadd.f32 %v927_v26, %v416_v27 }
  0xe3   : > { %v728_v32 = vpack.c.bf16 %v397_v30, %v395_v28  ;;  %v748_v33 = vpack.c.bf16 %v417_v31, %v415_v29 }
  0xe5   : > { %792 = vst [vmem:[%s938_s13 + $0x18] sm:$0xff] %v728_v32  }
  0xe6   : > { %796 = vst [vmem:[%s938_s13 + $0x38] sm:$0xff] %v748_v33  }
  0xe7   : > { %v436_v34 = vpop.f32.mrf.mxu2  ;;  %v456_v35 = vpop.f32.mrf.mxu3 }
  0xe8   : > { %v437_v38 = vadd.f32 %v927_v26, %v436_v34  ;;  %v457_v39 = vadd.f32 %v927_v26, %v456_v35 }
  0xea   : > { %v768_v40 = vpack.c.bf16 %v437_v38, %v435_v36  ;;  %v788_v41 = vpack.c.bf16 %v457_v39, %v455_v37 }
  0xec   : > { %800 = vst [vmem:[%s938_s13 + $0x58] sm:$0xff] %v768_v40  }
  0xed   : > { %804 = vst [vmem:[%s938_s13 + $0x78] sm:$0xff] %v788_v41  }
  0xee PF: > { %s13_s12 = sadd.s32 1, %s844_s12  }
  0xef   : > { %p10_p4 = scmp.ge.s32.totalorder %s13_s12, 4  }
  0xf1   :  { %12 = sbr.rel (!%p10_p4) target bundleno = 1 (0x1), region = 62 }

// kernel: _lambda_.14
= control target key start
LH: loop header
LB: loop body
LE: loop exit
PB: predicated region body
PF: predicated region fallthrough
CT: control target
= control target key end

     0   :  { %s714_s15 = smov 0   ;;  %s794_s0 = inlined_call_operand.vmem [shape: bf16[64,256], index: 0, kind: input, shape index: {}]   ;;  %s795_s1 = inlined_call_operand.vmem [shape: bf16[256,128], index: 1, kind: input, shape index: {}]   ;;  %s796_s2 = inlined_call_operand.vmem [shape: f32[1,128], index: 2, kind: input, shape index: {}]   ;;  %s797_s3 = inlined_call_operand.vmem [shape: bf16[64,128], index: 3, kind: output, shape index: {0}]   ;;  %s798_s4 = inlined_call_operand.vmem [shape: f32[2,8,128], index: 4, kind: output, shape index: {1}]  }
   0x1 LB: > { %s720_s16 = sadd.s32 4294967295, %s687_s15   ;;  %p535_p0 = scmp.ge.s32.totalorder %s687_s15, 1  ;;  %s687_s15 = sphi %s714_s15, %s15_s15  }
   0x2   : > { %p167_p1 = scmp.lt.s32.totalorder %s687_s15, 3 }
   0x4   : > { %p168_p2 = pnand %p535_p0, %p167_p1 }
   0x5   : > { %s536_s29 = sshll.u32 (!%p168_p2), %s720_s16, 2  ;;  %p211_p4 = scmp.lt.s32.totalorder (!%p168_p2), %s720_s16, 1 }
   0x6   : > { %171 = sbr.rel (%p168_p2) target bundleno = 206 (0xce), region = 32  ;;  %p199_p3 = scmp.lt.s32.totalorder (!%p168_p2), %s536_s29, 7 }
   0xb   : > { %v636_v0 = vld [vmem:[%s795_s1 + $0x38] sm:$0xff]  ;;  %v635_v2 = vld [vmem:[%s795_s1 + $0x30] sm:$0xff]  ;;  %v634_v4 = vld [vmem:[%s795_s1 + $0x28] sm:$0xff]  ;;  %s800_s29 = smov (!%p199_p3, %s536_s29), 7  ;;  %s802_s16 = smov (!%p211_p4, %s720_s16), 1  ;;  %vm439_vm0 = vcmask 1040384  }
   0xc   : > { %v644_v1 = vld [vmem:[%s795_s1 + $0x78] sm:$0xff]  ;;  %371 = vmatpush.bf16.msra.mxu0 %v636_v0  ;;  %656 = vmatpush.bf16.msra.mxu2 %v636_v0  ;;  %v643_v3 = vld [vmem:[%s795_s1 + $0x70] sm:$0xff]  ;;  %v642_v5 = vld [vmem:[%s795_s1 + $0x68] sm:$0xff]  ;;  %s624_s18 = sshll.u32 %s800_s29, 3  ;;  %s540_s7 = sshll.u32 %s800_s29, 2  ;;  %vm441_vm1 = vcmask 1041408  }
   0xd   : > { %390 = vmatpush.bf16.msra.mxu1 %v644_v1  ;;  %664 = vmatpush.bf16.msra.mxu3 %v644_v1  ;;  %v633_v6 = vld [vmem:[%s795_s1 + $0x20] sm:$0xff]  ;;  %v632_v8 = vld [vmem:[%s795_s1 + $0x18] sm:$0xff]  ;;  %v631_v10 = vld [vmem:[%s795_s1 + $0x10] sm:$0xff]  ;;  %s203_s23 = scalar_lea.vmem %s794_s0, %s624_s18  ;;  %s209_s10 = scalar_lea.vmem %s797_s3, %s540_s7 }
   0xe   : > { %v641_v7 = vld [vmem:[%s795_s1 + $0x60] sm:$0xff]  ;;  %v640_v9 = vld [vmem:[%s795_s1 + $0x58] sm:$0xff]  ;;  %v639_v11 = vld [vmem:[%s795_s1 + $0x50] sm:$0xff]  ;;  %s541_s29 = sshll.u32 %s802_s16, 3 }
   0xf   : > { %v630_v12 = vld [vmem:[%s795_s1 + $0x8] sm:$0xff]  ;;  %v629_v14 = vld [vmem:[%s795_s1] sm:$0xff]  ;;  %v552_v18 = vld [vmem:[%s203_s23 + $0x10] sm:$0xf]  ;;  %s214_s13 = scalar_lea.vmem %s798_s4, %s541_s29 }
  0x10   : > { %372 = vmatpush.bf16.msra.mxu0 %v635_v2  ;;  %657 = vmatpush.bf16.msra.mxu2 %v635_v2  ;;  %v638_v13 = vld [vmem:[%s795_s1 + $0x48] sm:$0xff]  ;;  %v637_v15 = vld [vmem:[%s795_s1 + $0x40] sm:$0xff]  ;;  %v628_v19 = vld [vmem:[%s203_s23 + $0x14] sm:$0xf0] }
  0x11   : > { %391 = vmatpush.bf16.msra.mxu1 %v643_v3  ;;  %665 = vmatpush.bf16.msra.mxu3 %v643_v3  ;;  %v544_v16 = vld [vmem:[%s203_s23] sm:$0xf]  ;;  %v626_v17 = vld [vmem:[%s203_s23 + $0x4] sm:$0xf0]  ;;  %v625_v20 = vld [vmem:[%s203_s23 + $0x4] sm:$0xf]  ;;  %v553_v25 = vor.u32 %v628_v19, %v552_v18 }
  0x12   : > { %v546_v21 = vld [vmem:[%s203_s23 + $0x8] sm:$0xf0]  ;;  %v627_v22 = vld [vmem:[%s203_s23 + $0x14] sm:$0xf]  ;;  %v554_v23 = vld [vmem:[%s203_s23 + $0x18] sm:$0xf0]  ;;  %v545_v24 = vor.u32 %v626_v17, %v544_v16 }
  0x13   : > { %v549_v26 = vor.u32 %v625_v20, %v546_v21  ;;  %v557_v27 = vor.u32 %v627_v22, %v554_v23  ;;  %v680_v28 = vld [vmem:[%s796_s2] ss:$0 sm:$0xff] }
  0x14   : > { %373 = vmatpush.bf16.msra.mxu0 %v634_v4  ;;  %658 = vmatpush.bf16.msra.mxu2 %v634_v4 }
  0x15   : > { %392 = vmatpush.bf16.msra.mxu1 %v642_v5  ;;  %666 = vmatpush.bf16.msra.mxu3 %v642_v5 }
  0x18   : > { %374 = vmatpush.bf16.msra.mxu0 %v633_v6  ;;  %659 = vmatpush.bf16.msra.mxu2 %v633_v6 }
  0x19   : > { %393 = vmatpush.bf16.msra.mxu1 %v641_v7  ;;  %667 = vmatpush.bf16.msra.mxu3 %v641_v7 }
  0x1c   : > { %375 = vmatpush.bf16.msra.mxu0 %v632_v8  ;;  %660 = vmatpush.bf16.msra.mxu2 %v632_v8 }
  0x1d   : > { %394 = vmatpush.bf16.msra.mxu1 %v640_v9  ;;  %668 = vmatpush.bf16.msra.mxu3 %v640_v9 }
  0x20   : > { %376 = vmatpush.bf16.msra.mxu0 %v631_v10  ;;  %661 = vmatpush.bf16.msra.mxu2 %v631_v10 }
  0x21   : > { %395 = vmatpush.bf16.msra.mxu1 %v639_v11  ;;  %669 = vmatpush.bf16.msra.mxu3 %v639_v11 }
  0x24   : > { %377 = vmatpush.bf16.msra.mxu0 %v630_v12  ;;  %662 = vmatpush.bf16.msra.mxu2 %v630_v12 }
  0x25   : > { %396 = vmatpush.bf16.msra.mxu1 %v638_v13  ;;  %670 = vmatpush.bf16.msra.mxu3 %v638_v13 }
  0x28   : > { %378 = vmatpush.bf16.msra.mxu0 %v629_v14  ;;  %663 = vmatpush.bf16.msra.mxu2 %v629_v14 }
  0x29   : > { %397 = vmatpush.bf16.msra.mxu1 %v637_v15  ;;  %671 = vmatpush.bf16.msra.mxu3 %v637_v15 }
  0x2b   : > { %379 = vmatmul.bf16.vlgmr.msra.gmra.mxu0 %v545_v24  ;;  %384 = vmatmul.bf16.vlgmr.msra.gmra.mxu2 %v553_v25 }
  0x2c   : > { %398 = vmatmul.bf16.vlgmr.msra.gmra.mxu1 %v549_v26  ;;  %403 = vmatmul.bf16.vlgmr.msra.gmra.mxu3 %v557_v27 }
  0xa8   : > { %v380_v29 = vpop.f32.mrf.mxu0 }
  0xa9   : > { %v399_v30 = vpop.f32.mrf.mxu1  ;;  %v381_v31 = vadd.f32 %v680_v28, %v380_v29 }
  0xab   : > { %v400_v34 = vadd.f32 %v399_v30, %v381_v31 }
  0xad   : > { %v426_v40 = vmul.f32 %v400_v34, %v400_v34 }
  0xae   : > { %v385_v32 = vpop.f32.mrf.mxu2 }
  0xaf   : > { %v404_v33 = vpop.f32.mrf.mxu3  ;;  %v386_v36 = vadd.f32 %v680_v28, %v385_v32 }
  0xb0   : > { %v382_v35 = vpop.f32.mrf.mxu0 }
  0xb1   : > { %v383_v37 = vadd.f32 %v680_v28, %v382_v35  ;;  %v401_v38 = vpop.f32.mrf.mxu1  ;;  %v405_v41 = vadd.f32 %v404_v33, %v386_v36 }
  0xb3   : > { %v402_v39 = vadd.f32 %v401_v38, %v383_v37  ;;  %v428_v49 = vmul.f32 %v405_v41, %v405_v41 }
  0xb5   : > { %v648_v42 = vpack.c.bf16 %v402_v39, %v400_v34  ;;  %v417_v43 = vadd.f32 %v402_v39, %v400_v34  ;;  %v427_v44 = vmul.f32 %v402_v39, %v402_v39 }
  0xb6   : > { %v387_v45 = vpop.f32.mrf.mxu2 }
  0xb7   : > { %649 = vst [vmem:[%s209_s10] sm:$0xff] %v648_v42   ;;  %v430_v46 = vadd.f32 %v427_v44, %v426_v40  ;;  %v388_v47 = vadd.f32 %v680_v28, %v387_v45  ;;  %v406_v48 = vpop.f32.mrf.mxu3  ;;  %v418_v51 = vadd.f32 %v417_v43, %v405_v41 }
  0xb9   : > { %v407_v50 = vadd.f32 %v406_v48, %v388_v47  ;;  %v431_v55 = vadd.f32 %v430_v46, %v428_v49 }
  0xbb   : > { %v653_v52 = vpack.c.bf16 %v407_v50, %v405_v41  ;;  %v419_v53 = vadd.f32 %v418_v51, %v407_v50  ;;  %v429_v54 = vmul.f32 %v407_v50, %v407_v50 }
  0xbd   : > { %655 = vst [vmem:[%s209_s10 + $0x8] sm:$0xff] %v653_v52   ;;  %v420_v56 = vrot.slane %v419_v53, 4  ;;  %v432_v57 = vadd.f32 %v431_v55, %v429_v54 }
  0xbf   : > { %v421_v58 = vadd.f32 %v420_v56, %v419_v53  ;;  %v433_v59 = vrot.slane %v432_v57, 4 }
  0xc1   : > { %v422_v60 = vrot.slane %v421_v58, 2  ;;  %v434_v61 = vadd.f32 %v433_v59, %v432_v57 }
  0xc3   : > { %v423_v62 = vadd.f32 %v422_v60, %v421_v58  ;;  %v435_v63 = vrot.slane %v434_v61, 2 }
  0xc5   : > { %v424_v0 = vrot.slane %v423_v62, 1  ;;  %v436_v1 = vadd.f32 %v435_v63, %v434_v61 }
  0xc7   : > { %v437_v2 = vrot.slane %v436_v1, 1  ;;  %v425_v3 = vadd.f32 %v424_v0, %v423_v62 }
  0xc9   : > { %v438_v4 = vadd.f32 %v437_v2, %v436_v1 }
  0xcb   : > { %v440_v5 = vsel %vm439_vm0, %v425_v3, %v438_v4 }
  0xcc   : > { %v442_v6 = vsel %vm441_vm1, %v440_v5, 0.0 }
  0xcd   : > { %443 = vst [vmem:[%s214_s13] sm:$0xff] %v442_v6 }
  0xce PF: > { %s15_s15 = sadd.s32 1, %s687_s15  }
  0xcf   : > { %p12_p5 = scmp.ge.s32.totalorder %s15_s15, 4  }
  0xd1   :  { %14 = sbr.rel (!%p12_p5) target bundleno = 1 (0x1), region = 74 }

// kernel: _lambda_.15
= control target key start
LH: loop header
LB: loop body
LE: loop exit
PB: predicated region body
PF: predicated region fallthrough
CT: control target
= control target key end

     0   :  { %s331_s12 = smov 0   ;;  %s354_s0 = inlined_call_operand.vmem [shape: bf16[64,128], index: 0, kind: input, shape index: {}]   ;;  %s355_s1 = inlined_call_operand.vmem [shape: f32[1,128], index: 1, kind: input, shape index: {}]   ;;  %s356_s2 = inlined_call_operand.vmem [shape: f32[1,128], index: 2, kind: input, shape index: {}]   ;;  %s357_s3 = inlined_call_operand.vmem [shape: bf16[64,128], index: 3, kind: output, shape index: {}]  }
   0x1 LB: > { %s262_s13 = sadd.s32 4294967295, %s309_s12   ;;  %p266_p0 = scmp.ge.s32.totalorder %s309_s12, 1  ;;  %s309_s12 = sphi %s331_s12, %s13_s12  }
   0x2   : > { %p138_p1 = scmp.lt.s32.totalorder %s309_s12, 3 }
   0x4   : > { %p139_p2 = pnand %p266_p0, %p138_p1 }
   0x5   : > { %s267_s14 = sshll.u32 (!%p139_p2), %s262_s13, 2 }
   0x6   : > { %142 = sbr.rel (%p139_p2) target bundleno = 25 (0x19), region = 32  ;;  %p163_p3 = scmp.lt.s32.totalorder (!%p139_p2), %s267_s14, 7 }
   0xb   : > { %s359_s14 = smov (!%p163_p3, %s267_s14), 7  ;;  %v301_v0 = vld [vmem:[%s355_s1] ss:$0 sm:$0xff] }
   0xc   : > { %s268_s15 = sshll.u32 %s359_s14, 2  ;;  %v302_v7 = vld [vmem:[%s356_s2] ss:$0 sm:$0xff] }
   0xd   : > { %s166_s18 = scalar_lea.vmem %s354_s0, %s268_s15  ;;  %s172_s25 = scalar_lea.vmem %s357_s3, %s268_s15 }
   0xe   : > { %v274_v1 = vld [vmem:[%s166_s18] sm:$0xff]   ;;  %v291_v2 = vld [vmem:[%s166_s18 + $0x8] sm:$0xff]  }
   0xf   : > { %v275_v3 = vunpack.c.l.bf16 %v274_v1  ;;  %v276_v4 = vunpack.c.h.bf16 %v274_v1  ;;  %v279_v5 = vunpack.c.l.bf16 %v291_v2  ;;  %v280_v6 = vunpack.c.h.bf16 %v291_v2 }
  0x11   : > { %v186_v8 = vmul.f32 %v301_v0, %v275_v3  ;;  %v187_v9 = vmul.f32 %v301_v0, %v276_v4  ;;  %v188_v10 = vmul.f32 %v301_v0, %v279_v5  ;;  %v189_v11 = vmul.f32 %v301_v0, %v280_v6 }
  0x13   : > { %v194_v12 = vadd.f32 %v302_v7, %v186_v8  ;;  %v195_v13 = vadd.f32 %v302_v7, %v187_v9  ;;  %v196_v14 = vadd.f32 %v302_v7, %v188_v10  ;;  %v197_v15 = vadd.f32 %v302_v7, %v189_v11 }
  0x15   : > { %v284_v16 = vpack.c.bf16 %v195_v13, %v194_v12  ;;  %v289_v17 = vpack.c.bf16 %v197_v15, %v196_v14 }
  0x17   : > { %285 = vst [vmem:[%s172_s25] sm:$0xff] %v284_v16  }
  0x18   : > { %292 = vst [vmem:[%s172_s25 + $0x8] sm:$0xff] %v289_v17  }
  0x19 PF: > { %s13_s12 = sadd.s32 1, %s309_s12  }
  0x1a   : > { %p10_p4 = scmp.ge.s32.totalorder %s13_s12, 4  }
  0x1c   :  { %12 = sbr.rel (!%p10_p4) target bundleno = 1 (0x1), region = 62 }

// kernel: _lambda_.16
= control target key start
LH: loop header
LB: loop body
LE: loop exit
PB: predicated region body
PF: predicated region fallthrough
CT: control target
= control target key end

     0   :  { %vm376_vm0 = vcmask 1040384   ;;  %vm378_vm1 = vcmask 1041408   ;;  %s729_s1 = inlined_call_operand.vmem [shape: bf16[512,128], index: 1, kind: input, shape index: {}]   ;;  %s730_s2 = inlined_call_operand.vmem [shape: f32[1,128], index: 2, kind: input, shape index: {}]   ;;  %s731_s0 = inlined_call_operand.vmem [shape: bf16[16,512], index: 0, kind: input, shape index: {}]   ;;  %s732_s3 = inlined_call_operand.vmem [shape: bf16[16,128], index: 3, kind: output, shape index: {0}]   ;;  %s733_s4 = inlined_call_operand.vmem [shape: f32[1,8,128], index: 4, kind: output, shape index: {1}]  }
   0x1   :  { %v544_v0 = vld [vmem:[%s729_s1 + $0x38] sm:$0xff]  ;;  %v543_v4 = vld [vmem:[%s729_s1 + $0x30] sm:$0xff]  ;;  %v542_v8 = vld [vmem:[%s729_s1 + $0x28] sm:$0xff] }
   0x2   :  { %v552_v1 = vld [vmem:[%s729_s1 + $0x78] sm:$0xff]  ;;  %300 = vmatpush.bf16.msra.mxu0 %v544_v0  ;;  %v551_v5 = vld [vmem:[%s729_s1 + $0x70] sm:$0xff]  ;;  %v550_v9 = vld [vmem:[%s729_s1 + $0x68] sm:$0xff] }
   0x3   :  { %v560_v2 = vld [vmem:[%s729_s1 + $0xb8] sm:$0xff]  ;;  %314 = vmatpush.bf16.msra.mxu1 %v552_v1  ;;  %v559_v6 = vld [vmem:[%s729_s1 + $0xb0] sm:$0xff]  ;;  %v558_v10 = vld [vmem:[%s729_s1 + $0xa8] sm:$0xff] }
   0x4   :  { %v568_v3 = vld [vmem:[%s729_s1 + $0xf8] sm:$0xff]  ;;  %328 = vmatpush.bf16.msra.mxu2 %v560_v2  ;;  %v567_v7 = vld [vmem:[%s729_s1 + $0xf0] sm:$0xff]  ;;  %v566_v11 = vld [vmem:[%s729_s1 + $0xe8] sm:$0xff] }
   0x5   :  { %342 = vmatpush.bf16.msra.mxu3 %v568_v3  ;;  %v541_v12 = vld [vmem:[%s729_s1 + $0x20] sm:$0xff]  ;;  %v540_v16 = vld [vmem:[%s729_s1 + $0x18] sm:$0xff]  ;;  %v539_v20 = vld [vmem:[%s729_s1 + $0x10] sm:$0xff] }
   0x6   :  { %301 = vmatpush.bf16.msra.mxu0 %v543_v4  ;;  %v549_v13 = vld [vmem:[%s729_s1 + $0x60] sm:$0xff]  ;;  %v548_v17 = vld [vmem:[%s729_s1 + $0x58] sm:$0xff]  ;;  %v547_v21 = vld [vmem:[%s729_s1 + $0x50] sm:$0xff] }
   0x7   :  { %315 = vmatpush.bf16.msra.mxu1 %v551_v5  ;;  %v557_v14 = vld [vmem:[%s729_s1 + $0xa0] sm:$0xff]  ;;  %v556_v18 = vld [vmem:[%s729_s1 + $0x98] sm:$0xff]  ;;  %v555_v22 = vld [vmem:[%s729_s1 + $0x90] sm:$0xff] }
   0x8   :  { %329 = vmatpush.bf16.msra.mxu2 %v559_v6  ;;  %v565_v15 = vld [vmem:[%s729_s1 + $0xe0] sm:$0xff]  ;;  %v564_v19 = vld [vmem:[%s729_s1 + $0xd8] sm:$0xff]  ;;  %v563_v23 = vld [vmem:[%s729_s1 + $0xd0] sm:$0xff] }
   0x9   :  { %343 = vmatpush.bf16.msra.mxu3 %v567_v7  ;;  %v538_v24 = vld [vmem:[%s729_s1 + $0x8] sm:$0xff]  ;;  %v537_v28 = vld [vmem:[%s729_s1] sm:$0xff]  ;;  %v535_v33 = vld [vmem:[%s731_s0 + $0xc] sm:$0xf0] }
   0xa   :  { %302 = vmatpush.bf16.msra.mxu0 %v542_v8  ;;  %v546_v25 = vld [vmem:[%s729_s1 + $0x48] sm:$0xff]  ;;  %v545_v29 = vld [vmem:[%s729_s1 + $0x40] sm:$0xff]  ;;  %v393_v35 = vld [vmem:[%s731_s0 + $0x10] sm:$0xf0] }
   0xb   :  { %316 = vmatpush.bf16.msra.mxu1 %v550_v9  ;;  %v554_v26 = vld [vmem:[%s729_s1 + $0x88] sm:$0xff]  ;;  %v553_v30 = vld [vmem:[%s729_s1 + $0x80] sm:$0xff]  ;;  %v536_v37 = vld [vmem:[%s731_s0 + $0x14] sm:$0xf0] }
   0xc   :  { %330 = vmatpush.bf16.msra.mxu2 %v558_v10  ;;  %v562_v27 = vld [vmem:[%s729_s1 + $0xc8] sm:$0xff]  ;;  %v561_v31 = vld [vmem:[%s729_s1 + $0xc0] sm:$0xff]  ;;  %v401_v39 = vld [vmem:[%s731_s0 + $0x18] sm:$0xf0] }
   0xd   :  { %344 = vmatpush.bf16.msra.mxu3 %v566_v11  ;;  %v391_v32 = vld [vmem:[%s731_s0] sm:$0xf]  ;;  %v533_v34 = vld [vmem:[%s731_s0 + $0x4] sm:$0xf]  ;;  %v399_v36 = vld [vmem:[%s731_s0 + $0x8] sm:$0xf] }
   0xe   :  { %303 = vmatpush.bf16.msra.mxu0 %v541_v12  ;;  %v534_v38 = vld [vmem:[%s731_s0 + $0xc] sm:$0xf]  ;;  %v392_v40 = vor.u32 %v535_v33, %v391_v32  ;;  %v396_v41 = vor.u32 %v533_v34, %v393_v35  ;;  %v400_v42 = vor.u32 %v536_v37, %v399_v36  ;;  %v574_v44 = vld [vmem:[%s730_s2] ss:$0 sm:$0xff] }
   0xf   :  { %317 = vmatpush.bf16.msra.mxu1 %v549_v13  ;;  %v404_v43 = vor.u32 %v534_v38, %v401_v39 }
  0x10   :  { %331 = vmatpush.bf16.msra.mxu2 %v557_v14 }
  0x11   :  { %345 = vmatpush.bf16.msra.mxu3 %v565_v15 }
  0x12   :  { %304 = vmatpush.bf16.msra.mxu0 %v540_v16 }
  0x13   :  { %318 = vmatpush.bf16.msra.mxu1 %v548_v17 }
  0x14   :  { %332 = vmatpush.bf16.msra.mxu2 %v556_v18 }
  0x15   :  { %346 = vmatpush.bf16.msra.mxu3 %v564_v19 }
  0x16   :  { %305 = vmatpush.bf16.msra.mxu0 %v539_v20 }
  0x17   :  { %319 = vmatpush.bf16.msra.mxu1 %v547_v21 }
  0x18   :  { %333 = vmatpush.bf16.msra.mxu2 %v555_v22 }
  0x19   :  { %347 = vmatpush.bf16.msra.mxu3 %v563_v23 }
  0x1a   :  { %306 = vmatpush.bf16.msra.mxu0 %v538_v24 }
  0x1b   :  { %320 = vmatpush.bf16.msra.mxu1 %v546_v25 }
  0x1c   :  { %334 = vmatpush.bf16.msra.mxu2 %v554_v26 }
  0x1d   :  { %348 = vmatpush.bf16.msra.mxu3 %v562_v27 }
  0x1e   :  { %307 = vmatpush.bf16.msra.mxu0 %v537_v28 }
  0x1f   :  { %321 = vmatpush.bf16.msra.mxu1 %v545_v29 }
  0x20   :  { %335 = vmatpush.bf16.msra.mxu2 %v553_v30 }
  0x21   :  { %349 = vmatpush.bf16.msra.mxu3 %v561_v31  ;;  %308 = vmatmul.bf16.vlgmr.msra.gmra.mxu0 %v392_v40 }
  0x22   :  { %322 = vmatmul.bf16.vlgmr.msra.gmra.mxu1 %v396_v41 }
  0x23   :  { %336 = vmatmul.bf16.vlgmr.msra.gmra.mxu2 %v400_v42 }
  0x24   :  { %350 = vmatmul.bf16.vlgmr.msra.gmra.mxu3 %v404_v43 }
  0x9e   :  { %v309_v45 = vpop.f32.mrf.mxu0 }
  0x9f   :  { %v323_v46 = vpop.f32.mrf.mxu1  ;;  %v310_v47 = vadd.f32 %v574_v44, %v309_v45 }
  0xa1   :  { %v324_v50 = vadd.f32 %v323_v46, %v310_v47 }
  0xa6   :  { %v337_v48 = vpop.f32.mrf.mxu2  ;;  %v311_v51 = vpop.f32.mrf.mxu0 }
  0xa7   :  { %v351_v49 = vpop.f32.mrf.mxu3  ;;  %v312_v52 = vadd.f32 %v574_v44, %v311_v51  ;;  %v338_v53 = vadd.f32 %v337_v48, %v324_v50  ;;  %v325_v54 = vpop.f32.mrf.mxu1 }
  0xa9   :  { %v326_v55 = vadd.f32 %v325_v54, %v312_v52  ;;  %v352_v57 = vadd.f32 %v351_v49, %v338_v53 }
  0xab   :  { %v367_v61 = vmul.f32 %v352_v57, %v352_v57 }
  0xae   :  { %v339_v56 = vpop.f32.mrf.mxu2 }
  0xaf   :  { %v340_v58 = vadd.f32 %v339_v56, %v326_v55  ;;  %v353_v59 = vpop.f32.mrf.mxu3 }
  0xb1   :  { %v354_v60 = vadd.f32 %v353_v59, %v340_v58 }
  0xb3   :  { %v572_v62 = vpack.c.bf16 %v354_v60, %v352_v57  ;;  %v360_v63 = vadd.f32 %v354_v60, %v352_v57  ;;  %v368_v0 = vmul.f32 %v354_v60, %v354_v60 }
  0xb5   :  { %573 = vst [vmem:[%s732_s3] sm:$0xff] %v572_v62   ;;  %v361_v1 = vrot.slane %v360_v63, 4  ;;  %v369_v2 = vadd.f32 %v368_v0, %v367_v61 }
  0xb7   :  { %v362_v3 = vadd.f32 %v361_v1, %v360_v63  ;;  %v370_v4 = vrot.slane %v369_v2, 4 }
  0xb9   :  { %v363_v5 = vrot.slane %v362_v3, 2  ;;  %v371_v6 = vadd.f32 %v370_v4, %v369_v2 }
  0xbb   :  { %v364_v7 = vadd.f32 %v363_v5, %v362_v3  ;;  %v372_v8 = vrot.slane %v371_v6, 2 }
  0xbd   :  { %v365_v9 = vrot.slane %v364_v7, 1  ;;  %v373_v10 = vadd.f32 %v372_v8, %v371_v6 }
  0xbf   :  { %v374_v11 = vrot.slane %v373_v10, 1  ;;  %v366_v12 = vadd.f32 %v365_v9, %v364_v7 }
  0xc1   :  { %v375_v13 = vadd.f32 %v374_v11, %v373_v10 }
  0xc3   :  { %v377_v14 = vsel %vm376_vm0, %v366_v12, %v375_v13 }
  0xc4   :  { %v379_v15 = vsel %vm378_vm1, %v377_v14, 0.0 }
  0xc5   :  { %380 = vst [vmem:[%s733_s4] sm:$0xff] %v379_v15 }

// kernel: _lambda_.17
= control target key start
LH: loop header
LB: loop body
LE: loop exit
PB: predicated region body
PF: predicated region fallthrough
CT: control target
= control target key end

     0   :  { %s81_s0 = inlined_call_operand.vmem [shape: bf16[16,128], index: 0, kind: input, shape index: {}]   ;;  %s82_s1 = inlined_call_operand.vmem [shape: f32[1,128], index: 1, kind: input, shape index: {}]   ;;  %s83_s2 = inlined_call_operand.vmem [shape: f32[1,128], index: 2, kind: input, shape index: {}]   ;;  %s84_s3 = inlined_call_operand.vmem [shape: bf16[16,128], index: 3, kind: output, shape index: {}]  }
   0x1   :  { %v39_v0 = vld [vmem:[%s81_s0] sm:$0xff]  }
   0x2   :  { %v47_v1 = vld [vmem:[%s82_s1] ss:$0 sm:$0xff]  ;;  %v40_v2 = vunpack.c.l.bf16 %v39_v0  ;;  %v41_v3 = vunpack.c.h.bf16 %v39_v0 }
   0x3   :  { %v48_v4 = vld [vmem:[%s83_s2] ss:$0 sm:$0xff] }
   0x4   :  { %v22_v5 = vmul.f32 %v47_v1, %v40_v2  ;;  %v23_v6 = vmul.f32 %v47_v1, %v41_v3 }
   0x6   :  { %v28_v7 = vadd.f32 %v48_v4, %v22_v5  ;;  %v29_v8 = vadd.f32 %v48_v4, %v23_v6 }
   0x8   :  { %v45_v9 = vpack.c.bf16 %v29_v8, %v28_v7 }
   0xa   :  { %46 = vst [vmem:[%s84_s3] sm:$0xff] %v45_v9  }

// kernel: _lambda_.18
= control target key start
LH: loop header
LB: loop body
LE: loop exit
PB: predicated region body
PF: predicated region fallthrough
CT: control target
= control target key end

     0   :  { %vm630_vm0 = vcmask 1040384   ;;  %vm632_vm1 = vcmask 1041408   ;;  %s1208_s1 = inlined_call_operand.vmem [shape: bf16[896,128], index: 1, kind: input, shape index: {}]   ;;  %s1209_s2 = inlined_call_operand.vmem [shape: f32[1,128], index: 2, kind: input, shape index: {}]   ;;  %s1210_s0 = inlined_call_operand.vmem [shape: bf16[16,896], index: 0, kind: input, shape index: {}]   ;;  %s1211_s3 = inlined_call_operand.vmem [shape: bf16[16,128], index: 3, kind: output, shape index: {0}]   ;;  %s1212_s4 = inlined_call_operand.vmem [shape: f32[1,8,128], index: 4, kind: output, shape index: {1}]  }
   0x1   :  { %v909_v0 = vld [vmem:[%s1208_s1 + $0x38] sm:$0xff]  ;;  %v908_v3 = vld [vmem:[%s1208_s1 + $0x30] sm:$0xff]  ;;  %v907_v8 = vld [vmem:[%s1208_s1 + $0x28] sm:$0xff] }
   0x2   :  { %v917_v1 = vld [vmem:[%s1208_s1 + $0x78] sm:$0xff]  ;;  %512 = vmatpush.bf16.msra.mxu0 %v909_v0  ;;  %v916_v4 = vld [vmem:[%s1208_s1 + $0x70] sm:$0xff]  ;;  %v915_v9 = vld [vmem:[%s1208_s1 + $0x68] sm:$0xff] }
   0x3   :  { %v925_v2 = vld [vmem:[%s1208_s1 + $0xb8] sm:$0xff]  ;;  %526 = vmatpush.bf16.msra.mxu1 %v917_v1  ;;  %v924_v6 = vld [vmem:[%s1208_s1 + $0xb0] sm:$0xff]  ;;  %v923_v10 = vld [vmem:[%s1208_s1 + $0xa8] sm:$0xff] }
   0x4   :  { %v933_v5 = vld [vmem:[%s1208_s1 + $0xf8] sm:$0xff]  ;;  %540 = vmatpush.bf16.msra.mxu2 %v925_v2  ;;  %v932_v7 = vld [vmem:[%s1208_s1 + $0xf0] sm:$0xff]  ;;  %v931_v11 = vld [vmem:[%s1208_s1 + $0xe8] sm:$0xff] }
   0x5   :  { %554 = vmatpush.bf16.msra.mxu3 %v933_v5  ;;  %v906_v12 = vld [vmem:[%s1208_s1 + $0x20] sm:$0xff]  ;;  %v905_v16 = vld [vmem:[%s1208_s1 + $0x18] sm:$0xff]  ;;  %v904_v20 = vld [vmem:[%s1208_s1 + $0x10] sm:$0xff] }
   0x6   :  { %513 = vmatpush.bf16.msra.mxu0 %v908_v3  ;;  %v914_v13 = vld [vmem:[%s1208_s1 + $0x60] sm:$0xff]  ;;  %v913_v17 = vld [vmem:[%s1208_s1 + $0x58] sm:$0xff]  ;;  %v912_v21 = vld [vmem:[%s1208_s1 + $0x50] sm:$0xff] }
   0x7   :  { %527 = vmatpush.bf16.msra.mxu1 %v916_v4  ;;  %v922_v14 = vld [vmem:[%s1208_s1 + $0xa0] sm:$0xff]  ;;  %v921_v18 = vld [vmem:[%s1208_s1 + $0x98] sm:$0xff]  ;;  %v920_v22 = vld [vmem:[%s1208_s1 + $0x90] sm:$0xff] }
   0x8   :  { %541 = vmatpush.bf16.msra.mxu2 %v924_v6  ;;  %v930_v15 = vld [vmem:[%s1208_s1 + $0xe0] sm:$0xff]  ;;  %v929_v19 = vld [vmem:[%s1208_s1 + $0xd8] sm:$0xff]  ;;  %v928_v23 = vld [vmem:[%s1208_s1 + $0xd0] sm:$0xff] }
   0x9   :  { %555 = vmatpush.bf16.msra.mxu3 %v932_v7  ;;  %v903_v24 = vld [vmem:[%s1208_s1 + $0x8] sm:$0xff]  ;;  %v902_v27 = vld [vmem:[%s1208_s1] sm:$0xff]  ;;  %v941_v31 = vld [vmem:[%s1208_s1 + $0x138] sm:$0xff] }
   0xa   :  { %514 = vmatpush.bf16.msra.mxu0 %v907_v8  ;;  %v911_v25 = vld [vmem:[%s1208_s1 + $0x48] sm:$0xff]  ;;  %v910_v29 = vld [vmem:[%s1208_s1 + $0x40] sm:$0xff]  ;;  %v898_v34 = vld [vmem:[%s1210_s0 + $0x18] sm:$0xf0] }
   0xb   :  { %528 = vmatpush.bf16.msra.mxu1 %v915_v9  ;;  %v919_v26 = vld [vmem:[%s1208_s1 + $0x88] sm:$0xff]  ;;  %v918_v30 = vld [vmem:[%s1208_s1 + $0x80] sm:$0xff]  ;;  %v949_v38 = vld [vmem:[%s1208_s1 + $0x178] sm:$0xff] }
   0xc   :  { %542 = vmatpush.bf16.msra.mxu2 %v923_v10  ;;  %v927_v28 = vld [vmem:[%s1208_s1 + $0xc8] sm:$0xff]  ;;  %v645_v33 = vld [vmem:[%s1210_s0] sm:$0xf]  ;;  %v899_v35 = vld [vmem:[%s1210_s0 + $0x20] sm:$0xf0] }
   0xd   :  { %556 = vmatpush.bf16.msra.mxu3 %v931_v11  ;;  %v653_v32 = vld [vmem:[%s1210_s0 + $0x8] sm:$0xf]  ;;  %v895_v36 = vld [vmem:[%s1210_s0 + $0x4] sm:$0xf]  ;;  %v647_v37 = vld [vmem:[%s1210_s0 + $0x1c] sm:$0xf0]  ;;  %v646_v41 = vor.u32 %v898_v34, %v645_v33 }
   0xe   :  { %515 = vmatpush.bf16.msra.mxu0 %v906_v12  ;;  %v957_v39 = vld [vmem:[%s1208_s1 + $0x1b8] sm:$0xff]  ;;  %v926_v40 = vld [vmem:[%s1208_s1 + $0xc0] sm:$0xff]  ;;  %v654_v42 = vor.u32 %v899_v35, %v653_v32  ;;  %v896_v43 = vld [vmem:[%s1210_s0 + $0xc] sm:$0xf]  ;;  %v650_v45 = vor.u32 %v895_v36, %v647_v37 }
   0xf   :  { %529 = vmatpush.bf16.msra.mxu1 %v914_v13  ;;  %v655_v44 = vld [vmem:[%s1210_s0 + $0x24] sm:$0xf0]  ;;  %v940_v46 = vld [vmem:[%s1208_s1 + $0x130] sm:$0xff]  ;;  %v938_v53 = vld [vmem:[%s1208_s1 + $0x120] sm:$0xff] }
  0x10   :  { %543 = vmatpush.bf16.msra.mxu2 %v922_v14  ;;  %v948_v47 = vld [vmem:[%s1208_s1 + $0x170] sm:$0xff]  ;;  %v658_v49 = vor.u32 %v896_v43, %v655_v44  ;;  %v939_v50 = vld [vmem:[%s1208_s1 + $0x128] sm:$0xff]  ;;  %v946_v54 = vld [vmem:[%s1208_s1 + $0x160] sm:$0xff] }
  0x11   :  { %557 = vmatpush.bf16.msra.mxu3 %v930_v15  ;;  %v956_v48 = vld [vmem:[%s1208_s1 + $0x1b0] sm:$0xff]  ;;  %v947_v51 = vld [vmem:[%s1208_s1 + $0x168] sm:$0xff]  ;;  %v954_v55 = vld [vmem:[%s1208_s1 + $0x1a0] sm:$0xff] }
  0x12   :  { %516 = vmatpush.bf16.msra.mxu0 %v905_v16  ;;  %v955_v52 = vld [vmem:[%s1208_s1 + $0x1a8] sm:$0xff]  ;;  %v937_v56 = vld [vmem:[%s1208_s1 + $0x118] sm:$0xff]  ;;  %v936_v59 = vld [vmem:[%s1208_s1 + $0x110] sm:$0xff] }
  0x13   :  { %530 = vmatpush.bf16.msra.mxu1 %v913_v17  ;;  %v945_v57 = vld [vmem:[%s1208_s1 + $0x158] sm:$0xff]  ;;  %v944_v60 = vld [vmem:[%s1208_s1 + $0x150] sm:$0xff]  ;;  %v935_v62 = vld [vmem:[%s1208_s1 + $0x108] sm:$0xff] }
  0x14   :  { %544 = vmatpush.bf16.msra.mxu2 %v921_v18  ;;  %v953_v58 = vld [vmem:[%s1208_s1 + $0x198] sm:$0xff]  ;;  %v952_v61 = vld [vmem:[%s1208_s1 + $0x190] sm:$0xff]  ;;  %v943_v63 = vld [vmem:[%s1208_s1 + $0x148] sm:$0xff] }
  0x15   :  { %558 = vmatpush.bf16.msra.mxu3 %v929_v19  ;;  %v951_v0 = vld [vmem:[%s1208_s1 + $0x188] sm:$0xff]  ;;  %v934_v1 = vld [vmem:[%s1208_s1 + $0x100] sm:$0xff]  ;;  %v661_v4 = vld [vmem:[%s1210_s0 + $0x10] sm:$0xf] }
  0x16   :  { %517 = vmatpush.bf16.msra.mxu0 %v904_v20  ;;  %v942_v2 = vld [vmem:[%s1208_s1 + $0x140] sm:$0xff]  ;;  %v900_v5 = vld [vmem:[%s1210_s0 + $0x28] sm:$0xf0]  ;;  %v897_v6 = vld [vmem:[%s1210_s0 + $0x14] sm:$0xf] }
  0x17   :  { %531 = vmatpush.bf16.msra.mxu1 %v912_v21  ;;  %v950_v3 = vld [vmem:[%s1208_s1 + $0x180] sm:$0xff]  ;;  %v663_v7 = vld [vmem:[%s1210_s0 + $0x2c] sm:$0xf0]  ;;  %v669_v8 = vld [vmem:[%s1210_s0 + $0x18] sm:$0xf]  ;;  %v662_v10 = vor.u32 %v900_v5, %v661_v4 }
  0x18   :  { %545 = vmatpush.bf16.msra.mxu2 %v920_v22  ;;  %v901_v9 = vld [vmem:[%s1210_s0 + $0x30] sm:$0xf0]  ;;  %v666_v11 = vor.u32 %v897_v6, %v663_v7  ;;  %v963_v16 = vld [vmem:[%s1209_s2] ss:$0 sm:$0xff] }
  0x19   :  { %559 = vmatpush.bf16.msra.mxu3 %v928_v23  ;;  %v670_v12 = vor.u32 %v901_v9, %v669_v8 }
  0x1a   :  { %518 = vmatpush.bf16.msra.mxu0 %v903_v24 }
  0x1b   :  { %532 = vmatpush.bf16.msra.mxu1 %v911_v25 }
  0x1c   :  { %546 = vmatpush.bf16.msra.mxu2 %v919_v26 }
  0x1d   :  { %560 = vmatpush.bf16.msra.mxu3 %v927_v28 }
  0x1e   :  { %519 = vmatpush.bf16.msra.mxu0 %v902_v27 }
  0x1f   :  { %533 = vmatpush.bf16.msra.mxu1 %v910_v29 }
  0x20   :  { %547 = vmatpush.bf16.msra.mxu2 %v918_v30 }
  0x21   :  { %561 = vmatpush.bf16.msra.mxu3 %v926_v40  ;;  %520 = vmatmul.bf16.vlgmr.msra.gmra.mxu0 %v646_v41 }
  0x22   :  { %568 = vmatpush.bf16.msrb.mxu0 %v941_v31  ;;  %534 = vmatmul.bf16.vlgmr.msra.gmra.mxu1 %v650_v45 }
  0x23   :  { %582 = vmatpush.bf16.msrb.mxu1 %v949_v38  ;;  %548 = vmatmul.bf16.vlgmr.msra.gmra.mxu2 %v654_v42 }
  0x24   :  { %596 = vmatpush.bf16.msrb.mxu2 %v957_v39  ;;  %562 = vmatmul.bf16.vlgmr.msra.gmra.mxu3 %v658_v49 }
  0x26   :  { %569 = vmatpush.bf16.msrb.mxu0 %v940_v46 }
  0x27   :  { %583 = vmatpush.bf16.msrb.mxu1 %v948_v47 }
  0x28   :  { %597 = vmatpush.bf16.msrb.mxu2 %v956_v48 }
  0x2a   :  { %570 = vmatpush.bf16.msrb.mxu0 %v939_v50 }
  0x2b   :  { %584 = vmatpush.bf16.msrb.mxu1 %v947_v51 }
  0x2c   :  { %598 = vmatpush.bf16.msrb.mxu2 %v955_v52 }
  0x2e   :  { %571 = vmatpush.bf16.msrb.mxu0 %v938_v53 }
  0x2f   :  { %585 = vmatpush.bf16.msrb.mxu1 %v946_v54 }
  0x30   :  { %599 = vmatpush.bf16.msrb.mxu2 %v954_v55 }
  0x32   :  { %572 = vmatpush.bf16.msrb.mxu0 %v937_v56 }
  0x33   :  { %586 = vmatpush.bf16.msrb.mxu1 %v945_v57 }
  0x34   :  { %600 = vmatpush.bf16.msrb.mxu2 %v953_v58 }
  0x36   :  { %573 = vmatpush.bf16.msrb.mxu0 %v936_v59 }
  0x37   :  { %587 = vmatpush.bf16.msrb.mxu1 %v944_v60 }
  0x38   :  { %601 = vmatpush.bf16.msrb.mxu2 %v952_v61 }
  0x3a   :  { %574 = vmatpush.bf16.msrb.mxu0 %v935_v62 }
  0x3b   :  { %588 = vmatpush.bf16.msrb.mxu1 %v943_v63 }
  0x3c   :  { %602 = vmatpush.bf16.msrb.mxu2 %v951_v0 }
  0x3e   :  { %575 = vmatpush.bf16.msrb.mxu0 %v934_v1 }
  0x3f   :  { %589 = vmatpush.bf16.msrb.mxu1 %v942_v2 }
  0x40   :  { %603 = vmatpush.bf16.msrb.mxu2 %v950_v3 }
  0x41   :  { %576 = vmatmul.bf16.vlgmr.msrb.gmra.mxu0 %v662_v10 }
  0x42   :  { %590 = vmatmul.bf16.vlgmr.msrb.gmra.mxu1 %v666_v11 }
  0x43   :  { %604 = vmatmul.bf16.vlgmr.msrb.gmra.mxu2 %v670_v12 }
  0x9e   :  { %v521_v13 = vpop.f32.mrf.mxu0 }
  0x9f   :  { %v535_v14 = vpop.f32.mrf.mxu1  ;;  %v522_v18 = vadd.f32 %v963_v16, %v521_v13 }
  0xa1   :  { %v536_v22 = vadd.f32 %v535_v14, %v522_v18 }
  0xa6   :  { %v549_v15 = vpop.f32.mrf.mxu2  ;;  %v523_v17 = vpop.f32.mrf.mxu0 }
  0xa7   :  { %v563_v19 = vpop.f32.mrf.mxu3  ;;  %v537_v20 = vpop.f32.mrf.mxu1  ;;  %v524_v21 = vadd.f32 %v963_v16, %v523_v17  ;;  %v550_v26 = vadd.f32 %v549_v15, %v536_v22 }
  0xa9   :  { %v538_v24 = vadd.f32 %v537_v20, %v524_v21  ;;  %v564_v30 = vadd.f32 %v563_v19, %v550_v26 }
  0xae   :  { %v551_v23 = vpop.f32.mrf.mxu2 }
  0xaf   :  { %v552_v28 = vadd.f32 %v551_v23, %v538_v24  ;;  %v565_v29 = vpop.f32.mrf.mxu3 }
  0xb1   :  { %v566_v32 = vadd.f32 %v565_v29, %v552_v28 }
  0xbe   :  { %v577_v25 = vpop.f32.mrf.mxu0 }
  0xbf   :  { %v591_v27 = vpop.f32.mrf.mxu1  ;;  %v578_v33 = vadd.f32 %v577_v25, %v564_v30 }
  0xc1   :  { %v592_v36 = vadd.f32 %v591_v27, %v578_v33 }
  0xc6   :  { %v605_v31 = vpop.f32.mrf.mxu2  ;;  %v579_v34 = vpop.f32.mrf.mxu0 }
  0xc7   :  { %v580_v35 = vadd.f32 %v579_v34, %v566_v32  ;;  %v593_v37 = vpop.f32.mrf.mxu1  ;;  %v606_v38 = vadd.f32 %v605_v31, %v592_v36 }
  0xc9   :  { %v594_v39 = vadd.f32 %v593_v37, %v580_v35  ;;  %v621_v42 = vmul.f32 %v606_v38, %v606_v38 }
  0xce   :  { %v607_v40 = vpop.f32.mrf.mxu2 }
  0xcf   :  { %v608_v41 = vadd.f32 %v607_v40, %v594_v39 }
  0xd1   :  { %v961_v43 = vpack.c.bf16 %v608_v41, %v606_v38  ;;  %v614_v44 = vadd.f32 %v608_v41, %v606_v38  ;;  %v622_v45 = vmul.f32 %v608_v41, %v608_v41 }
  0xd3   :  { %962 = vst [vmem:[%s1211_s3] sm:$0xff] %v961_v43   ;;  %v615_v46 = vrot.slane %v614_v44, 4  ;;  %v623_v47 = vadd.f32 %v622_v45, %v621_v42 }
  0xd5   :  { %v616_v48 = vadd.f32 %v615_v46, %v614_v44  ;;  %v624_v49 = vrot.slane %v623_v47, 4 }
  0xd7   :  { %v617_v50 = vrot.slane %v616_v48, 2  ;;  %v625_v51 = vadd.f32 %v624_v49, %v623_v47 }
  0xd9   :  { %v618_v52 = vadd.f32 %v617_v50, %v616_v48  ;;  %v626_v53 = vrot.slane %v625_v51, 2 }
  0xdb   :  { %v619_v54 = vrot.slane %v618_v52, 1  ;;  %v627_v55 = vadd.f32 %v626_v53, %v625_v51 }
  0xdd   :  { %v628_v56 = vrot.slane %v627_v55, 1  ;;  %v620_v57 = vadd.f32 %v619_v54, %v618_v52 }
  0xdf   :  { %v629_v58 = vadd.f32 %v628_v56, %v627_v55 }
  0xe1   :  { %v631_v59 = vsel %vm630_vm0, %v620_v57, %v629_v58 }
  0xe2   :  { %v633_v60 = vsel %vm632_vm1, %v631_v59, 0.0 }
  0xe3   :  { %634 = vst [vmem:[%s1212_s4] sm:$0xff] %v633_v60 }

// kernel: _lambda_.21
= control target key start
LH: loop header
LB: loop body
LE: loop exit
PB: predicated region body
PF: predicated region fallthrough
CT: control target
= control target key end

     0   :  { %s2563_s1 = inlined_call_operand.vmem [shape: bf16[512,512], index: 1, kind: input, shape index: {}]   ;;  %s2564_s0 = inlined_call_operand.vmem [shape: bf16[16,512], index: 0, kind: input, shape index: {}]   ;;  %s2565_s2 = inlined_call_operand.vmem [shape: f32[1,512], index: 2, kind: input, shape index: {}]   ;;  %s2566_s3 = inlined_call_operand.vmem [shape: bf16[16,512], index: 3, kind: output, shape index: {}]  }
   0x1   :  { %v1182_v0 = vld [vmem:[%s2563_s1 + $0xe0] sm:$0xf]  ;;  %v1614_v1 = vld [vmem:[%s2563_s1 + $0xec] sm:$0xf0] }
   0x2   :  { %v1310_v2 = vld [vmem:[%s2563_s1 + $0x1e0] sm:$0xf]  ;;  %v1183_v3 = vor.u32 %v1614_v1, %v1182_v0  ;;  %v1646_v4 = vld [vmem:[%s2563_s1 + $0x1ec] sm:$0xf0] }
   0x3   :  { %v1438_v5 = vld [vmem:[%s2563_s1 + $0x2e0] sm:$0xf]  ;;  %v1678_v6 = vld [vmem:[%s2563_s1 + $0x2ec] sm:$0xf0]  ;;  %v1311_v7 = vor.u32 %v1646_v4, %v1310_v2 }
   0x4   :  { %v1439_v8 = vor.u32 %v1678_v6, %v1438_v5  ;;  %v1566_v9 = vld [vmem:[%s2563_s1 + $0x3e0] sm:$0xf]  ;;  %v1710_v10 = vld [vmem:[%s2563_s1 + $0x3ec] sm:$0xf0]  ;;  %816 = vmatpush.bf16.msra.mxu0 %v1183_v3 }
   0x5   :  { %v1166_v11 = vld [vmem:[%s2563_s1 + $0xc0] sm:$0xf]  ;;  %v1567_v12 = vor.u32 %v1710_v10, %v1566_v9  ;;  %v1610_v13 = vld [vmem:[%s2563_s1 + $0xcc] sm:$0xf0]  ;;  %830 = vmatpush.bf16.msra.mxu1 %v1311_v7 }
   0x6   :  { %v1294_v14 = vld [vmem:[%s2563_s1 + $0x1c0] sm:$0xf]  ;;  %v1642_v15 = vld [vmem:[%s2563_s1 + $0x1cc] sm:$0xf0]  ;;  %844 = vmatpush.bf16.msra.mxu2 %v1439_v8  ;;  %v1167_v16 = vor.u32 %v1610_v13, %v1166_v11 }
   0x7   :  { %v1295_v17 = vor.u32 %v1642_v15, %v1294_v14  ;;  %v1422_v18 = vld [vmem:[%s2563_s1 + $0x2c0] sm:$0xf]  ;;  %v1674_v19 = vld [vmem:[%s2563_s1 + $0x2cc] sm:$0xf0]  ;;  %858 = vmatpush.bf16.msra.mxu3 %v1567_v12 }
   0x8   :  { %v1550_v20 = vld [vmem:[%s2563_s1 + $0x3c0] sm:$0xf]  ;;  %v1423_v21 = vor.u32 %v1674_v19, %v1422_v18  ;;  %v1706_v22 = vld [vmem:[%s2563_s1 + $0x3cc] sm:$0xf0]  ;;  %817 = vmatpush.bf16.msra.mxu0 %v1167_v16 }
   0x9   :  { %v1150_v23 = vld [vmem:[%s2563_s1 + $0xa0] sm:$0xf]  ;;  %v1606_v24 = vld [vmem:[%s2563_s1 + $0xac] sm:$0xf0]  ;;  %v1551_v25 = vor.u32 %v1706_v22, %v1550_v20  ;;  %831 = vmatpush.bf16.msra.mxu1 %v1295_v17 }
   0xa   :  { %v1278_v26 = vld [vmem:[%s2563_s1 + $0x1a0] sm:$0xf]  ;;  %v1638_v27 = vld [vmem:[%s2563_s1 + $0x1ac] sm:$0xf0]  ;;  %v1151_v29 = vor.u32 %v1606_v24, %v1150_v23  ;;  %845 = vmatpush.bf16.msra.mxu2 %v1423_v21 }
   0xb   :  { %v1406_v28 = vld [vmem:[%s2563_s1 + $0x2a0] sm:$0xf]  ;;  %v1670_v30 = vld [vmem:[%s2563_s1 + $0x2ac] sm:$0xf0]  ;;  %v1279_v33 = vor.u32 %v1638_v27, %v1278_v26  ;;  %859 = vmatpush.bf16.msra.mxu3 %v1551_v25 }
   0xc   :  { %v1534_v31 = vld [vmem:[%s2563_s1 + $0x3a0] sm:$0xf]  ;;  %v1702_v32 = vld [vmem:[%s2563_s1 + $0x3ac] sm:$0xf0]  ;;  %v1407_v34 = vor.u32 %v1670_v30, %v1406_v28  ;;  %818 = vmatpush.bf16.msra.mxu0 %v1151_v29  ;;  %v1612_v28 = vld [vmem:[%s2563_s1 + $0xe4] sm:$0xf] }
   0xd   :  { %v1134_v35 = vld [vmem:[%s2563_s1 + $0x80] sm:$0xf]  ;;  %v1602_v36 = vld [vmem:[%s2563_s1 + $0x8c] sm:$0xf0]  ;;  %v1535_v38 = vor.u32 %v1702_v32, %v1534_v31  ;;  %832 = vmatpush.bf16.msra.mxu1 %v1279_v33  ;;  %v1184_v29 = vld [vmem:[%s2563_s1 + $0xf0] sm:$0xf0] }
   0xe   :  { %v1262_v37 = vld [vmem:[%s2563_s1 + $0x180] sm:$0xf]  ;;  %v1634_v39 = vld [vmem:[%s2563_s1 + $0x18c] sm:$0xf0]  ;;  %v1135_v44 = vor.u32 %v1602_v36, %v1134_v35  ;;  %846 = vmatpush.bf16.msra.mxu2 %v1407_v34  ;;  %v1644_v30 = vld [vmem:[%s2563_s1 + $0x1e4] sm:$0xf] }
   0xf   :  { %v1390_v40 = vld [vmem:[%s2563_s1 + $0x280] sm:$0xf]  ;;  %v1666_v41 = vld [vmem:[%s2563_s1 + $0x28c] sm:$0xf0]  ;;  %v1263_v45 = vor.u32 %v1634_v39, %v1262_v37  ;;  %860 = vmatpush.bf16.msra.mxu3 %v1535_v38  ;;  %v1312_v32 = vld [vmem:[%s2563_s1 + $0x1f0] sm:$0xf0] }
  0x10   :  { %v1518_v42 = vld [vmem:[%s2563_s1 + $0x380] sm:$0xf]  ;;  %v1698_v43 = vld [vmem:[%s2563_s1 + $0x38c] sm:$0xf0]  ;;  %v1391_v46 = vor.u32 %v1666_v41, %v1390_v40  ;;  %819 = vmatpush.bf16.msra.mxu0 %v1135_v44  ;;  %v1676_v33 = vld [vmem:[%s2563_s1 + $0x2e4] sm:$0xf]  ;;  %v1187_v40 = vor.u32 %v1612_v28, %v1184_v29 }
  0x11   :  { %v1118_v47 = vld [vmem:[%s2563_s1 + $0x60] sm:$0xf]  ;;  %v1598_v48 = vld [vmem:[%s2563_s1 + $0x6c] sm:$0xf0]  ;;  %v1519_v50 = vor.u32 %v1698_v43, %v1518_v42  ;;  %833 = vmatpush.bf16.msra.mxu1 %v1263_v45  ;;  %v1440_v34 = vld [vmem:[%s2563_s1 + $0x2f0] sm:$0xf0]  ;;  %v1315_v43 = vor.u32 %v1644_v30, %v1312_v32 }
  0x12   :  { %v1246_v49 = vld [vmem:[%s2563_s1 + $0x160] sm:$0xf]  ;;  %v1630_v51 = vld [vmem:[%s2563_s1 + $0x16c] sm:$0xf0]  ;;  %v1119_v56 = vor.u32 %v1598_v48, %v1118_v47  ;;  %847 = vmatpush.bf16.msra.mxu2 %v1391_v46  ;;  %v1708_v37 = vld [vmem:[%s2563_s1 + $0x3e4] sm:$0xf]  ;;  %v1443_v44 = vor.u32 %v1676_v33, %v1440_v34 }
  0x13   :  { %v1374_v52 = vld [vmem:[%s2563_s1 + $0x260] sm:$0xf]  ;;  %v1662_v53 = vld [vmem:[%s2563_s1 + $0x26c] sm:$0xf0]  ;;  %v1247_v57 = vor.u32 %v1630_v51, %v1246_v49  ;;  %861 = vmatpush.bf16.msra.mxu3 %v1519_v50  ;;  %v1568_v38 = vld [vmem:[%s2563_s1 + $0x3f0] sm:$0xf0] }
  0x14   :  { %v1502_v54 = vld [vmem:[%s2563_s1 + $0x360] sm:$0xf]  ;;  %v1694_v55 = vld [vmem:[%s2563_s1 + $0x36c] sm:$0xf0]  ;;  %v1375_v58 = vor.u32 %v1662_v53, %v1374_v52  ;;  %820 = vmatpush.bf16.msra.mxu0 %v1119_v56  ;;  %v1608_v41 = vld [vmem:[%s2563_s1 + $0xc4] sm:$0xf]  ;;  %v1571_v48 = vor.u32 %v1708_v37, %v1568_v38 }
  0x15   :  { %v1102_v59 = vld [vmem:[%s2563_s1 + $0x40] sm:$0xf]  ;;  %v1594_v60 = vld [vmem:[%s2563_s1 + $0x4c] sm:$0xf0]  ;;  %v1503_v62 = vor.u32 %v1694_v55, %v1502_v54  ;;  %834 = vmatpush.bf16.msra.mxu1 %v1247_v57  ;;  %v1168_v42 = vld [vmem:[%s2563_s1 + $0xd0] sm:$0xf0] }
  0x16   :  { %v1230_v61 = vld [vmem:[%s2563_s1 + $0x140] sm:$0xf]  ;;  %v1626_v63 = vld [vmem:[%s2563_s1 + $0x14c] sm:$0xf0]  ;;  %v1103_v4 = vor.u32 %v1594_v60, %v1102_v59  ;;  %848 = vmatpush.bf16.msra.mxu2 %v1375_v58  ;;  %v1640_v45 = vld [vmem:[%s2563_s1 + $0x1c4] sm:$0xf]  ;;  %v1171_v55 = vor.u32 %v1608_v41, %v1168_v42 }
  0x17   :  { %v1358_v0 = vld [vmem:[%s2563_s1 + $0x240] sm:$0xf]  ;;  %v1658_v1 = vld [vmem:[%s2563_s1 + $0x24c] sm:$0xf0]  ;;  %v1231_v5 = vor.u32 %v1626_v63, %v1230_v61  ;;  %862 = vmatpush.bf16.msra.mxu3 %v1503_v62  ;;  %v1296_v46 = vld [vmem:[%s2563_s1 + $0x1d0] sm:$0xf0] }
  0x18   :  { %v1486_v2 = vld [vmem:[%s2563_s1 + $0x340] sm:$0xf]  ;;  %v1690_v3 = vld [vmem:[%s2563_s1 + $0x34c] sm:$0xf0]  ;;  %v1359_v6 = vor.u32 %v1658_v1, %v1358_v0  ;;  %821 = vmatpush.bf16.msra.mxu0 %v1103_v4  ;;  %v1672_v47 = vld [vmem:[%s2563_s1 + $0x2c4] sm:$0xf]  ;;  %v1299_v60 = vor.u32 %v1640_v45, %v1296_v46 }
  0x19   :  { %v1086_v7 = vld [vmem:[%s2563_s1 + $0x20] sm:$0xf]  ;;  %v1590_v8 = vld [vmem:[%s2563_s1 + $0x2c] sm:$0xf0]  ;;  %v1487_v10 = vor.u32 %v1690_v3, %v1486_v2  ;;  %835 = vmatpush.bf16.msra.mxu1 %v1231_v5  ;;  %v1424_v49 = vld [vmem:[%s2563_s1 + $0x2d0] sm:$0xf0] }
  0x1a   :  { %v1214_v9 = vld [vmem:[%s2563_s1 + $0x120] sm:$0xf]  ;;  %v1622_v11 = vld [vmem:[%s2563_s1 + $0x12c] sm:$0xf0]  ;;  %v1087_v16 = vor.u32 %v1590_v8, %v1086_v7  ;;  %849 = vmatpush.bf16.msra.mxu2 %v1359_v6  ;;  %v1704_v50 = vld [vmem:[%s2563_s1 + $0x3c4] sm:$0xf]  ;;  %v1427_v61 = vor.u32 %v1672_v47, %v1424_v49 }
  0x1b   :  { %v1342_v12 = vld [vmem:[%s2563_s1 + $0x220] sm:$0xf]  ;;  %v1654_v13 = vld [vmem:[%s2563_s1 + $0x22c] sm:$0xf0]  ;;  %v1215_v19 = vor.u32 %v1622_v11, %v1214_v9  ;;  %863 = vmatpush.bf16.msra.mxu3 %v1487_v10  ;;  %v1552_v51 = vld [vmem:[%s2563_s1 + $0x3d0] sm:$0xf0] }
  0x1c   :  { %v1470_v14 = vld [vmem:[%s2563_s1 + $0x320] sm:$0xf]  ;;  %v1686_v15 = vld [vmem:[%s2563_s1 + $0x32c] sm:$0xf0]  ;;  %v1343_v20 = vor.u32 %v1654_v13, %v1342_v12  ;;  %822 = vmatpush.bf16.msra.mxu0 %v1087_v16  ;;  %v1604_v52 = vld [vmem:[%s2563_s1 + $0xa4] sm:$0xf]  ;;  %v1555_v1 = vor.u32 %v1704_v50, %v1552_v51 }
  0x1d   :  { %v1070_v17 = vld [vmem:[%s2563_s1] sm:$0xf]  ;;  %v1586_v18 = vld [vmem:[%s2563_s1 + $0xc] sm:$0xf0]  ;;  %v1471_v24 = vor.u32 %v1686_v15, %v1470_v14  ;;  %836 = vmatpush.bf16.msra.mxu1 %v1215_v19  ;;  %v1062_v53 = vld [vmem:[%s2564_s0 + $0x8] sm:$0xf] }
  0x1e   :  { %v1198_v21 = vld [vmem:[%s2563_s1 + $0x100] sm:$0xf]  ;;  %v1618_v22 = vld [vmem:[%s2563_s1 + $0x10c] sm:$0xf0]  ;;  %v1071_v31 = vor.u32 %v1586_v18, %v1070_v17  ;;  %850 = vmatpush.bf16.msra.mxu2 %v1343_v20  ;;  %v1583_v54 = vld [vmem:[%s2564_s0 + $0x14] sm:$0xf0] }
  0x1f   :  { %v1326_v23 = vld [vmem:[%s2563_s1 + $0x200] sm:$0xf]  ;;  %v1650_v25 = vld [vmem:[%s2563_s1 + $0x20c] sm:$0xf0]  ;;  %v1199_v35 = vor.u32 %v1618_v22, %v1198_v21  ;;  %864 = vmatpush.bf16.msra.mxu3 %v1471_v24  ;;  %v1152_v56 = vld [vmem:[%s2563_s1 + $0xb0] sm:$0xf0]  ;;  %v1990_v59 = vor.u32 %v1583_v54, %v1062_v53 }
  0x20   :  { %v1454_v26 = vld [vmem:[%s2563_s1 + $0x300] sm:$0xf]  ;;  %v1682_v27 = vld [vmem:[%s2563_s1 + $0x30c] sm:$0xf0]  ;;  %v1327_v36 = vor.u32 %v1650_v25, %v1326_v23  ;;  %823 = vmatpush.bf16.msra.mxu0 %v1071_v31  ;;  %v1636_v57 = vld [vmem:[%s2563_s1 + $0x1a4] sm:$0xf]  ;;  %v1155_v9 = vor.u32 %v1604_v52, %v1152_v56 }
  0x21   :  { %v1455_v39 = vor.u32 %v1682_v27, %v1454_v26  ;;  %837 = vmatpush.bf16.msra.mxu1 %v1199_v35  ;;  %v1280_v58 = vld [vmem:[%s2563_s1 + $0x1b0] sm:$0xf0]  ;;  %v1668_v62 = vld [vmem:[%s2563_s1 + $0x2a4] sm:$0xf]  ;;  %v1054_v3 = vld [vmem:[%s2564_s0] sm:$0xf] }
  0x22   :  { %851 = vmatpush.bf16.msra.mxu2 %v1327_v36  ;;  %v1408_v63 = vld [vmem:[%s2563_s1 + $0x2b0] sm:$0xf0]  ;;  %v1700_v0 = vld [vmem:[%s2563_s1 + $0x3a4] sm:$0xf]  ;;  %v1582_v4 = vld [vmem:[%s2564_s0 + $0xc] sm:$0xf0]  ;;  %v1283_v12 = vor.u32 %v1636_v57, %v1280_v58 }
  0x23   :  { %865 = vmatpush.bf16.msra.mxu3 %v1455_v39  ;;  %v1536_v2 = vld [vmem:[%s2563_s1 + $0x3b0] sm:$0xf0]  ;;  %v2011_v5 = vor.u32 %v1582_v4, %v1054_v3  ;;  %v1581_v6 = vld [vmem:[%s2564_s0 + $0xc] sm:$0xf]  ;;  %v1064_v7 = vld [vmem:[%s2564_s0 + $0x18] sm:$0xf0]  ;;  %v1411_v13 = vor.u32 %v1668_v62, %v1408_v63 }
  0x24   :  { %872 = vmatpush.bf16.msrb.mxu0 %v1187_v40  ;;  %v1580_v8 = vld [vmem:[%s2564_s0 + $0x4] sm:$0xf]  ;;  %v2022_v10 = vor.u32 %v1581_v6, %v1064_v7  ;;  %v1056_v11 = vld [vmem:[%s2564_s0 + $0x10] sm:$0xf0]  ;;  %v1539_v18 = vor.u32 %v1700_v0, %v1536_v2 }
  0x25   :  { %886 = vmatpush.bf16.msrb.mxu1 %v1315_v43  ;;  %852 = vmatmul.bf16.vlgmr.msra.gmra.mxu2 %v1990_v59  ;;  %v1600_v14 = vld [vmem:[%s2563_s1 + $0x84] sm:$0xf]  ;;  %v1136_v15 = vld [vmem:[%s2563_s1 + $0x90] sm:$0xf0]  ;;  %v2036_v17 = vor.u32 %v1580_v8, %v1056_v11  ;;  %v1190_v11 = vld [vmem:[%s2563_s1 + $0xe8] sm:$0xf] }
  0x26   :  { %900 = vmatpush.bf16.msrb.mxu2 %v1443_v44  ;;  %v1632_v16 = vld [vmem:[%s2563_s1 + $0x184] sm:$0xf]  ;;  %v1264_v19 = vld [vmem:[%s2563_s1 + $0x190] sm:$0xf0]  ;;  %824 = vmatmul.bf16.vlgmr.msra.gmra.mxu0 %v2011_v5  ;;  %v1139_v24 = vor.u32 %v1600_v14, %v1136_v15  ;;  %v1647_v15 = vld [vmem:[%s2563_s1 + $0x1f4] sm:$0xf0] }
  0x27   :  { %914 = vmatpush.bf16.msrb.mxu3 %v1571_v48  ;;  %v1664_v20 = vld [vmem:[%s2563_s1 + $0x284] sm:$0xf]  ;;  %v1392_v21 = vld [vmem:[%s2563_s1 + $0x290] sm:$0xf0]  ;;  %838 = vmatmul.bf16.vlgmr.msra.gmra.mxu1 %v2036_v17  ;;  %v1267_v25 = vor.u32 %v1632_v16, %v1264_v19  ;;  %v1446_v16 = vld [vmem:[%s2563_s1 + $0x2e8] sm:$0xf] }
  0x28   :  { %873 = vmatpush.bf16.msrb.mxu0 %v1171_v55  ;;  %v1696_v22 = vld [vmem:[%s2563_s1 + $0x384] sm:$0xf]  ;;  %v1520_v23 = vld [vmem:[%s2563_s1 + $0x390] sm:$0xf0]  ;;  %866 = vmatmul.bf16.vlgmr.msra.gmra.mxu3 %v2022_v10  ;;  %v1395_v26 = vor.u32 %v1664_v20, %v1392_v21  ;;  %v1574_v21 = vld [vmem:[%s2563_s1 + $0x3e8] sm:$0xf] }
  0x29   :  { %887 = vmatpush.bf16.msrb.mxu1 %v1299_v60  ;;  %v1596_v27 = vld [vmem:[%s2563_s1 + $0x64] sm:$0xf]  ;;  %v1120_v28 = vld [vmem:[%s2563_s1 + $0x70] sm:$0xf0]  ;;  %v1523_v30 = vor.u32 %v1696_v22, %v1520_v23  ;;  %v1711_v22 = vld [vmem:[%s2563_s1 + $0x3f4] sm:$0xf0] }
  0x2a   :  { %901 = vmatpush.bf16.msrb.mxu2 %v1427_v61  ;;  %v1628_v29 = vld [vmem:[%s2563_s1 + $0x164] sm:$0xf]  ;;  %v1248_v31 = vld [vmem:[%s2563_s1 + $0x170] sm:$0xf0]  ;;  %v1123_v36 = vor.u32 %v1596_v27, %v1120_v28  ;;  %v1174_v27 = vld [vmem:[%s2563_s1 + $0xc8] sm:$0xf] }
  0x2b   :  { %915 = vmatpush.bf16.msrb.mxu3 %v1555_v1  ;;  %v1660_v32 = vld [vmem:[%s2563_s1 + $0x264] sm:$0xf]  ;;  %v1376_v33 = vld [vmem:[%s2563_s1 + $0x270] sm:$0xf0]  ;;  %v1251_v37 = vor.u32 %v1628_v29, %v1248_v31  ;;  %v1611_v28 = vld [vmem:[%s2563_s1 + $0xd4] sm:$0xf0] }
  0x2c   :  { %874 = vmatpush.bf16.msrb.mxu0 %v1155_v9  ;;  %v1692_v34 = vld [vmem:[%s2563_s1 + $0x364] sm:$0xf]  ;;  %v1504_v35 = vld [vmem:[%s2563_s1 + $0x370] sm:$0xf0]  ;;  %v1379_v38 = vor.u32 %v1660_v32, %v1376_v33  ;;  %v1302_v29 = vld [vmem:[%s2563_s1 + $0x1c8] sm:$0xf] }
  0x2d   :  { %888 = vmatpush.bf16.msrb.mxu1 %v1283_v12  ;;  %v1592_v39 = vld [vmem:[%s2563_s1 + $0x44] sm:$0xf]  ;;  %v1104_v40 = vld [vmem:[%s2563_s1 + $0x50] sm:$0xf0]  ;;  %v1507_v42 = vor.u32 %v1692_v34, %v1504_v35  ;;  %v1615_v12 = vld [vmem:[%s2563_s1 + $0xf4] sm:$0xf0] }
  0x2e   :  { %902 = vmatpush.bf16.msrb.mxu2 %v1411_v13  ;;  %v1624_v41 = vld [vmem:[%s2563_s1 + $0x144] sm:$0xf]  ;;  %v1232_v43 = vld [vmem:[%s2563_s1 + $0x150] sm:$0xf0]  ;;  %v1107_v48 = vor.u32 %v1592_v39, %v1104_v40  ;;  %v1318_v13 = vld [vmem:[%s2563_s1 + $0x1e8] sm:$0xf] }
  0x2f   :  { %916 = vmatpush.bf16.msrb.mxu3 %v1539_v18  ;;  %v1656_v44 = vld [vmem:[%s2563_s1 + $0x244] sm:$0xf]  ;;  %v1360_v45 = vld [vmem:[%s2563_s1 + $0x250] sm:$0xf0]  ;;  %v1235_v49 = vor.u32 %v1624_v41, %v1232_v43  ;;  %v1679_v18 = vld [vmem:[%s2563_s1 + $0x2f4] sm:$0xf0] }
  0x30   :  { %875 = vmatpush.bf16.msrb.mxu0 %v1139_v24  ;;  %v1688_v46 = vld [vmem:[%s2563_s1 + $0x344] sm:$0xf]  ;;  %v1488_v47 = vld [vmem:[%s2563_s1 + $0x350] sm:$0xf0]  ;;  %v1363_v50 = vor.u32 %v1656_v44, %v1360_v45  ;;  %v1191_v24 = vor.u32 %v1615_v12, %v1190_v11  ;;  %v1643_v31 = vld [vmem:[%s2563_s1 + $0x1d4] sm:$0xf0] }
  0x31   :  { %889 = vmatpush.bf16.msrb.mxu1 %v1267_v25  ;;  %v1588_v51 = vld [vmem:[%s2563_s1 + $0x24] sm:$0xf]  ;;  %v1088_v52 = vld [vmem:[%s2563_s1 + $0x30] sm:$0xf0]  ;;  %v1491_v54 = vor.u32 %v1688_v46, %v1488_v47  ;;  %v1319_v25 = vor.u32 %v1647_v15, %v1318_v13  ;;  %v1430_v32 = vld [vmem:[%s2563_s1 + $0x2c8] sm:$0xf] }
  0x32   :  { %903 = vmatpush.bf16.msrb.mxu2 %v1395_v26  ;;  %v1620_v53 = vld [vmem:[%s2563_s1 + $0x124] sm:$0xf]  ;;  %v1216_v55 = vld [vmem:[%s2563_s1 + $0x130] sm:$0xf0]  ;;  %v1091_v61 = vor.u32 %v1588_v51, %v1088_v52  ;;  %v1447_v26 = vor.u32 %v1679_v18, %v1446_v16  ;;  %v1675_v33 = vld [vmem:[%s2563_s1 + $0x2d4] sm:$0xf0] }
  0x33   :  { %917 = vmatpush.bf16.msrb.mxu3 %v1523_v30  ;;  %v1652_v56 = vld [vmem:[%s2563_s1 + $0x224] sm:$0xf]  ;;  %v1344_v57 = vld [vmem:[%s2563_s1 + $0x230] sm:$0xf0]  ;;  %v1219_v0 = vor.u32 %v1620_v53, %v1216_v55  ;;  %v1575_v30 = vor.u32 %v1711_v22, %v1574_v21  ;;  %v1558_v34 = vld [vmem:[%s2563_s1 + $0x3c8] sm:$0xf] }
  0x34   :  { %876 = vmatpush.bf16.msrb.mxu0 %v1123_v36  ;;  %v1684_v58 = vld [vmem:[%s2563_s1 + $0x324] sm:$0xf]  ;;  %v1472_v60 = vld [vmem:[%s2563_s1 + $0x330] sm:$0xf0]  ;;  %v1347_v1 = vor.u32 %v1652_v56, %v1344_v57  ;;  %v1707_v35 = vld [vmem:[%s2563_s1 + $0x3d4] sm:$0xf0]  ;;  %v1175_v36 = vor.u32 %v1611_v28, %v1174_v27 }
  0x35   :  { %890 = vmatpush.bf16.msrb.mxu1 %v1251_v37  ;;  %v1584_v62 = vld [vmem:[%s2563_s1 + $0x4] sm:$0xf]  ;;  %v1072_v63 = vld [vmem:[%s2563_s1 + $0x10] sm:$0xf0]  ;;  %v1475_v6 = vor.u32 %v1684_v58, %v1472_v60  ;;  %v1303_v37 = vor.u32 %v1643_v31, %v1302_v29  ;;  %v1158_v39 = vld [vmem:[%s2563_s1 + $0xa8] sm:$0xf] }
  0x36   :  { %904 = vmatpush.bf16.msrb.mxu2 %v1379_v38  ;;  %v1616_v2 = vld [vmem:[%s2563_s1 + $0x104] sm:$0xf]  ;;  %v1200_v3 = vld [vmem:[%s2563_s1 + $0x110] sm:$0xf0]  ;;  %v1075_v14 = vor.u32 %v1584_v62, %v1072_v63  ;;  %v1431_v38 = vor.u32 %v1675_v33, %v1430_v32  ;;  %v1607_v40 = vld [vmem:[%s2563_s1 + $0xb4] sm:$0xf0] }
  0x37   :  { %918 = vmatpush.bf16.msrb.mxu3 %v1507_v42  ;;  %v1648_v4 = vld [vmem:[%s2563_s1 + $0x204] sm:$0xf]  ;;  %v1328_v7 = vld [vmem:[%s2563_s1 + $0x210] sm:$0xf0]  ;;  %v1203_v19 = vor.u32 %v1616_v2, %v1200_v3  ;;  %v1286_v41 = vld [vmem:[%s2563_s1 + $0x1a8] sm:$0xf]  ;;  %v1559_v42 = vor.u32 %v1707_v35, %v1558_v34 }
  0x38   :  { %877 = vmatpush.bf16.msrb.mxu0 %v1107_v48  ;;  %v1680_v8 = vld [vmem:[%s2563_s1 + $0x304] sm:$0xf]  ;;  %v1456_v9 = vld [vmem:[%s2563_s1 + $0x310] sm:$0xf0]  ;;  %v1331_v20 = vor.u32 %v1648_v4, %v1328_v7  ;;  %v1639_v43 = vld [vmem:[%s2563_s1 + $0x1b4] sm:$0xf0]  ;;  %v1159_v48 = vor.u32 %v1607_v40, %v1158_v39 }
  0x39   :  { %891 = vmatpush.bf16.msrb.mxu1 %v1235_v49  ;;  %v1459_v23 = vor.u32 %v1680_v8, %v1456_v9  ;;  %v1414_v44 = vld [vmem:[%s2563_s1 + $0x2a8] sm:$0xf]  ;;  %v1671_v45 = vld [vmem:[%s2563_s1 + $0x2b4] sm:$0xf0]  ;;  %v1287_v49 = vor.u32 %v1639_v43, %v1286_v41 }
  0x3a   :  { %905 = vmatpush.bf16.msrb.mxu2 %v1363_v50  ;;  %v1542_v46 = vld [vmem:[%s2563_s1 + $0x3a8] sm:$0xf]  ;;  %v1703_v47 = vld [vmem:[%s2563_s1 + $0x3b4] sm:$0xf0]  ;;  %v1415_v50 = vor.u32 %v1671_v45, %v1414_v44 }
  0x3b   :  { %919 = vmatpush.bf16.msrb.mxu3 %v1491_v54  ;;  %v1142_v51 = vld [vmem:[%s2563_s1 + $0x88] sm:$0xf]  ;;  %v1603_v52 = vld [vmem:[%s2563_s1 + $0x94] sm:$0xf0]  ;;  %v1543_v54 = vor.u32 %v1703_v47, %v1542_v46 }
  0x3c   :  { %878 = vmatpush.bf16.msrb.mxu0 %v1091_v61  ;;  %v1270_v53 = vld [vmem:[%s2563_s1 + $0x188] sm:$0xf]  ;;  %v1635_v55 = vld [vmem:[%s2563_s1 + $0x194] sm:$0xf0]  ;;  %v1143_v61 = vor.u32 %v1603_v52, %v1142_v51  ;;  %v1320_v52 = vld [vmem:[%s2563_s1 + $0x1f8] sm:$0xf0] }
  0x3d   :  { %892 = vmatpush.bf16.msrb.mxu1 %v1219_v0  ;;  %v1398_v56 = vld [vmem:[%s2563_s1 + $0x288] sm:$0xf]  ;;  %v1667_v57 = vld [vmem:[%s2563_s1 + $0x294] sm:$0xf0]  ;;  %v1271_v62 = vor.u32 %v1635_v55, %v1270_v53  ;;  %v1677_v53 = vld [vmem:[%s2563_s1 + $0x2ec] sm:$0xf] }
  0x3e   :  { %906 = vmatpush.bf16.msrb.mxu2 %v1347_v1  ;;  %v1526_v58 = vld [vmem:[%s2563_s1 + $0x388] sm:$0xf]  ;;  %v1699_v60 = vld [vmem:[%s2563_s1 + $0x394] sm:$0xf0]  ;;  %v1399_v63 = vor.u32 %v1667_v57, %v1398_v56  ;;  %v1709_v57 = vld [vmem:[%s2563_s1 + $0x3ec] sm:$0xf] }
  0x3f   :  { %920 = vmatpush.bf16.msrb.mxu3 %v1475_v6  ;;  %v1126_v0 = vld [vmem:[%s2563_s1 + $0x68] sm:$0xf]  ;;  %v1599_v1 = vld [vmem:[%s2563_s1 + $0x74] sm:$0xf0]  ;;  %v1527_v3 = vor.u32 %v1699_v60, %v1526_v58  ;;  %v1576_v58 = vld [vmem:[%s2563_s1 + $0x3f8] sm:$0xf0] }
  0x40   :  { %879 = vmatpush.bf16.msrb.mxu0 %v1075_v14  ;;  %v1254_v2 = vld [vmem:[%s2563_s1 + $0x168] sm:$0xf]  ;;  %v1631_v4 = vld [vmem:[%s2563_s1 + $0x174] sm:$0xf0]  ;;  %v1127_v11 = vor.u32 %v1599_v1, %v1126_v0  ;;  %v1609_v0 = vld [vmem:[%s2563_s1 + $0xcc] sm:$0xf] }
  0x41   :  { %893 = vmatpush.bf16.msrb.mxu1 %v1203_v19  ;;  %v1382_v6 = vld [vmem:[%s2563_s1 + $0x268] sm:$0xf]  ;;  %v1663_v7 = vld [vmem:[%s2563_s1 + $0x274] sm:$0xf0]  ;;  %v1255_v12 = vor.u32 %v1631_v4, %v1254_v2  ;;  %v1176_v1 = vld [vmem:[%s2563_s1 + $0xd8] sm:$0xf0] }
  0x42   :  { %907 = vmatpush.bf16.msrb.mxu2 %v1331_v20  ;;  %v1510_v8 = vld [vmem:[%s2563_s1 + $0x368] sm:$0xf]  ;;  %v1695_v9 = vld [vmem:[%s2563_s1 + $0x374] sm:$0xf0]  ;;  %v1383_v13 = vor.u32 %v1663_v7, %v1382_v6  ;;  %v1641_v2 = vld [vmem:[%s2563_s1 + $0x1cc] sm:$0xf] }
  0x43   :  { %921 = vmatpush.bf16.msrb.mxu3 %v1459_v23  ;;  %880 = vmatmul.bf16.vlgmr.msrb.gmra.mxu0 %v2011_v5  ;;  %v1110_v14 = vld [vmem:[%s2563_s1 + $0x48] sm:$0xf]  ;;  %v1595_v15 = vld [vmem:[%s2563_s1 + $0x54] sm:$0xf0]  ;;  %v1511_v18 = vor.u32 %v1695_v9, %v1510_v8  ;;  %v1304_v4 = vld [vmem:[%s2563_s1 + $0x1d8] sm:$0xf0] }
  0x44   :  { %928 = vmatpush.bf16.msra.mxu0 %v1191_v24  ;;  %894 = vmatmul.bf16.vlgmr.msrb.gmra.mxu1 %v2036_v17  ;;  %v1238_v16 = vld [vmem:[%s2563_s1 + $0x148] sm:$0xf]  ;;  %v1627_v19 = vld [vmem:[%s2563_s1 + $0x154] sm:$0xf0]  ;;  %v1111_v24 = vor.u32 %v1595_v15, %v1110_v14  ;;  %v1673_v6 = vld [vmem:[%s2563_s1 + $0x2cc] sm:$0xf] }
  0x45   :  { %942 = vmatpush.bf16.msra.mxu1 %v1319_v25  ;;  %908 = vmatmul.bf16.vlgmr.msrb.gmra.mxu2 %v1990_v59  ;;  %v1366_v20 = vld [vmem:[%s2563_s1 + $0x248] sm:$0xf]  ;;  %v1659_v21 = vld [vmem:[%s2563_s1 + $0x254] sm:$0xf0]  ;;  %v1239_v25 = vor.u32 %v1627_v19, %v1238_v16  ;;  %v1432_v7 = vld [vmem:[%s2563_s1 + $0x2d8] sm:$0xf0] }
  0x46   :  { %956 = vmatpush.bf16.msra.mxu2 %v1447_v26  ;;  %922 = vmatmul.bf16.vlgmr.msrb.gmra.mxu3 %v2022_v10  ;;  %v1494_v22 = vld [vmem:[%s2563_s1 + $0x348] sm:$0xf]  ;;  %v1691_v23 = vld [vmem:[%s2563_s1 + $0x354] sm:$0xf0]  ;;  %v1367_v26 = vor.u32 %v1659_v21, %v1366_v20  ;;  %v1705_v8 = vld [vmem:[%s2563_s1 + $0x3cc] sm:$0xf] }
  0x47   :  { %970 = vmatpush.bf16.msra.mxu3 %v1575_v30  ;;  %v1094_v27 = vld [vmem:[%s2563_s1 + $0x28] sm:$0xf]  ;;  %v1591_v28 = vld [vmem:[%s2563_s1 + $0x34] sm:$0xf0]  ;;  %v1495_v30 = vor.u32 %v1691_v23, %v1494_v22  ;;  %v1560_v9 = vld [vmem:[%s2563_s1 + $0x3d8] sm:$0xf0] }
  0x48   :  { %929 = vmatpush.bf16.msra.mxu0 %v1175_v36  ;;  %v1222_v29 = vld [vmem:[%s2563_s1 + $0x128] sm:$0xf]  ;;  %v1623_v31 = vld [vmem:[%s2563_s1 + $0x134] sm:$0xf0]  ;;  %v1095_v36 = vor.u32 %v1591_v28, %v1094_v27  ;;  %v1605_v14 = vld [vmem:[%s2563_s1 + $0xac] sm:$0xf] }
  0x49   :  { %943 = vmatpush.bf16.msra.mxu1 %v1303_v37  ;;  %v1350_v32 = vld [vmem:[%s2563_s1 + $0x228] sm:$0xf]  ;;  %v1655_v33 = vld [vmem:[%s2563_s1 + $0x234] sm:$0xf0]  ;;  %v1223_v39 = vor.u32 %v1623_v31, %v1222_v29  ;;  %v1160_v15 = vld [vmem:[%s2563_s1 + $0xb8] sm:$0xf0] }
  0x4a   :  { %957 = vmatpush.bf16.msra.mxu2 %v1431_v38  ;;  %v1478_v34 = vld [vmem:[%s2563_s1 + $0x328] sm:$0xf]  ;;  %v1687_v35 = vld [vmem:[%s2563_s1 + $0x334] sm:$0xf0]  ;;  %v1351_v40 = vor.u32 %v1655_v33, %v1350_v32  ;;  %v1637_v16 = vld [vmem:[%s2563_s1 + $0x1ac] sm:$0xf] }
  0x4b   :  { %971 = vmatpush.bf16.msra.mxu3 %v1559_v42  ;;  %v1078_v37 = vld [vmem:[%s2563_s1 + $0x8] sm:$0xf]  ;;  %v1587_v38 = vld [vmem:[%s2563_s1 + $0x14] sm:$0xf0]  ;;  %v1479_v44 = vor.u32 %v1687_v35, %v1478_v34  ;;  %v1288_v19 = vld [vmem:[%s2563_s1 + $0x1b8] sm:$0xf0] }
  0x4c   :  { %930 = vmatpush.bf16.msra.mxu0 %v1159_v48  ;;  %v1206_v41 = vld [vmem:[%s2563_s1 + $0x108] sm:$0xf]  ;;  %v1619_v42 = vld [vmem:[%s2563_s1 + $0x114] sm:$0xf0]  ;;  %v1613_v48 = vld [vmem:[%s2563_s1 + $0xec] sm:$0xf]  ;;  %v1079_v51 = vor.u32 %v1587_v38, %v1078_v37 }
  0x4d   :  { %944 = vmatpush.bf16.msra.mxu1 %v1287_v49  ;;  %v1334_v43 = vld [vmem:[%s2563_s1 + $0x208] sm:$0xf]  ;;  %v1651_v45 = vld [vmem:[%s2563_s1 + $0x214] sm:$0xf0]  ;;  %v1192_v49 = vld [vmem:[%s2563_s1 + $0xf8] sm:$0xf0]  ;;  %v1207_v55 = vor.u32 %v1619_v42, %v1206_v41 }
  0x4e   :  { %958 = vmatpush.bf16.msra.mxu2 %v1415_v50  ;;  %v1462_v46 = vld [vmem:[%s2563_s1 + $0x308] sm:$0xf]  ;;  %v1683_v47 = vld [vmem:[%s2563_s1 + $0x314] sm:$0xf0]  ;;  %v1645_v50 = vld [vmem:[%s2563_s1 + $0x1ec] sm:$0xf]  ;;  %v1335_v56 = vor.u32 %v1651_v45, %v1334_v43 }
  0x4f   :  { %972 = vmatpush.bf16.msra.mxu3 %v1543_v54  ;;  %v1448_v54 = vld [vmem:[%s2563_s1 + $0x2f8] sm:$0xf0]  ;;  %v1463_v60 = vor.u32 %v1683_v47, %v1462_v46  ;;  %v1669_v20 = vld [vmem:[%s2563_s1 + $0x2ac] sm:$0xf] }
  0x50   :  { %931 = vmatpush.bf16.msra.mxu0 %v1143_v61  ;;  %v1195_v61 = vor.u32 %v1613_v48, %v1192_v49  ;;  %v1416_v21 = vld [vmem:[%s2563_s1 + $0x2b8] sm:$0xf0]  ;;  %v1701_v22 = vld [vmem:[%s2563_s1 + $0x3ac] sm:$0xf] }
  0x51   :  { %945 = vmatpush.bf16.msra.mxu1 %v1271_v62  ;;  %v1323_v62 = vor.u32 %v1645_v50, %v1320_v52  ;;  %v1544_v23 = vld [vmem:[%s2563_s1 + $0x3b8] sm:$0xf0]  ;;  %v1601_v27 = vld [vmem:[%s2563_s1 + $0x8c] sm:$0xf] }
  0x52   :  { %959 = vmatpush.bf16.msra.mxu2 %v1399_v63  ;;  %v1451_v63 = vor.u32 %v1677_v53, %v1448_v54  ;;  %v1144_v28 = vld [vmem:[%s2563_s1 + $0x98] sm:$0xf0]  ;;  %v1633_v29 = vld [vmem:[%s2563_s1 + $0x18c] sm:$0xf] }
  0x53   :  { %973 = vmatpush.bf16.msra.mxu3 %v1527_v3  ;;  %v1579_v3 = vor.u32 %v1709_v57, %v1576_v58  ;;  %v1272_v31 = vld [vmem:[%s2563_s1 + $0x198] sm:$0xf0]  ;;  %v1665_v32 = vld [vmem:[%s2563_s1 + $0x28c] sm:$0xf] }
  0x54   :  { %932 = vmatpush.bf16.msra.mxu0 %v1127_v11  ;;  %v1179_v11 = vor.u32 %v1609_v0, %v1176_v1  ;;  %v1400_v33 = vld [vmem:[%s2563_s1 + $0x298] sm:$0xf0]  ;;  %v1697_v34 = vld [vmem:[%s2563_s1 + $0x38c] sm:$0xf]  ;;  %v1275_v37 = vor.u32 %v1633_v29, %v1272_v31 }
  0x55   :  { %946 = vmatpush.bf16.msra.mxu1 %v1255_v12  ;;  %v1307_v12 = vor.u32 %v1641_v2, %v1304_v4  ;;  %v1528_v35 = vld [vmem:[%s2563_s1 + $0x398] sm:$0xf0]  ;;  %v1403_v38 = vor.u32 %v1665_v32, %v1400_v33  ;;  %v1629_v41 = vld [vmem:[%s2563_s1 + $0x16c] sm:$0xf]  ;;  %v146_v32 = vld [vmem:[%s2565_s2] sm:$0xf] }
  0x56   :  { %960 = vmatpush.bf16.msra.mxu2 %v1383_v13  ;;  %v1435_v13 = vor.u32 %v1673_v6, %v1432_v7  ;;  %v1531_v42 = vor.u32 %v1697_v34, %v1528_v35  ;;  %v1256_v43 = vld [vmem:[%s2563_s1 + $0x178] sm:$0xf0]  ;;  %v1693_v46 = vld [vmem:[%s2563_s1 + $0x36c] sm:$0xf]  ;;  %v148_v35 = vperm.slane %v146_v32, 0 }
  0x57   :  { %974 = vmatpush.bf16.msra.mxu3 %v1511_v18  ;;  %v1563_v18 = vor.u32 %v1705_v8, %v1560_v9  ;;  %v1384_v45 = vld [vmem:[%s2563_s1 + $0x278] sm:$0xf0]  ;;  %v1259_v49 = vor.u32 %v1629_v41, %v1256_v43  ;;  %v1625_v53 = vld [vmem:[%s2563_s1 + $0x14c] sm:$0xf] }
  0x58   :  { %933 = vmatpush.bf16.msra.mxu0 %v1111_v24  ;;  %v1163_v24 = vor.u32 %v1605_v14, %v1160_v15  ;;  %v1512_v47 = vld [vmem:[%s2563_s1 + $0x378] sm:$0xf0]  ;;  %v1689_v58 = vld [vmem:[%s2563_s1 + $0x34c] sm:$0xf] }
  0x59   :  { %947 = vmatpush.bf16.msra.mxu1 %v1239_v25  ;;  %v1291_v25 = vor.u32 %v1637_v16, %v1288_v19  ;;  %v1112_v52 = vld [vmem:[%s2563_s1 + $0x58] sm:$0xf0]  ;;  %v1515_v54 = vor.u32 %v1693_v46, %v1512_v47  ;;  %v1589_v0 = vld [vmem:[%s2563_s1 + $0x2c] sm:$0xf] }
  0x5a   :  { %961 = vmatpush.bf16.msra.mxu2 %v1367_v26  ;;  %v1419_v26 = vor.u32 %v1669_v20, %v1416_v21  ;;  %v1368_v57 = vld [vmem:[%s2563_s1 + $0x258] sm:$0xf0]  ;;  %v1621_v2 = vld [vmem:[%s2563_s1 + $0x12c] sm:$0xf] }
  0x5b   :  { %975 = vmatpush.bf16.msra.mxu3 %v1495_v30  ;;  %v1547_v30 = vor.u32 %v1701_v22, %v1544_v23  ;;  %v1096_v1 = vld [vmem:[%s2563_s1 + $0x38] sm:$0xf0]  ;;  %v1653_v6 = vld [vmem:[%s2563_s1 + $0x22c] sm:$0xf] }
  0x5c   :  { %934 = vmatpush.bf16.msra.mxu0 %v1095_v36  ;;  %v1147_v36 = vor.u32 %v1601_v27, %v1144_v28  ;;  %v1224_v4 = vld [vmem:[%s2563_s1 + $0x138] sm:$0xf0]  ;;  %v1685_v8 = vld [vmem:[%s2563_s1 + $0x32c] sm:$0xf] }
  0x5d   :  { %948 = vmatpush.bf16.msra.mxu1 %v1223_v39  ;;  %v1597_v39 = vld [vmem:[%s2563_s1 + $0x6c] sm:$0xf]  ;;  %v1352_v7 = vld [vmem:[%s2563_s1 + $0x238] sm:$0xf0] }
  0x5e   :  { %962 = vmatpush.bf16.msra.mxu2 %v1351_v40  ;;  %v1128_v40 = vld [vmem:[%s2563_s1 + $0x78] sm:$0xf0]  ;;  %v1585_v14 = vld [vmem:[%s2563_s1 + $0xc] sm:$0xf] }
  0x5f   :  { %976 = vmatpush.bf16.msra.mxu3 %v1479_v44  ;;  %v1661_v44 = vld [vmem:[%s2563_s1 + $0x26c] sm:$0xf]  ;;  %v1131_v48 = vor.u32 %v1597_v39, %v1128_v40  ;;  %v1480_v9 = vld [vmem:[%s2563_s1 + $0x338] sm:$0xf0] }
  0x60   :  { %935 = vmatpush.bf16.msra.mxu0 %v1079_v51  ;;  %v1387_v50 = vor.u32 %v1661_v44, %v1384_v45  ;;  %v1593_v51 = vld [vmem:[%s2563_s1 + $0x4c] sm:$0xf]  ;;  %v1080_v15 = vld [vmem:[%s2563_s1 + $0x18] sm:$0xf0] }
  0x61   :  { %949 = vmatpush.bf16.msra.mxu1 %v1207_v55  ;;  %v1240_v55 = vld [vmem:[%s2563_s1 + $0x158] sm:$0xf0]  ;;  %v1617_v16 = vld [vmem:[%s2563_s1 + $0x10c] sm:$0xf] }
  0x62   :  { %963 = vmatpush.bf16.msra.mxu2 %v1335_v56  ;;  %v1657_v56 = vld [vmem:[%s2563_s1 + $0x24c] sm:$0xf]  ;;  %v1208_v19 = vld [vmem:[%s2563_s1 + $0x118] sm:$0xf0] }
  0x63   :  { %977 = vmatpush.bf16.msra.mxu3 %v1463_v60  ;;  %936 = vmatmul.bf16.vlgmr.msra.gmra.mxu0 %v2011_v5  ;;  %v1496_v60 = vld [vmem:[%s2563_s1 + $0x358] sm:$0xf0]  ;;  %v1649_v20 = vld [vmem:[%s2563_s1 + $0x20c] sm:$0xf] }
  0x64   :  { %984 = vmatpush.bf16.msrb.mxu0 %v1195_v61  ;;  %950 = vmatmul.bf16.vlgmr.msra.gmra.mxu1 %v2036_v17  ;;  %v1115_v61 = vor.u32 %v1593_v51, %v1112_v52  ;;  %v1336_v21 = vld [vmem:[%s2563_s1 + $0x218] sm:$0xf0]  ;;  %v1681_v22 = vld [vmem:[%s2563_s1 + $0x30c] sm:$0xf] }
  0x65   :  { %998 = vmatpush.bf16.msrb.mxu1 %v1323_v62  ;;  %964 = vmatmul.bf16.vlgmr.msra.gmra.mxu2 %v1990_v59  ;;  %v1243_v62 = vor.u32 %v1625_v53, %v1240_v55  ;;  %v1464_v23 = vld [vmem:[%s2563_s1 + $0x318] sm:$0xf0] }
  0x66   :  { %1012 = vmatpush.bf16.msrb.mxu2 %v1451_v63  ;;  %978 = vmatmul.bf16.vlgmr.msra.gmra.mxu3 %v2022_v10  ;;  %v1371_v63 = vor.u32 %v1657_v56, %v1368_v57  ;;  %v1467_v27 = vor.u32 %v1681_v22, %v1464_v23 }
  0x67   :  { %1026 = vmatpush.bf16.msrb.mxu3 %v1579_v3  ;;  %v1499_v3 = vor.u32 %v1689_v58, %v1496_v60 }
  0x68   :  { %985 = vmatpush.bf16.msrb.mxu0 %v1179_v11  ;;  %v1099_v11 = vor.u32 %v1589_v0, %v1096_v1 }
  0x69   :  { %999 = vmatpush.bf16.msrb.mxu1 %v1307_v12  ;;  %v1227_v12 = vor.u32 %v1621_v2, %v1224_v4 }
  0x6a   :  { %1013 = vmatpush.bf16.msrb.mxu2 %v1435_v13  ;;  %v1355_v13 = vor.u32 %v1653_v6, %v1352_v7  ;;  %v151_v6 = vperm.slane %v146_v32, 3 }
  0x6b   :  { %1027 = vmatpush.bf16.msrb.mxu3 %v1563_v18  ;;  %v1483_v18 = vor.u32 %v1685_v8, %v1480_v9 }
  0x6c   :  { %986 = vmatpush.bf16.msrb.mxu0 %v1163_v24  ;;  %v1083_v24 = vor.u32 %v1585_v14, %v1080_v15 }
  0x6d   :  { %1000 = vmatpush.bf16.msrb.mxu1 %v1291_v25  ;;  %v1211_v25 = vor.u32 %v1617_v16, %v1208_v19 }
  0x6e   :  { %1014 = vmatpush.bf16.msrb.mxu2 %v1419_v26  ;;  %v1339_v26 = vor.u32 %v1649_v20, %v1336_v21 }
  0x6f   :  { %1028 = vmatpush.bf16.msrb.mxu3 %v1547_v30 }
  0x70   :  { %987 = vmatpush.bf16.msrb.mxu0 %v1147_v36 }
  0x71   :  { %1001 = vmatpush.bf16.msrb.mxu1 %v1275_v37 }
  0x72   :  { %1015 = vmatpush.bf16.msrb.mxu2 %v1403_v38  ;;  %v149_v38 = vperm.slane %v146_v32, 1 }
  0x73   :  { %1029 = vmatpush.bf16.msrb.mxu3 %v1531_v42 }
  0x74   :  { %988 = vmatpush.bf16.msrb.mxu0 %v1131_v48 }
  0x75   :  { %1002 = vmatpush.bf16.msrb.mxu1 %v1259_v49 }
  0x76   :  { %1016 = vmatpush.bf16.msrb.mxu2 %v1387_v50 }
  0x77   :  { %1030 = vmatpush.bf16.msrb.mxu3 %v1515_v54 }
  0x78   :  { %989 = vmatpush.bf16.msrb.mxu0 %v1115_v61 }
  0x79   :  { %1003 = vmatpush.bf16.msrb.mxu1 %v1243_v62 }
  0x7a   :  { %1017 = vmatpush.bf16.msrb.mxu2 %v1371_v63 }
  0x7b   :  { %1031 = vmatpush.bf16.msrb.mxu3 %v1499_v3  ;;  %v150_v3 = vperm.slane %v146_v32, 2 }
  0x7c   :  { %990 = vmatpush.bf16.msrb.mxu0 %v1099_v11 }
  0x7d   :  { %1004 = vmatpush.bf16.msrb.mxu1 %v1227_v12 }
  0x7e   :  { %1018 = vmatpush.bf16.msrb.mxu2 %v1355_v13 }
  0x7f   :  { %1032 = vmatpush.bf16.msrb.mxu3 %v1483_v18 }
  0x80   :  { %991 = vmatpush.bf16.msrb.mxu0 %v1083_v24 }
  0x81   :  { %1005 = vmatpush.bf16.msrb.mxu1 %v1211_v25 }
  0x82   :  { %1019 = vmatpush.bf16.msrb.mxu2 %v1339_v26 }
  0x83   :  { %1033 = vmatpush.bf16.msrb.mxu3 %v1467_v27  ;;  %992 = vmatmul.bf16.vlgmr.msrb.gmra.mxu0 %v2011_v5 }
  0x84   :  { %1006 = vmatmul.bf16.vlgmr.msrb.gmra.mxu1 %v2036_v17 }
  0x85   :  { %1020 = vmatmul.bf16.vlgmr.msrb.gmra.mxu2 %v1990_v59 }
  0x86   :  { %1034 = vmatmul.bf16.vlgmr.msrb.gmra.mxu3 %v2022_v10 }
  0xa3   :  { %v825_v28 = vpop.f32.mrf.mxu0 }
  0xa4   :  { %v839_v29 = vpop.f32.mrf.mxu1  ;;  %v826_v37 = vadd.f32 %v825_v28, %v148_v35 }
  0xa6   :  { %v840_v17 = vadd.f32 %v839_v29, %v826_v37 }
  0xa8   :  { %v853_v30 = vpop.f32.mrf.mxu2 }
  0xa9   :  { %v854_v41 = vadd.f32 %v853_v30, %v840_v17 }
  0xab   :  { %v867_v31 = vpop.f32.mrf.mxu3  ;;  %v827_v33 = vpop.f32.mrf.mxu0 }
  0xac   :  { %v841_v34 = vpop.f32.mrf.mxu1  ;;  %v828_v42 = vadd.f32 %v827_v33, %v148_v35  ;;  %v868_v46 = vadd.f32 %v867_v31, %v854_v41 }
  0xae   :  { %v842_v47 = vadd.f32 %v841_v34, %v828_v42 }
  0xb0   :  { %v855_v36 = vpop.f32.mrf.mxu2 }
  0xb1   :  { %v856_v54 = vadd.f32 %v855_v36, %v842_v47 }
  0xb3   :  { %v869_v5 = vpop.f32.mrf.mxu3 }
  0xb4   :  { %v870_v58 = vadd.f32 %v869_v5, %v856_v54 }
  0xc0   :  { %v881_v39 = vpop.f32.mrf.mxu0 }
  0xc1   :  { %v882_v59 = vadd.f32 %v881_v39, %v149_v38  ;;  %v895_v40 = vpop.f32.mrf.mxu1 }
  0xc3   :  { %v896_v10 = vadd.f32 %v895_v40, %v882_v59 }
  0xc8   :  { %v909_v43 = vpop.f32.mrf.mxu2  ;;  %v883_v49 = vpop.f32.mrf.mxu0 }
  0xc9   :  { %v910_v44 = vadd.f32 %v909_v43, %v896_v10  ;;  %v923_v45 = vpop.f32.mrf.mxu3  ;;  %v884_v50 = vadd.f32 %v883_v49, %v149_v38  ;;  %v897_v51 = vpop.f32.mrf.mxu1 }
  0xcb   :  { %v924_v48 = vadd.f32 %v923_v45, %v910_v44  ;;  %v898_v53 = vadd.f32 %v897_v51, %v884_v50 }
  0xcd   :  { %v1040_v52 = vpack.c.bf16 %v924_v48, %v868_v46 }
  0xcf   :  { %1044 = vst [vmem:[%s2566_s3] sm:$0xff] %v1040_v52 }
  0xd0   :  { %v911_v55 = vpop.f32.mrf.mxu2 }
  0xd1   :  { %v912_v56 = vadd.f32 %v911_v55, %v898_v53  ;;  %v925_v57 = vpop.f32.mrf.mxu3 }
  0xd3   :  { %v926_v60 = vadd.f32 %v925_v57, %v912_v56 }
  0xd5   :  { %v1042_v61 = vpack.c.bf16 %v926_v60, %v870_v58 }
  0xd7   :  { %1046 = vst [vmem:[%s2566_s3 + $0x10] sm:$0xff] %v1042_v61 }
  0xe0   :  { %v937_v62 = vpop.f32.mrf.mxu0 }
  0xe1   :  { %v951_v63 = vpop.f32.mrf.mxu1  ;;  %v938_v7 = vadd.f32 %v937_v62, %v150_v3 }
  0xe3   :  { %v952_v13 = vadd.f32 %v951_v63, %v938_v7 }
  0xe8   :  { %v965_v0 = vpop.f32.mrf.mxu2  ;;  %v939_v2 = vpop.f32.mrf.mxu0 }
  0xe9   :  { %v979_v1 = vpop.f32.mrf.mxu3  ;;  %v953_v4 = vpop.f32.mrf.mxu1  ;;  %v966_v16 = vadd.f32 %v965_v0, %v952_v13  ;;  %v940_v18 = vadd.f32 %v939_v2, %v150_v3 }
  0xeb   :  { %v980_v23 = vadd.f32 %v979_v1, %v966_v16  ;;  %v954_v24 = vadd.f32 %v953_v4, %v940_v18 }
  0xf0   :  { %v967_v8 = vpop.f32.mrf.mxu2 }
  0xf1   :  { %v981_v9 = vpop.f32.mrf.mxu3  ;;  %v968_v29 = vadd.f32 %v967_v8, %v954_v24 }
  0xf3   :  { %v982_v34 = vadd.f32 %v981_v9, %v968_v29 }
 0x100   :  { %v993_v11 = vpop.f32.mrf.mxu0 }
 0x101   :  { %v994_v12 = vadd.f32 %v993_v11, %v151_v6  ;;  %v1007_v14 = vpop.f32.mrf.mxu1 }
 0x103   :  { %v1008_v15 = vadd.f32 %v1007_v14, %v994_v12 }
 0x108   :  { %v1021_v19 = vpop.f32.mrf.mxu2  ;;  %v995_v22 = vpop.f32.mrf.mxu0 }
 0x109   :  { %v1022_v20 = vadd.f32 %v1021_v19, %v1008_v15  ;;  %v1035_v21 = vpop.f32.mrf.mxu3  ;;  %v996_v26 = vadd.f32 %v995_v22, %v151_v6  ;;  %v1009_v28 = vpop.f32.mrf.mxu1 }
 0x10b   :  { %v1036_v25 = vadd.f32 %v1035_v21, %v1022_v20  ;;  %v1010_v30 = vadd.f32 %v1009_v28, %v996_v26 }
 0x10d   :  { %v1041_v27 = vpack.c.bf16 %v1036_v25, %v980_v23 }
 0x10f   :  { %1045 = vst [vmem:[%s2566_s3 + $0x8] sm:$0xff] %v1041_v27 }
 0x110   :  { %v1023_v31 = vpop.f32.mrf.mxu2 }
 0x111   :  { %v1024_v32 = vadd.f32 %v1023_v31, %v1010_v30  ;;  %v1037_v33 = vpop.f32.mrf.mxu3 }
 0x113   :  { %v1038_v35 = vadd.f32 %v1037_v33, %v1024_v32 }
 0x115   :  { %v1043_v36 = vpack.c.bf16 %v1038_v35, %v982_v34 }
 0x117   :  { %1047 = vst [vmem:[%s2566_s3 + $0x18] sm:$0xff] %v1043_v36 }

// kernel: _lambda_.20
= control target key start
LH: loop header
LB: loop body
LE: loop exit
PB: predicated region body
PF: predicated region fallthrough
CT: control target
= control target key end

     0   :  { %s2284_s1 = inlined_call_operand.vmem [shape: bf16[1792,128], index: 1, kind: input, shape index: {}]   ;;  %s2285_s2 = inlined_call_operand.vmem [shape: f32[1,128], index: 2, kind: input, shape index: {}]   ;;  %s2286_s0 = inlined_call_operand.vmem [shape: bf16[16,1792], index: 0, kind: input, shape index: {}]   ;;  %s2287_s3 = inlined_call_operand.vmem [shape: bf16[16,128], index: 3, kind: output, shape index: {}]  }
   0x1   :  { %v1727_v0 = vld [vmem:[%s2284_s1 + $0x38] sm:$0xff]  ;;  %v1726_v4 = vld [vmem:[%s2284_s1 + $0x30] sm:$0xff]  ;;  %v1725_v8 = vld [vmem:[%s2284_s1 + $0x28] sm:$0xff] }
   0x2   :  { %v1735_v1 = vld [vmem:[%s2284_s1 + $0x78] sm:$0xff]  ;;  %998 = vmatpush.bf16.msra.mxu0 %v1727_v0  ;;  %v1734_v5 = vld [vmem:[%s2284_s1 + $0x70] sm:$0xff]  ;;  %v1733_v9 = vld [vmem:[%s2284_s1 + $0x68] sm:$0xff] }
   0x3   :  { %v1743_v2 = vld [vmem:[%s2284_s1 + $0xb8] sm:$0xff]  ;;  %1012 = vmatpush.bf16.msra.mxu1 %v1735_v1  ;;  %v1742_v6 = vld [vmem:[%s2284_s1 + $0xb0] sm:$0xff]  ;;  %v1741_v10 = vld [vmem:[%s2284_s1 + $0xa8] sm:$0xff] }
   0x4   :  { %v1751_v3 = vld [vmem:[%s2284_s1 + $0xf8] sm:$0xff]  ;;  %1026 = vmatpush.bf16.msra.mxu2 %v1743_v2  ;;  %v1750_v7 = vld [vmem:[%s2284_s1 + $0xf0] sm:$0xff]  ;;  %v1749_v11 = vld [vmem:[%s2284_s1 + $0xe8] sm:$0xff] }
   0x5   :  { %1040 = vmatpush.bf16.msra.mxu3 %v1751_v3  ;;  %v1724_v12 = vld [vmem:[%s2284_s1 + $0x20] sm:$0xff]  ;;  %v1723_v16 = vld [vmem:[%s2284_s1 + $0x18] sm:$0xff]  ;;  %v1722_v20 = vld [vmem:[%s2284_s1 + $0x10] sm:$0xff] }
   0x6   :  { %999 = vmatpush.bf16.msra.mxu0 %v1726_v4  ;;  %v1732_v13 = vld [vmem:[%s2284_s1 + $0x60] sm:$0xff]  ;;  %v1731_v17 = vld [vmem:[%s2284_s1 + $0x58] sm:$0xff]  ;;  %v1730_v21 = vld [vmem:[%s2284_s1 + $0x50] sm:$0xff] }
   0x7   :  { %1013 = vmatpush.bf16.msra.mxu1 %v1734_v5  ;;  %v1740_v14 = vld [vmem:[%s2284_s1 + $0xa0] sm:$0xff]  ;;  %v1739_v18 = vld [vmem:[%s2284_s1 + $0x98] sm:$0xff]  ;;  %v1738_v22 = vld [vmem:[%s2284_s1 + $0x90] sm:$0xff] }
   0x8   :  { %1027 = vmatpush.bf16.msra.mxu2 %v1742_v6  ;;  %v1748_v15 = vld [vmem:[%s2284_s1 + $0xe0] sm:$0xff]  ;;  %v1747_v19 = vld [vmem:[%s2284_s1 + $0xd8] sm:$0xff]  ;;  %v1746_v23 = vld [vmem:[%s2284_s1 + $0xd0] sm:$0xff] }
   0x9   :  { %1041 = vmatpush.bf16.msra.mxu3 %v1750_v7  ;;  %v1721_v24 = vld [vmem:[%s2284_s1 + $0x8] sm:$0xff]  ;;  %v1720_v28 = vld [vmem:[%s2284_s1] sm:$0xff]  ;;  %v1759_v31 = vld [vmem:[%s2284_s1 + $0x138] sm:$0xff] }
   0xa   :  { %1000 = vmatpush.bf16.msra.mxu0 %v1725_v8  ;;  %v1729_v25 = vld [vmem:[%s2284_s1 + $0x48] sm:$0xff]  ;;  %v1728_v29 = vld [vmem:[%s2284_s1 + $0x40] sm:$0xff]  ;;  %v1713_v33 = vld [vmem:[%s2286_s0 + $0x34] sm:$0xf0] }
   0xb   :  { %1014 = vmatpush.bf16.msra.mxu1 %v1733_v9  ;;  %v1737_v26 = vld [vmem:[%s2284_s1 + $0x88] sm:$0xff]  ;;  %v1736_v30 = vld [vmem:[%s2284_s1 + $0x80] sm:$0xff]  ;;  %v1767_v34 = vld [vmem:[%s2284_s1 + $0x178] sm:$0xff] }
   0xc   :  { %1028 = vmatpush.bf16.msra.mxu2 %v1741_v10  ;;  %v1745_v27 = vld [vmem:[%s2284_s1 + $0xc8] sm:$0xff]  ;;  %v1204_v32 = vld [vmem:[%s2286_s0] sm:$0xf]  ;;  %v1775_v37 = vld [vmem:[%s2284_s1 + $0x1b8] sm:$0xff] }
   0xd   :  { %1042 = vmatpush.bf16.msra.mxu3 %v1749_v11  ;;  %v1212_v35 = vld [vmem:[%s2286_s0 + $0x8] sm:$0xf]  ;;  %v1714_v36 = vld [vmem:[%s2286_s0 + $0x3c] sm:$0xf0]  ;;  %v1706_v38 = vld [vmem:[%s2286_s0 + $0x4] sm:$0xf]  ;;  %v1205_v41 = vor.u32 %v1713_v33, %v1204_v32 }
   0xe   :  { %1001 = vmatpush.bf16.msra.mxu0 %v1724_v12  ;;  %v1206_v39 = vld [vmem:[%s2286_s0 + $0x38] sm:$0xf0]  ;;  %v1744_v40 = vld [vmem:[%s2284_s1 + $0xc0] sm:$0xff]  ;;  %v1213_v43 = vor.u32 %v1714_v36, %v1212_v35  ;;  %v1707_v44 = vld [vmem:[%s2286_s0 + $0xc] sm:$0xf] }
   0xf   :  { %1015 = vmatpush.bf16.msra.mxu1 %v1732_v13  ;;  %v1783_v42 = vld [vmem:[%s2284_s1 + $0x1f8] sm:$0xff]  ;;  %v1214_v45 = vld [vmem:[%s2286_s0 + $0x40] sm:$0xf0]  ;;  %v1758_v46 = vld [vmem:[%s2284_s1 + $0x130] sm:$0xff]  ;;  %v1209_v47 = vor.u32 %v1706_v38, %v1206_v39 }
  0x10   :  { %1029 = vmatpush.bf16.msra.mxu2 %v1740_v14  ;;  %v1766_v48 = vld [vmem:[%s2284_s1 + $0x170] sm:$0xff]  ;;  %v1217_v50 = vor.u32 %v1707_v44, %v1214_v45  ;;  %v1757_v52 = vld [vmem:[%s2284_s1 + $0x128] sm:$0xff]  ;;  %v1756_v56 = vld [vmem:[%s2284_s1 + $0x120] sm:$0xff] }
  0x11   :  { %1043 = vmatpush.bf16.msra.mxu3 %v1748_v15  ;;  %v1774_v49 = vld [vmem:[%s2284_s1 + $0x1b0] sm:$0xff]  ;;  %v1765_v53 = vld [vmem:[%s2284_s1 + $0x168] sm:$0xff]  ;;  %v1764_v57 = vld [vmem:[%s2284_s1 + $0x160] sm:$0xff] }
  0x12   :  { %1002 = vmatpush.bf16.msra.mxu0 %v1723_v16  ;;  %v1782_v51 = vld [vmem:[%s2284_s1 + $0x1f0] sm:$0xff]  ;;  %v1773_v54 = vld [vmem:[%s2284_s1 + $0x1a8] sm:$0xff]  ;;  %v1772_v58 = vld [vmem:[%s2284_s1 + $0x1a0] sm:$0xff] }
  0x13   :  { %1016 = vmatpush.bf16.msra.mxu1 %v1731_v17  ;;  %v1781_v55 = vld [vmem:[%s2284_s1 + $0x1e8] sm:$0xff]  ;;  %v1780_v59 = vld [vmem:[%s2284_s1 + $0x1e0] sm:$0xff]  ;;  %v1755_v60 = vld [vmem:[%s2284_s1 + $0x118] sm:$0xff] }
  0x14   :  { %1030 = vmatpush.bf16.msra.mxu2 %v1739_v18  ;;  %v1763_v61 = vld [vmem:[%s2284_s1 + $0x158] sm:$0xff]  ;;  %v1754_v0 = vld [vmem:[%s2284_s1 + $0x110] sm:$0xff]  ;;  %v1753_v4 = vld [vmem:[%s2284_s1 + $0x108] sm:$0xff] }
  0x15   :  { %1044 = vmatpush.bf16.msra.mxu3 %v1747_v19  ;;  %v1771_v62 = vld [vmem:[%s2284_s1 + $0x198] sm:$0xff]  ;;  %v1762_v1 = vld [vmem:[%s2284_s1 + $0x150] sm:$0xff]  ;;  %v1761_v5 = vld [vmem:[%s2284_s1 + $0x148] sm:$0xff] }
  0x16   :  { %1003 = vmatpush.bf16.msra.mxu0 %v1722_v20  ;;  %v1779_v63 = vld [vmem:[%s2284_s1 + $0x1d8] sm:$0xff]  ;;  %v1770_v2 = vld [vmem:[%s2284_s1 + $0x190] sm:$0xff]  ;;  %v1769_v6 = vld [vmem:[%s2284_s1 + $0x188] sm:$0xff] }
  0x17   :  { %1017 = vmatpush.bf16.msra.mxu1 %v1730_v21  ;;  %v1778_v3 = vld [vmem:[%s2284_s1 + $0x1d0] sm:$0xff]  ;;  %v1777_v7 = vld [vmem:[%s2284_s1 + $0x1c8] sm:$0xff]  ;;  %v1752_v8 = vld [vmem:[%s2284_s1 + $0x100] sm:$0xff] }
  0x18   :  { %1031 = vmatpush.bf16.msra.mxu2 %v1738_v22  ;;  %v1760_v9 = vld [vmem:[%s2284_s1 + $0x140] sm:$0xff]  ;;  %v1791_v11 = vld [vmem:[%s2284_s1 + $0x238] sm:$0xff]  ;;  %v1220_v13 = vld [vmem:[%s2286_s0 + $0x10] sm:$0xf] }
  0x19   :  { %1045 = vmatpush.bf16.msra.mxu3 %v1746_v23  ;;  %v1768_v10 = vld [vmem:[%s2284_s1 + $0x180] sm:$0xff]  ;;  %v1799_v12 = vld [vmem:[%s2284_s1 + $0x278] sm:$0xff]  ;;  %v1715_v14 = vld [vmem:[%s2286_s0 + $0x44] sm:$0xf0] }
  0x1a   :  { %1004 = vmatpush.bf16.msra.mxu0 %v1721_v24  ;;  %v1228_v15 = vld [vmem:[%s2286_s0 + $0x18] sm:$0xf]  ;;  %v1716_v16 = vld [vmem:[%s2286_s0 + $0x4c] sm:$0xf0]  ;;  %v1708_v18 = vld [vmem:[%s2286_s0 + $0x14] sm:$0xf]  ;;  %v1221_v23 = vor.u32 %v1715_v14, %v1220_v13 }
  0x1b   :  { %1018 = vmatpush.bf16.msra.mxu1 %v1729_v25  ;;  %v1807_v17 = vld [vmem:[%s2284_s1 + $0x2b8] sm:$0xff]  ;;  %v1222_v19 = vld [vmem:[%s2286_s0 + $0x48] sm:$0xf0]  ;;  %v1776_v20 = vld [vmem:[%s2284_s1 + $0x1c0] sm:$0xff]  ;;  %v1229_v24 = vor.u32 %v1716_v16, %v1228_v15 }
  0x1c   :  { %1032 = vmatpush.bf16.msra.mxu2 %v1737_v26  ;;  %v1709_v21 = vld [vmem:[%s2286_s0 + $0x1c] sm:$0xf]  ;;  %v1230_v22 = vld [vmem:[%s2286_s0 + $0x50] sm:$0xf0]  ;;  %v1225_v26 = vor.u32 %v1708_v18, %v1222_v19  ;;  %v1789_v32 = vld [vmem:[%s2284_s1 + $0x228] sm:$0xff] }
  0x1d   :  { %1046 = vmatpush.bf16.msra.mxu3 %v1745_v27  ;;  %v1815_v25 = vld [vmem:[%s2284_s1 + $0x2f8] sm:$0xff]  ;;  %v1233_v27 = vor.u32 %v1709_v21, %v1230_v22  ;;  %v1797_v33 = vld [vmem:[%s2284_s1 + $0x268] sm:$0xff]  ;;  %v1788_v36 = vld [vmem:[%s2284_s1 + $0x220] sm:$0xff] }
  0x1e   :  { %1005 = vmatpush.bf16.msra.mxu0 %v1720_v28  ;;  %v1790_v28 = vld [vmem:[%s2284_s1 + $0x230] sm:$0xff]  ;;  %v1813_v35 = vld [vmem:[%s2284_s1 + $0x2e8] sm:$0xff]  ;;  %v1804_v38 = vld [vmem:[%s2284_s1 + $0x2a0] sm:$0xff] }
  0x1f   :  { %1019 = vmatpush.bf16.msra.mxu1 %v1728_v29  ;;  %v1798_v29 = vld [vmem:[%s2284_s1 + $0x270] sm:$0xff]  ;;  %v1812_v39 = vld [vmem:[%s2284_s1 + $0x2e0] sm:$0xff]  ;;  %v1827_v13 = vld [vmem:[%s2284_s1 + $0x358] sm:$0xff] }
  0x20   :  { %1033 = vmatpush.bf16.msra.mxu2 %v1736_v30  ;;  %v1806_v30 = vld [vmem:[%s2284_s1 + $0x2b0] sm:$0xff]  ;;  %v1817_v16 = vld [vmem:[%s2284_s1 + $0x308] sm:$0xff]  ;;  %v1816_v18 = vld [vmem:[%s2284_s1 + $0x300] sm:$0xff] }
  0x21   :  { %1047 = vmatpush.bf16.msra.mxu3 %v1744_v40  ;;  %1006 = vmatmul.bf16.vlgmr.msra.gmra.mxu0 %v1205_v41  ;;  %v1787_v40 = vld [vmem:[%s2284_s1 + $0x218] sm:$0xff]  ;;  %v1786_v44 = vld [vmem:[%s2284_s1 + $0x210] sm:$0xff]  ;;  %v1824_v21 = vld [vmem:[%s2284_s1 + $0x340] sm:$0xff] }
  0x22   :  { %1054 = vmatpush.bf16.msrb.mxu0 %v1759_v31  ;;  %1020 = vmatmul.bf16.vlgmr.msra.gmra.mxu1 %v1209_v47  ;;  %v1814_v31 = vld [vmem:[%s2284_s1 + $0x2f0] sm:$0xff]  ;;  %v1795_v41 = vld [vmem:[%s2284_s1 + $0x258] sm:$0xff] }
  0x23   :  { %1068 = vmatpush.bf16.msrb.mxu1 %v1767_v34  ;;  %1034 = vmatmul.bf16.vlgmr.msra.gmra.mxu2 %v1213_v43  ;;  %v1805_v34 = vld [vmem:[%s2284_s1 + $0x2a8] sm:$0xff]  ;;  %v1811_v43 = vld [vmem:[%s2284_s1 + $0x2d8] sm:$0xff]  ;;  %v1794_v45 = vld [vmem:[%s2284_s1 + $0x250] sm:$0xff] }
  0x24   :  { %1082 = vmatpush.bf16.msrb.mxu2 %v1775_v37  ;;  %1048 = vmatmul.bf16.vlgmr.msra.gmra.mxu3 %v1217_v50  ;;  %v1796_v37 = vld [vmem:[%s2284_s1 + $0x260] sm:$0xff]  ;;  %v1810_v47 = vld [vmem:[%s2284_s1 + $0x2d0] sm:$0xff]  ;;  %v1801_v50 = vld [vmem:[%s2284_s1 + $0x288] sm:$0xff] }
  0x25   :  { %1096 = vmatpush.bf16.msrb.mxu3 %v1783_v42  ;;  %v1803_v42 = vld [vmem:[%s2284_s1 + $0x298] sm:$0xff]  ;;  %v1818_v14 = vld [vmem:[%s2284_s1 + $0x310] sm:$0xff] }
  0x26   :  { %1055 = vmatpush.bf16.msrb.mxu0 %v1758_v46  ;;  %v1802_v46 = vld [vmem:[%s2284_s1 + $0x290] sm:$0xff] }
  0x27   :  { %1069 = vmatpush.bf16.msrb.mxu1 %v1766_v48  ;;  %v1785_v48 = vld [vmem:[%s2284_s1 + $0x208] sm:$0xff]  ;;  %v1826_v15 = vld [vmem:[%s2284_s1 + $0x350] sm:$0xff] }
  0x28   :  { %1083 = vmatpush.bf16.msrb.mxu2 %v1774_v49  ;;  %v1793_v49 = vld [vmem:[%s2284_s1 + $0x248] sm:$0xff]  ;;  %v1252_v19 = vld [vmem:[%s2286_s0 + $0x30] sm:$0xf]  ;;  %v1712_v22 = vld [vmem:[%s2286_s0 + $0x34] sm:$0xf] }
  0x29   :  { %1097 = vmatpush.bf16.msrb.mxu3 %v1782_v51  ;;  %v1809_v51 = vld [vmem:[%s2284_s1 + $0x2c8] sm:$0xff] }
  0x2a   :  { %1056 = vmatpush.bf16.msrb.mxu0 %v1757_v52  ;;  %v1784_v52 = vld [vmem:[%s2284_s1 + $0x200] sm:$0xff] }
  0x2b   :  { %1070 = vmatpush.bf16.msrb.mxu1 %v1765_v53  ;;  %v1792_v53 = vld [vmem:[%s2284_s1 + $0x240] sm:$0xff] }
  0x2c   :  { %1084 = vmatpush.bf16.msrb.mxu2 %v1773_v54  ;;  %v1800_v54 = vld [vmem:[%s2284_s1 + $0x280] sm:$0xff] }
  0x2d   :  { %1098 = vmatpush.bf16.msrb.mxu3 %v1781_v55  ;;  %v1236_v55 = vld [vmem:[%s2286_s0 + $0x20] sm:$0xf] }
  0x2e   :  { %1057 = vmatpush.bf16.msrb.mxu0 %v1756_v56  ;;  %v1717_v56 = vld [vmem:[%s2286_s0 + $0x54] sm:$0xf0] }
  0x2f   :  { %1071 = vmatpush.bf16.msrb.mxu1 %v1764_v57  ;;  %v1244_v57 = vld [vmem:[%s2286_s0 + $0x28] sm:$0xf] }
  0x30   :  { %1085 = vmatpush.bf16.msrb.mxu2 %v1772_v58  ;;  %v1718_v58 = vld [vmem:[%s2286_s0 + $0x5c] sm:$0xf0] }
  0x31   :  { %1099 = vmatpush.bf16.msrb.mxu3 %v1780_v59  ;;  %v1710_v59 = vld [vmem:[%s2286_s0 + $0x24] sm:$0xf] }
  0x32   :  { %1058 = vmatpush.bf16.msrb.mxu0 %v1755_v60  ;;  %v1238_v60 = vld [vmem:[%s2286_s0 + $0x58] sm:$0xf0] }
  0x33   :  { %1072 = vmatpush.bf16.msrb.mxu1 %v1763_v61  ;;  %v1823_v61 = vld [vmem:[%s2284_s1 + $0x338] sm:$0xff] }
  0x34   :  { %1086 = vmatpush.bf16.msrb.mxu2 %v1771_v62  ;;  %v1831_v62 = vld [vmem:[%s2284_s1 + $0x378] sm:$0xff] }
  0x35   :  { %1100 = vmatpush.bf16.msrb.mxu3 %v1779_v63  ;;  %v1808_v63 = vld [vmem:[%s2284_s1 + $0x2c0] sm:$0xff] }
  0x36   :  { %1059 = vmatpush.bf16.msrb.mxu0 %v1754_v0  ;;  %v1237_v0 = vor.u32 %v1717_v56, %v1236_v55 }
  0x37   :  { %1073 = vmatpush.bf16.msrb.mxu1 %v1762_v1  ;;  %v1711_v1 = vld [vmem:[%s2286_s0 + $0x2c] sm:$0xf] }
  0x38   :  { %1087 = vmatpush.bf16.msrb.mxu2 %v1770_v2  ;;  %v1246_v2 = vld [vmem:[%s2286_s0 + $0x60] sm:$0xf0] }
  0x39   :  { %1101 = vmatpush.bf16.msrb.mxu3 %v1778_v3  ;;  %v1245_v3 = vor.u32 %v1718_v58, %v1244_v57 }
  0x3a   :  { %1060 = vmatpush.bf16.msrb.mxu0 %v1753_v4  ;;  %v1241_v4 = vor.u32 %v1710_v59, %v1238_v60 }
  0x3b   :  { %1074 = vmatpush.bf16.msrb.mxu1 %v1761_v5  ;;  %v1249_v5 = vor.u32 %v1711_v1, %v1246_v2 }
  0x3c   :  { %1088 = vmatpush.bf16.msrb.mxu2 %v1769_v6  ;;  %v1822_v6 = vld [vmem:[%s2284_s1 + $0x330] sm:$0xff] }
  0x3d   :  { %1102 = vmatpush.bf16.msrb.mxu3 %v1777_v7  ;;  %v1830_v7 = vld [vmem:[%s2284_s1 + $0x370] sm:$0xff] }
  0x3e   :  { %1061 = vmatpush.bf16.msrb.mxu0 %v1752_v8  ;;  %v1821_v8 = vld [vmem:[%s2284_s1 + $0x328] sm:$0xff] }
  0x3f   :  { %1075 = vmatpush.bf16.msrb.mxu1 %v1760_v9  ;;  %v1829_v9 = vld [vmem:[%s2284_s1 + $0x368] sm:$0xff] }
  0x40   :  { %1089 = vmatpush.bf16.msrb.mxu2 %v1768_v10  ;;  %v1820_v10 = vld [vmem:[%s2284_s1 + $0x320] sm:$0xff] }
  0x41   :  { %1103 = vmatpush.bf16.msrb.mxu3 %v1776_v20  ;;  %1062 = vmatmul.bf16.vlgmr.msrb.gmra.mxu0 %v1221_v23  ;;  %v1719_v20 = vld [vmem:[%s2286_s0 + $0x64] sm:$0xf0]  ;;  %v1254_v23 = vld [vmem:[%s2286_s0 + $0x68] sm:$0xf0] }
  0x42   :  { %1110 = vmatpush.bf16.msra.mxu0 %v1791_v11  ;;  %1076 = vmatmul.bf16.vlgmr.msrb.gmra.mxu1 %v1225_v26  ;;  %v1828_v11 = vld [vmem:[%s2284_s1 + $0x360] sm:$0xff] }
  0x43   :  { %1124 = vmatpush.bf16.msra.mxu1 %v1799_v12  ;;  %1090 = vmatmul.bf16.vlgmr.msrb.gmra.mxu2 %v1229_v24  ;;  %v1819_v12 = vld [vmem:[%s2284_s1 + $0x318] sm:$0xff]  ;;  %v1253_v24 = vor.u32 %v1719_v20, %v1252_v19 }
  0x44   :  { %1138 = vmatpush.bf16.msra.mxu2 %v1807_v17  ;;  %1104 = vmatmul.bf16.vlgmr.msrb.gmra.mxu3 %v1233_v27  ;;  %v1825_v17 = vld [vmem:[%s2284_s1 + $0x348] sm:$0xff] }
  0x45   :  { %1152 = vmatpush.bf16.msra.mxu3 %v1815_v25  ;;  %v1257_v25 = vor.u32 %v1712_v22, %v1254_v23 }
  0x46   :  { %1111 = vmatpush.bf16.msra.mxu0 %v1790_v28 }
  0x47   :  { %1125 = vmatpush.bf16.msra.mxu1 %v1798_v29 }
  0x48   :  { %1139 = vmatpush.bf16.msra.mxu2 %v1806_v30 }
  0x49   :  { %1153 = vmatpush.bf16.msra.mxu3 %v1814_v31 }
  0x4a   :  { %1112 = vmatpush.bf16.msra.mxu0 %v1789_v32  ;;  %v1837_v32 = vld [vmem:[%s2285_s2] ss:$0 sm:$0xff] }
  0x4b   :  { %1126 = vmatpush.bf16.msra.mxu1 %v1797_v33 }
  0x4c   :  { %1140 = vmatpush.bf16.msra.mxu2 %v1805_v34 }
  0x4d   :  { %1154 = vmatpush.bf16.msra.mxu3 %v1813_v35 }
  0x4e   :  { %1113 = vmatpush.bf16.msra.mxu0 %v1788_v36 }
  0x4f   :  { %1127 = vmatpush.bf16.msra.mxu1 %v1796_v37 }
  0x50   :  { %1141 = vmatpush.bf16.msra.mxu2 %v1804_v38 }
  0x51   :  { %1155 = vmatpush.bf16.msra.mxu3 %v1812_v39 }
  0x52   :  { %1114 = vmatpush.bf16.msra.mxu0 %v1787_v40 }
  0x53   :  { %1128 = vmatpush.bf16.msra.mxu1 %v1795_v41 }
  0x54   :  { %1142 = vmatpush.bf16.msra.mxu2 %v1803_v42 }
  0x55   :  { %1156 = vmatpush.bf16.msra.mxu3 %v1811_v43 }
  0x56   :  { %1115 = vmatpush.bf16.msra.mxu0 %v1786_v44 }
  0x57   :  { %1129 = vmatpush.bf16.msra.mxu1 %v1794_v45 }
  0x58   :  { %1143 = vmatpush.bf16.msra.mxu2 %v1802_v46 }
  0x59   :  { %1157 = vmatpush.bf16.msra.mxu3 %v1810_v47 }
  0x5a   :  { %1116 = vmatpush.bf16.msra.mxu0 %v1785_v48 }
  0x5b   :  { %1130 = vmatpush.bf16.msra.mxu1 %v1793_v49 }
  0x5c   :  { %1144 = vmatpush.bf16.msra.mxu2 %v1801_v50 }
  0x5d   :  { %1158 = vmatpush.bf16.msra.mxu3 %v1809_v51 }
  0x5e   :  { %1117 = vmatpush.bf16.msra.mxu0 %v1784_v52 }
  0x5f   :  { %1131 = vmatpush.bf16.msra.mxu1 %v1792_v53 }
  0x60   :  { %1145 = vmatpush.bf16.msra.mxu2 %v1800_v54 }
  0x61   :  { %1159 = vmatpush.bf16.msra.mxu3 %v1808_v63  ;;  %1118 = vmatmul.bf16.vlgmr.msra.gmra.mxu0 %v1237_v0 }
  0x62   :  { %1166 = vmatpush.bf16.msrb.mxu0 %v1823_v61  ;;  %1132 = vmatmul.bf16.vlgmr.msra.gmra.mxu1 %v1241_v4 }
  0x63   :  { %1180 = vmatpush.bf16.msrb.mxu1 %v1831_v62  ;;  %1146 = vmatmul.bf16.vlgmr.msra.gmra.mxu2 %v1245_v3 }
  0x64   :  { %1160 = vmatmul.bf16.vlgmr.msra.gmra.mxu3 %v1249_v5 }
  0x66   :  { %1167 = vmatpush.bf16.msrb.mxu0 %v1822_v6 }
  0x67   :  { %1181 = vmatpush.bf16.msrb.mxu1 %v1830_v7 }
  0x6a   :  { %1168 = vmatpush.bf16.msrb.mxu0 %v1821_v8 }
  0x6b   :  { %1182 = vmatpush.bf16.msrb.mxu1 %v1829_v9 }
  0x6e   :  { %1169 = vmatpush.bf16.msrb.mxu0 %v1820_v10 }
  0x6f   :  { %1183 = vmatpush.bf16.msrb.mxu1 %v1828_v11 }
  0x72   :  { %1170 = vmatpush.bf16.msrb.mxu0 %v1819_v12 }
  0x73   :  { %1184 = vmatpush.bf16.msrb.mxu1 %v1827_v13 }
  0x76   :  { %1171 = vmatpush.bf16.msrb.mxu0 %v1818_v14 }
  0x77   :  { %1185 = vmatpush.bf16.msrb.mxu1 %v1826_v15 }
  0x7a   :  { %1172 = vmatpush.bf16.msrb.mxu0 %v1817_v16 }
  0x7b   :  { %1186 = vmatpush.bf16.msrb.mxu1 %v1825_v17 }
  0x7e   :  { %1173 = vmatpush.bf16.msrb.mxu0 %v1816_v18 }
  0x7f   :  { %1187 = vmatpush.bf16.msrb.mxu1 %v1824_v21 }
  0x81   :  { %1174 = vmatmul.bf16.vlgmr.msrb.gmra.mxu0 %v1253_v24 }
  0x82   :  { %1188 = vmatmul.bf16.vlgmr.msrb.gmra.mxu1 %v1257_v25 }
  0x9e   :  { %v1007_v26 = vpop.f32.mrf.mxu0 }
  0x9f   :  { %v1021_v27 = vpop.f32.mrf.mxu1  ;;  %v1008_v35 = vadd.f32 %v1837_v32, %v1007_v26 }
  0xa1   :  { %v1022_v38 = vadd.f32 %v1021_v27, %v1008_v35 }
  0xa6   :  { %v1035_v28 = vpop.f32.mrf.mxu2  ;;  %v1009_v29 = vpop.f32.mrf.mxu0 }
  0xa7   :  { %v1023_v30 = vpop.f32.mrf.mxu1  ;;  %v1049_v31 = vpop.f32.mrf.mxu3  ;;  %v1010_v39 = vadd.f32 %v1837_v32, %v1009_v29  ;;  %v1036_v41 = vadd.f32 %v1035_v28, %v1022_v38 }
  0xa9   :  { %v1024_v43 = vadd.f32 %v1023_v30, %v1010_v39  ;;  %v1050_v46 = vadd.f32 %v1049_v31, %v1036_v41 }
  0xae   :  { %v1037_v33 = vpop.f32.mrf.mxu2 }
  0xaf   :  { %v1051_v37 = vpop.f32.mrf.mxu3  ;;  %v1038_v47 = vadd.f32 %v1037_v33, %v1024_v43 }
  0xb1   :  { %v1052_v51 = vadd.f32 %v1051_v37, %v1038_v47 }
  0xbe   :  { %v1063_v34 = vpop.f32.mrf.mxu0 }
  0xbf   :  { %v1077_v36 = vpop.f32.mrf.mxu1  ;;  %v1064_v48 = vadd.f32 %v1063_v34, %v1050_v46 }
  0xc1   :  { %v1078_v53 = vadd.f32 %v1077_v36, %v1064_v48 }
  0xc6   :  { %v1091_v40 = vpop.f32.mrf.mxu2  ;;  %v1065_v42 = vpop.f32.mrf.mxu0 }
  0xc7   :  { %v1079_v44 = vpop.f32.mrf.mxu1  ;;  %v1105_v45 = vpop.f32.mrf.mxu3  ;;  %v1066_v54 = vadd.f32 %v1065_v42, %v1052_v51  ;;  %v1092_v56 = vadd.f32 %v1091_v40, %v1078_v53 }
  0xc9   :  { %v1080_v57 = vadd.f32 %v1079_v44, %v1066_v54  ;;  %v1106_v61 = vadd.f32 %v1105_v45, %v1092_v56 }
  0xce   :  { %v1093_v49 = vpop.f32.mrf.mxu2 }
  0xcf   :  { %v1107_v55 = vpop.f32.mrf.mxu3  ;;  %v1094_v59 = vadd.f32 %v1093_v49, %v1080_v57 }
  0xd1   :  { %v1108_v0 = vadd.f32 %v1107_v55, %v1094_v59 }
  0xde   :  { %v1119_v50 = vpop.f32.mrf.mxu0 }
  0xdf   :  { %v1133_v52 = vpop.f32.mrf.mxu1  ;;  %v1120_v1 = vadd.f32 %v1119_v50, %v1106_v61 }
  0xe1   :  { %v1134_v3 = vadd.f32 %v1133_v52, %v1120_v1 }
  0xe6   :  { %v1147_v58 = vpop.f32.mrf.mxu2  ;;  %v1121_v60 = vpop.f32.mrf.mxu0 }
  0xe7   :  { %v1135_v62 = vpop.f32.mrf.mxu1  ;;  %v1161_v63 = vpop.f32.mrf.mxu3  ;;  %v1122_v2 = vadd.f32 %v1121_v60, %v1108_v0  ;;  %v1148_v6 = vadd.f32 %v1147_v58, %v1134_v3 }
  0xe9   :  { %v1136_v7 = vadd.f32 %v1135_v62, %v1122_v2  ;;  %v1162_v11 = vadd.f32 %v1161_v63, %v1148_v6 }
  0xee   :  { %v1149_v4 = vpop.f32.mrf.mxu2 }
  0xef   :  { %v1150_v9 = vadd.f32 %v1149_v4, %v1136_v7  ;;  %v1163_v10 = vpop.f32.mrf.mxu3 }
  0xf1   :  { %v1164_v12 = vadd.f32 %v1163_v10, %v1150_v9 }
  0xfe   :  { %v1175_v5 = vpop.f32.mrf.mxu0 }
  0xff   :  { %v1189_v8 = vpop.f32.mrf.mxu1  ;;  %v1176_v13 = vadd.f32 %v1175_v5, %v1162_v11 }
 0x101   :  { %v1190_v17 = vadd.f32 %v1189_v8, %v1176_v13 }
 0x106   :  { %v1177_v14 = vpop.f32.mrf.mxu0 }
 0x107   :  { %v1178_v15 = vadd.f32 %v1177_v14, %v1164_v12  ;;  %v1191_v16 = vpop.f32.mrf.mxu1 }
 0x109   :  { %v1192_v18 = vadd.f32 %v1191_v16, %v1178_v15 }
 0x10b   :  { %v1835_v19 = vpack.c.bf16 %v1192_v18, %v1190_v17 }
 0x10d   :  { %1836 = vst [vmem:[%s2287_s3] sm:$0xff] %v1835_v19  }

// kernel: _lambda_.22
= control target key start
LH: loop header
LB: loop body
LE: loop exit
PB: predicated region body
PF: predicated region fallthrough
CT: control target
= control target key end

     0   :  { %s2625_s1 = inlined_call_operand.vmem [shape: bf16[1024,256], index: 1, kind: input, shape index: {}]   ;;  %s2626_s0 = inlined_call_operand.vmem [shape: bf16[16,1024], index: 0, kind: input, shape index: {}]   ;;  %s2627_s2 = inlined_call_operand.vmem [shape: f32[1,256], index: 2, kind: input, shape index: {}]   ;;  %s2628_s3 = inlined_call_operand.vmem [shape: bf16[16,256], index: 3, kind: output, shape index: {}]  }
   0x1   :  { %v1158_v0 = vld [vmem:[%s2625_s1 + $0x70] sm:$0xf]  ;;  %v1635_v1 = vld [vmem:[%s2625_s1 + $0x74] sm:$0xf0]  ;;  %v1150_v11 = vld [vmem:[%s2625_s1 + $0x60] sm:$0xf] }
   0x2   :  { %v1222_v2 = vld [vmem:[%s2625_s1 + $0xf0] sm:$0xf]  ;;  %v1159_v3 = vor.u32 %v1635_v1, %v1158_v0  ;;  %v1651_v4 = vld [vmem:[%s2625_s1 + $0xf4] sm:$0xf0]  ;;  %v1633_v13 = vld [vmem:[%s2625_s1 + $0x64] sm:$0xf0] }
   0x3   :  { %v1286_v5 = vld [vmem:[%s2625_s1 + $0x170] sm:$0xf]  ;;  %v1667_v6 = vld [vmem:[%s2625_s1 + $0x174] sm:$0xf0]  ;;  %v1223_v7 = vor.u32 %v1651_v4, %v1222_v2  ;;  %v1214_v14 = vld [vmem:[%s2625_s1 + $0xe0] sm:$0xf]  ;;  %v1151_v16 = vor.u32 %v1633_v13, %v1150_v11 }
   0x4   :  { %v1287_v8 = vor.u32 %v1667_v6, %v1286_v5  ;;  %v1350_v9 = vld [vmem:[%s2625_s1 + $0x1f0] sm:$0xf]  ;;  %v1683_v10 = vld [vmem:[%s2625_s1 + $0x1f4] sm:$0xf0]  ;;  %836 = vmatpush.bf16.msra.mxu0 %v1159_v3  ;;  %v1649_v15 = vld [vmem:[%s2625_s1 + $0xe4] sm:$0xf0] }
   0x5   :  { %v1351_v12 = vor.u32 %v1683_v10, %v1350_v9  ;;  %850 = vmatpush.bf16.msra.mxu1 %v1223_v7  ;;  %v1215_v17 = vor.u32 %v1649_v15, %v1214_v14  ;;  %v1278_v18 = vld [vmem:[%s2625_s1 + $0x160] sm:$0xf]  ;;  %v1665_v19 = vld [vmem:[%s2625_s1 + $0x164] sm:$0xf0]  ;;  %v1142_v23 = vld [vmem:[%s2625_s1 + $0x50] sm:$0xf] }
   0x6   :  { %864 = vmatpush.bf16.msra.mxu2 %v1287_v8  ;;  %v1342_v20 = vld [vmem:[%s2625_s1 + $0x1e0] sm:$0xf]  ;;  %v1279_v21 = vor.u32 %v1665_v19, %v1278_v18  ;;  %v1681_v22 = vld [vmem:[%s2625_s1 + $0x1e4] sm:$0xf0]  ;;  %v1631_v24 = vld [vmem:[%s2625_s1 + $0x54] sm:$0xf0] }
   0x7   :  { %878 = vmatpush.bf16.msra.mxu3 %v1351_v12  ;;  %v1343_v25 = vor.u32 %v1681_v22, %v1342_v20  ;;  %v1206_v26 = vld [vmem:[%s2625_s1 + $0xd0] sm:$0xf]  ;;  %v1647_v27 = vld [vmem:[%s2625_s1 + $0xd4] sm:$0xf0]  ;;  %v1143_v29 = vor.u32 %v1631_v24, %v1142_v23  ;;  %v1134_v35 = vld [vmem:[%s2625_s1 + $0x40] sm:$0xf] }
   0x8   :  { %v1270_v28 = vld [vmem:[%s2625_s1 + $0x150] sm:$0xf]  ;;  %837 = vmatpush.bf16.msra.mxu0 %v1151_v16  ;;  %v1663_v30 = vld [vmem:[%s2625_s1 + $0x154] sm:$0xf0]  ;;  %v1207_v33 = vor.u32 %v1647_v27, %v1206_v26  ;;  %v1629_v36 = vld [vmem:[%s2625_s1 + $0x44] sm:$0xf0] }
   0x9   :  { %v1334_v31 = vld [vmem:[%s2625_s1 + $0x1d0] sm:$0xf]  ;;  %v1679_v32 = vld [vmem:[%s2625_s1 + $0x1d4] sm:$0xf0]  ;;  %851 = vmatpush.bf16.msra.mxu1 %v1215_v17  ;;  %v1271_v34 = vor.u32 %v1663_v30, %v1270_v28  ;;  %v1198_v37 = vld [vmem:[%s2625_s1 + $0xc0] sm:$0xf]  ;;  %v1135_v44 = vor.u32 %v1629_v36, %v1134_v35 }
   0xa   :  { %865 = vmatpush.bf16.msra.mxu2 %v1279_v21  ;;  %v1335_v38 = vor.u32 %v1679_v32, %v1334_v31  ;;  %v1645_v39 = vld [vmem:[%s2625_s1 + $0xc4] sm:$0xf0]  ;;  %v1262_v40 = vld [vmem:[%s2625_s1 + $0x140] sm:$0xf]  ;;  %v1126_v47 = vld [vmem:[%s2625_s1 + $0x30] sm:$0xf] }
   0xb   :  { %879 = vmatpush.bf16.msra.mxu3 %v1343_v25  ;;  %v1661_v41 = vld [vmem:[%s2625_s1 + $0x144] sm:$0xf0]  ;;  %v1326_v42 = vld [vmem:[%s2625_s1 + $0x1c0] sm:$0xf]  ;;  %v1199_v45 = vor.u32 %v1645_v39, %v1198_v37  ;;  %v1627_v48 = vld [vmem:[%s2625_s1 + $0x34] sm:$0xf0] }
   0xc   :  { %v1677_v43 = vld [vmem:[%s2625_s1 + $0x1c4] sm:$0xf0]  ;;  %838 = vmatpush.bf16.msra.mxu0 %v1143_v29  ;;  %v1263_v46 = vor.u32 %v1661_v41, %v1262_v40  ;;  %v1190_v49 = vld [vmem:[%s2625_s1 + $0xb0] sm:$0xf]  ;;  %v1643_v51 = vld [vmem:[%s2625_s1 + $0xb4] sm:$0xf0]  ;;  %v1127_v56 = vor.u32 %v1627_v48, %v1126_v47 }
   0xd   :  { %852 = vmatpush.bf16.msra.mxu1 %v1207_v33  ;;  %v1327_v50 = vor.u32 %v1677_v43, %v1326_v42  ;;  %v1254_v52 = vld [vmem:[%s2625_s1 + $0x130] sm:$0xf]  ;;  %v1659_v53 = vld [vmem:[%s2625_s1 + $0x134] sm:$0xf0]  ;;  %v1191_v57 = vor.u32 %v1643_v51, %v1190_v49  ;;  %v1118_v59 = vld [vmem:[%s2625_s1 + $0x20] sm:$0xf] }
   0xe   :  { %866 = vmatpush.bf16.msra.mxu2 %v1271_v34  ;;  %v1318_v54 = vld [vmem:[%s2625_s1 + $0x1b0] sm:$0xf]  ;;  %v1675_v55 = vld [vmem:[%s2625_s1 + $0x1b4] sm:$0xf0]  ;;  %v1255_v58 = vor.u32 %v1659_v53, %v1254_v52  ;;  %v1625_v60 = vld [vmem:[%s2625_s1 + $0x24] sm:$0xf0] }
   0xf   :  { %880 = vmatpush.bf16.msra.mxu3 %v1335_v38  ;;  %v1182_v61 = vld [vmem:[%s2625_s1 + $0xa0] sm:$0xf]  ;;  %v1319_v62 = vor.u32 %v1675_v55, %v1318_v54  ;;  %v1641_v63 = vld [vmem:[%s2625_s1 + $0xa4] sm:$0xf0]  ;;  %v1119_v4 = vor.u32 %v1625_v60, %v1118_v59  ;;  %v1110_v7 = vld [vmem:[%s2625_s1 + $0x10] sm:$0xf] }
  0x10   :  { %839 = vmatpush.bf16.msra.mxu0 %v1135_v44  ;;  %v1246_v0 = vld [vmem:[%s2625_s1 + $0x120] sm:$0xf]  ;;  %v1657_v1 = vld [vmem:[%s2625_s1 + $0x124] sm:$0xf0]  ;;  %v1183_v5 = vor.u32 %v1641_v63, %v1182_v61  ;;  %v1623_v8 = vld [vmem:[%s2625_s1 + $0x14] sm:$0xf0] }
  0x11   :  { %853 = vmatpush.bf16.msra.mxu1 %v1199_v45  ;;  %v1310_v2 = vld [vmem:[%s2625_s1 + $0x1a0] sm:$0xf]  ;;  %v1673_v3 = vld [vmem:[%s2625_s1 + $0x1a4] sm:$0xf0]  ;;  %v1247_v6 = vor.u32 %v1657_v1, %v1246_v0  ;;  %v1174_v9 = vld [vmem:[%s2625_s1 + $0x90] sm:$0xf]  ;;  %v1111_v16 = vor.u32 %v1623_v8, %v1110_v7 }
  0x12   :  { %867 = vmatpush.bf16.msra.mxu2 %v1263_v46  ;;  %v1311_v10 = vor.u32 %v1673_v3, %v1310_v2  ;;  %v1639_v11 = vld [vmem:[%s2625_s1 + $0x94] sm:$0xf0]  ;;  %v1238_v12 = vld [vmem:[%s2625_s1 + $0x110] sm:$0xf]  ;;  %v1102_v17 = vld [vmem:[%s2625_s1] sm:$0xf] }
  0x13   :  { %881 = vmatpush.bf16.msra.mxu3 %v1327_v50  ;;  %v1655_v13 = vld [vmem:[%s2625_s1 + $0x114] sm:$0xf0]  ;;  %v1302_v14 = vld [vmem:[%s2625_s1 + $0x190] sm:$0xf]  ;;  %v1621_v18 = vld [vmem:[%s2625_s1 + $0x4] sm:$0xf0]  ;;  %v1175_v19 = vor.u32 %v1639_v11, %v1174_v9 }
  0x14   :  { %840 = vmatpush.bf16.msra.mxu0 %v1127_v56  ;;  %v1671_v15 = vld [vmem:[%s2625_s1 + $0x194] sm:$0xf0]  ;;  %v1239_v20 = vor.u32 %v1655_v13, %v1238_v12  ;;  %v1166_v21 = vld [vmem:[%s2625_s1 + $0x80] sm:$0xf]  ;;  %v1637_v22 = vld [vmem:[%s2625_s1 + $0x84] sm:$0xf0]  ;;  %v1103_v31 = vor.u32 %v1621_v18, %v1102_v17 }
  0x15   :  { %854 = vmatpush.bf16.msra.mxu1 %v1191_v57  ;;  %v1230_v23 = vld [vmem:[%s2625_s1 + $0x100] sm:$0xf]  ;;  %v1303_v24 = vor.u32 %v1671_v15, %v1302_v14  ;;  %v1653_v25 = vld [vmem:[%s2625_s1 + $0x104] sm:$0xf0]  ;;  %v1414_v28 = vld [vmem:[%s2625_s1 + $0x270] sm:$0xf]  ;;  %v1167_v35 = vor.u32 %v1637_v22, %v1166_v21 }
  0x16   :  { %868 = vmatpush.bf16.msra.mxu2 %v1255_v58  ;;  %v1294_v26 = vld [vmem:[%s2625_s1 + $0x180] sm:$0xf]  ;;  %v1669_v27 = vld [vmem:[%s2625_s1 + $0x184] sm:$0xf0]  ;;  %v1699_v29 = vld [vmem:[%s2625_s1 + $0x274] sm:$0xf0]  ;;  %v1231_v36 = vor.u32 %v1653_v25, %v1230_v23 }
  0x17   :  { %882 = vmatpush.bf16.msra.mxu3 %v1319_v62  ;;  %v1478_v30 = vld [vmem:[%s2625_s1 + $0x2f0] sm:$0xf]  ;;  %v1715_v32 = vld [vmem:[%s2625_s1 + $0x2f4] sm:$0xf0]  ;;  %v1295_v39 = vor.u32 %v1669_v27, %v1294_v26  ;;  %v1415_v40 = vor.u32 %v1699_v29, %v1414_v28  ;;  %v1406_v41 = vld [vmem:[%s2625_s1 + $0x260] sm:$0xf] }
  0x18   :  { %841 = vmatpush.bf16.msra.mxu0 %v1119_v4  ;;  %v1542_v33 = vld [vmem:[%s2625_s1 + $0x370] sm:$0xf]  ;;  %v1731_v34 = vld [vmem:[%s2625_s1 + $0x374] sm:$0xf0]  ;;  %v1697_v42 = vld [vmem:[%s2625_s1 + $0x264] sm:$0xf0]  ;;  %v1479_v43 = vor.u32 %v1715_v32, %v1478_v30 }
  0x19   :  { %855 = vmatpush.bf16.msra.mxu1 %v1183_v5  ;;  %v1606_v37 = vld [vmem:[%s2625_s1 + $0x3f0] sm:$0xf]  ;;  %v1747_v38 = vld [vmem:[%s2625_s1 + $0x3f4] sm:$0xf0]  ;;  %v1543_v44 = vor.u32 %v1731_v34, %v1542_v33  ;;  %v1470_v45 = vld [vmem:[%s2625_s1 + $0x2e0] sm:$0xf]  ;;  %v1407_v55 = vor.u32 %v1697_v42, %v1406_v41 }
  0x1a   :  { %869 = vmatpush.bf16.msra.mxu2 %v1247_v6  ;;  %v1713_v46 = vld [vmem:[%s2625_s1 + $0x2e4] sm:$0xf0]  ;;  %v1534_v47 = vld [vmem:[%s2625_s1 + $0x360] sm:$0xf]  ;;  %v1607_v48 = vor.u32 %v1747_v38, %v1606_v37  ;;  %v1398_v56 = vld [vmem:[%s2625_s1 + $0x250] sm:$0xf] }
  0x1b   :  { %883 = vmatpush.bf16.msra.mxu3 %v1311_v10  ;;  %v1729_v49 = vld [vmem:[%s2625_s1 + $0x364] sm:$0xf0]  ;;  %v1598_v50 = vld [vmem:[%s2625_s1 + $0x3e0] sm:$0xf]  ;;  %v1695_v57 = vld [vmem:[%s2625_s1 + $0x254] sm:$0xf0]  ;;  %v1471_v60 = vor.u32 %v1713_v46, %v1470_v45 }
  0x1c   :  { %842 = vmatpush.bf16.msra.mxu0 %v1111_v16  ;;  %v1745_v51 = vld [vmem:[%s2625_s1 + $0x3e4] sm:$0xf0]  ;;  %v1070_v52 = vld [vmem:[%s2626_s0] sm:$0xf]  ;;  %v1535_v61 = vor.u32 %v1729_v49, %v1534_v47  ;;  %v1462_v62 = vld [vmem:[%s2625_s1 + $0x2d0] sm:$0xf]  ;;  %v1399_v9 = vor.u32 %v1695_v57, %v1398_v56 }
  0x1d   :  { %856 = vmatpush.bf16.msra.mxu1 %v1175_v19  ;;  %v1616_v53 = vld [vmem:[%s2626_s0 + $0x1c] sm:$0xf0]  ;;  %v1078_v54 = vld [vmem:[%s2626_s0 + $0x8] sm:$0xf]  ;;  %v1711_v63 = vld [vmem:[%s2625_s1 + $0x2d4] sm:$0xf0]  ;;  %v1599_v2 = vor.u32 %v1745_v51, %v1598_v50 }
  0x1e   :  { %870 = vmatpush.bf16.msra.mxu2 %v1239_v20  ;;  %v2023_v58 = vor.u32 %v1616_v53, %v1070_v52  ;;  %v1617_v59 = vld [vmem:[%s2626_s0 + $0x24] sm:$0xf0]  ;;  %v1526_v0 = vld [vmem:[%s2625_s1 + $0x350] sm:$0xf]  ;;  %v1727_v3 = vld [vmem:[%s2625_s1 + $0x354] sm:$0xf0]  ;;  %v1463_v12 = vor.u32 %v1711_v63, %v1462_v62 }
  0x1f   :  { %884 = vmatpush.bf16.msra.mxu3 %v1303_v24  ;;  %v2037_v1 = vor.u32 %v1617_v59, %v1078_v54  ;;  %v1590_v4 = vld [vmem:[%s2625_s1 + $0x3d0] sm:$0xf]  ;;  %v1743_v5 = vld [vmem:[%s2625_s1 + $0x3d4] sm:$0xf0]  ;;  %v1612_v6 = vld [vmem:[%s2626_s0 + $0x4] sm:$0xf]  ;;  %v1527_v13 = vor.u32 %v1727_v3, %v1526_v0 }
  0x20   :  { %843 = vmatpush.bf16.msra.mxu0 %v1103_v31  ;;  %v1072_v7 = vld [vmem:[%s2626_s0 + $0x20] sm:$0xf0]  ;;  %v1613_v8 = vld [vmem:[%s2626_s0 + $0xc] sm:$0xf]  ;;  %v1390_v14 = vld [vmem:[%s2625_s1 + $0x240] sm:$0xf]  ;;  %v1591_v18 = vor.u32 %v1743_v5, %v1590_v4 }
  0x21   :  { %857 = vmatpush.bf16.msra.mxu1 %v1167_v35  ;;  %v2059_v10 = vor.u32 %v1612_v6, %v1072_v7  ;;  %v1080_v11 = vld [vmem:[%s2626_s0 + $0x28] sm:$0xf0]  ;;  %v1693_v15 = vld [vmem:[%s2625_s1 + $0x244] sm:$0xf0]  ;;  %v1454_v16 = vld [vmem:[%s2625_s1 + $0x2c0] sm:$0xf] }
  0x22   :  { %871 = vmatpush.bf16.msra.mxu2 %v1231_v36  ;;  %v2073_v17 = vor.u32 %v1613_v8, %v1080_v11  ;;  %v1709_v19 = vld [vmem:[%s2625_s1 + $0x2c4] sm:$0xf0]  ;;  %v1518_v20 = vld [vmem:[%s2625_s1 + $0x340] sm:$0xf]  ;;  %v1391_v24 = vor.u32 %v1693_v15, %v1390_v14  ;;  %v1382_v27 = vld [vmem:[%s2625_s1 + $0x230] sm:$0xf] }
  0x23   :  { %885 = vmatpush.bf16.msra.mxu3 %v1295_v39  ;;  %844 = vmatmul.bf16.vlgmr.msra.gmra.mxu0 %v2023_v58  ;;  %v1725_v21 = vld [vmem:[%s2625_s1 + $0x344] sm:$0xf0]  ;;  %v1582_v22 = vld [vmem:[%s2625_s1 + $0x3c0] sm:$0xf]  ;;  %v1455_v25 = vor.u32 %v1709_v19, %v1454_v16  ;;  %v1691_v28 = vld [vmem:[%s2625_s1 + $0x234] sm:$0xf0] }
  0x24   :  { %892 = vmatpush.bf16.msrb.mxu0 %v1415_v40  ;;  %858 = vmatmul.bf16.vlgmr.msra.gmra.mxu1 %v2059_v10  ;;  %v1741_v23 = vld [vmem:[%s2625_s1 + $0x3c4] sm:$0xf0]  ;;  %v1519_v26 = vor.u32 %v1725_v21, %v1518_v20  ;;  %v1446_v29 = vld [vmem:[%s2625_s1 + $0x2b0] sm:$0xf]  ;;  %v1707_v31 = vld [vmem:[%s2625_s1 + $0x2b4] sm:$0xf0]  ;;  %v1383_v36 = vor.u32 %v1691_v28, %v1382_v27 }
  0x25   :  { %906 = vmatpush.bf16.msrb.mxu1 %v1479_v43  ;;  %872 = vmatmul.bf16.vlgmr.msra.gmra.mxu2 %v2037_v1  ;;  %v1583_v30 = vor.u32 %v1741_v23, %v1582_v22  ;;  %v1510_v32 = vld [vmem:[%s2625_s1 + $0x330] sm:$0xf]  ;;  %v1723_v33 = vld [vmem:[%s2625_s1 + $0x334] sm:$0xf0]  ;;  %v1447_v37 = vor.u32 %v1707_v31, %v1446_v29  ;;  %v1374_v39 = vld [vmem:[%s2625_s1 + $0x220] sm:$0xf] }
  0x26   :  { %920 = vmatpush.bf16.msrb.mxu2 %v1543_v44  ;;  %886 = vmatmul.bf16.vlgmr.msra.gmra.mxu3 %v2073_v17  ;;  %v1574_v34 = vld [vmem:[%s2625_s1 + $0x3b0] sm:$0xf]  ;;  %v1739_v35 = vld [vmem:[%s2625_s1 + $0x3b4] sm:$0xf0]  ;;  %v1511_v38 = vor.u32 %v1723_v33, %v1510_v32  ;;  %v1689_v40 = vld [vmem:[%s2625_s1 + $0x224] sm:$0xf0] }
  0x27   :  { %934 = vmatpush.bf16.msrb.mxu3 %v1607_v48  ;;  %v1438_v41 = vld [vmem:[%s2625_s1 + $0x2a0] sm:$0xf]  ;;  %v1575_v42 = vor.u32 %v1739_v35, %v1574_v34  ;;  %v1705_v43 = vld [vmem:[%s2625_s1 + $0x2a4] sm:$0xf0]  ;;  %v1375_v48 = vor.u32 %v1689_v40, %v1374_v39  ;;  %v1366_v49 = vld [vmem:[%s2625_s1 + $0x210] sm:$0xf] }
  0x28   :  { %893 = vmatpush.bf16.msrb.mxu0 %v1407_v55  ;;  %v1502_v44 = vld [vmem:[%s2625_s1 + $0x320] sm:$0xf]  ;;  %v1721_v45 = vld [vmem:[%s2625_s1 + $0x324] sm:$0xf0]  ;;  %v1439_v50 = vor.u32 %v1705_v43, %v1438_v41  ;;  %v1687_v52 = vld [vmem:[%s2625_s1 + $0x214] sm:$0xf0] }
  0x29   :  { %907 = vmatpush.bf16.msrb.mxu1 %v1471_v60  ;;  %v1566_v46 = vld [vmem:[%s2625_s1 + $0x3a0] sm:$0xf]  ;;  %v1737_v47 = vld [vmem:[%s2625_s1 + $0x3a4] sm:$0xf0]  ;;  %v1503_v51 = vor.u32 %v1721_v45, %v1502_v44  ;;  %v1430_v53 = vld [vmem:[%s2625_s1 + $0x290] sm:$0xf]  ;;  %v1367_v63 = vor.u32 %v1687_v52, %v1366_v49 }
  0x2a   :  { %921 = vmatpush.bf16.msrb.mxu2 %v1535_v61  ;;  %v1703_v54 = vld [vmem:[%s2625_s1 + $0x294] sm:$0xf0]  ;;  %v1567_v55 = vor.u32 %v1737_v47, %v1566_v46  ;;  %v1494_v56 = vld [vmem:[%s2625_s1 + $0x310] sm:$0xf]  ;;  %v1358_v61 = vld [vmem:[%s2625_s1 + $0x200] sm:$0xf] }
  0x2b   :  { %935 = vmatpush.bf16.msrb.mxu3 %v1599_v2  ;;  %v1719_v57 = vld [vmem:[%s2625_s1 + $0x314] sm:$0xf0]  ;;  %v1558_v59 = vld [vmem:[%s2625_s1 + $0x390] sm:$0xf]  ;;  %v1685_v62 = vld [vmem:[%s2625_s1 + $0x204] sm:$0xf0]  ;;  %v1431_v5 = vor.u32 %v1703_v54, %v1430_v53 }
  0x2c   :  { %894 = vmatpush.bf16.msrb.mxu0 %v1399_v9  ;;  %v1735_v60 = vld [vmem:[%s2625_s1 + $0x394] sm:$0xf0]  ;;  %v1422_v0 = vld [vmem:[%s2625_s1 + $0x280] sm:$0xf]  ;;  %v1701_v2 = vld [vmem:[%s2625_s1 + $0x284] sm:$0xf0]  ;;  %v1495_v6 = vor.u32 %v1719_v57, %v1494_v56  ;;  %v1359_v19 = vor.u32 %v1685_v62, %v1358_v61 }
  0x2d   :  { %908 = vmatpush.bf16.msrb.mxu1 %v1463_v12  ;;  %v1486_v3 = vld [vmem:[%s2625_s1 + $0x300] sm:$0xf]  ;;  %v1717_v4 = vld [vmem:[%s2625_s1 + $0x304] sm:$0xf0]  ;;  %v1634_v9 = vld [vmem:[%s2625_s1 + $0x74] sm:$0xf]  ;;  %v1559_v11 = vor.u32 %v1735_v60, %v1558_v59  ;;  %v1423_v23 = vor.u32 %v1701_v2, %v1422_v0 }
  0x2e   :  { %922 = vmatpush.bf16.msrb.mxu2 %v1527_v13  ;;  %v1550_v7 = vld [vmem:[%s2625_s1 + $0x380] sm:$0xf]  ;;  %v1733_v8 = vld [vmem:[%s2625_s1 + $0x384] sm:$0xf0]  ;;  %v1160_v12 = vld [vmem:[%s2625_s1 + $0x78] sm:$0xf0] }
  0x2f   :  { %936 = vmatpush.bf16.msrb.mxu3 %v1591_v18  ;;  %v1650_v13 = vld [vmem:[%s2625_s1 + $0xf4] sm:$0xf]  ;;  %v1224_v14 = vld [vmem:[%s2625_s1 + $0xf8] sm:$0xf0]  ;;  %v1086_v21 = vld [vmem:[%s2626_s0 + $0x10] sm:$0xf]  ;;  %v1551_v28 = vor.u32 %v1733_v8, %v1550_v7  ;;  %v1163_v29 = vor.u32 %v1634_v9, %v1160_v12 }
  0x30   :  { %895 = vmatpush.bf16.msrb.mxu0 %v1391_v24  ;;  %v1666_v15 = vld [vmem:[%s2625_s1 + $0x174] sm:$0xf]  ;;  %v1288_v16 = vld [vmem:[%s2625_s1 + $0x178] sm:$0xf0]  ;;  %v1618_v22 = vld [vmem:[%s2626_s0 + $0x2c] sm:$0xf0]  ;;  %v1487_v24 = vor.u32 %v1717_v4, %v1486_v3  ;;  %v1227_v33 = vor.u32 %v1650_v13, %v1224_v14 }
  0x31   :  { %909 = vmatpush.bf16.msrb.mxu1 %v1455_v25  ;;  %v1682_v18 = vld [vmem:[%s2625_s1 + $0x1f4] sm:$0xf]  ;;  %v1352_v20 = vld [vmem:[%s2625_s1 + $0x1f8] sm:$0xf0]  ;;  %v1094_v25 = vld [vmem:[%s2626_s0 + $0x18] sm:$0xf]  ;;  %v1291_v34 = vor.u32 %v1666_v15, %v1288_v16  ;;  %v2245_v39 = vor.u32 %v1618_v22, %v1086_v21 }
  0x32   :  { %923 = vmatpush.bf16.msrb.mxu2 %v1519_v26  ;;  %v1619_v26 = vld [vmem:[%s2626_s0 + $0x34] sm:$0xf0]  ;;  %v1614_v27 = vld [vmem:[%s2626_s0 + $0x14] sm:$0xf]  ;;  %v1615_v31 = vld [vmem:[%s2626_s0 + $0x1c] sm:$0xf] }
  0x33   :  { %937 = vmatpush.bf16.msrb.mxu3 %v1583_v30  ;;  %v1088_v30 = vld [vmem:[%s2626_s0 + $0x30] sm:$0xf0]  ;;  %v1096_v32 = vld [vmem:[%s2626_s0 + $0x38] sm:$0xf0]  ;;  %v1632_v35 = vld [vmem:[%s2625_s1 + $0x64] sm:$0xf]  ;;  %v2256_v43 = vor.u32 %v1619_v26, %v1094_v25 }
  0x34   :  { %896 = vmatpush.bf16.msrb.mxu0 %v1383_v36  ;;  %v1152_v36 = vld [vmem:[%s2625_s1 + $0x68] sm:$0xf0]  ;;  %v1664_v41 = vld [vmem:[%s2625_s1 + $0x164] sm:$0xf]  ;;  %v2258_v44 = vor.u32 %v1614_v27, %v1088_v30  ;;  %v2266_v47 = vor.u32 %v1615_v31, %v1096_v32  ;;  %v1144_v52 = vld [vmem:[%s2625_s1 + $0x58] sm:$0xf0] }
  0x35   :  { %910 = vmatpush.bf16.msrb.mxu1 %v1447_v37  ;;  %v1648_v37 = vld [vmem:[%s2625_s1 + $0xe4] sm:$0xf]  ;;  %v1216_v40 = vld [vmem:[%s2625_s1 + $0xe8] sm:$0xf0]  ;;  %v1646_v53 = vld [vmem:[%s2625_s1 + $0xd4] sm:$0xf] }
  0x36   :  { %924 = vmatpush.bf16.msrb.mxu2 %v1511_v38  ;;  %v1355_v38 = vor.u32 %v1682_v18, %v1352_v20  ;;  %v1680_v45 = vld [vmem:[%s2625_s1 + $0x1e4] sm:$0xf]  ;;  %v1344_v46 = vld [vmem:[%s2625_s1 + $0x1e8] sm:$0xf0]  ;;  %v1219_v49 = vor.u32 %v1648_v37, %v1216_v40  ;;  %v1662_v56 = vld [vmem:[%s2625_s1 + $0x154] sm:$0xf] }
  0x37   :  { %938 = vmatpush.bf16.msrb.mxu3 %v1575_v42  ;;  %v1280_v42 = vld [vmem:[%s2625_s1 + $0x168] sm:$0xf0]  ;;  %v1347_v54 = vor.u32 %v1680_v45, %v1344_v46  ;;  %v1272_v57 = vld [vmem:[%s2625_s1 + $0x158] sm:$0xf0]  ;;  %v1678_v59 = vld [vmem:[%s2625_s1 + $0x1d4] sm:$0xf] }
  0x38   :  { %897 = vmatpush.bf16.msrb.mxu0 %v1375_v48  ;;  %v1155_v48 = vor.u32 %v1632_v35, %v1152_v36  ;;  %v1336_v60 = vld [vmem:[%s2625_s1 + $0x1d8] sm:$0xf0]  ;;  %v1628_v0 = vld [vmem:[%s2625_s1 + $0x44] sm:$0xf]  ;;  %v1136_v2 = vld [vmem:[%s2625_s1 + $0x48] sm:$0xf0] }
  0x39   :  { %911 = vmatpush.bf16.msrb.mxu1 %v1439_v50  ;;  %v1283_v50 = vor.u32 %v1664_v41, %v1280_v42  ;;  %v1644_v3 = vld [vmem:[%s2625_s1 + $0xc4] sm:$0xf]  ;;  %v1339_v4 = vor.u32 %v1678_v59, %v1336_v60  ;;  %v1264_v7 = vld [vmem:[%s2625_s1 + $0x148] sm:$0xf0]  ;;  %v1626_v14 = vld [vmem:[%s2625_s1 + $0x34] sm:$0xf] }
  0x3a   :  { %925 = vmatpush.bf16.msrb.mxu2 %v1503_v51  ;;  %v1630_v51 = vld [vmem:[%s2625_s1 + $0x54] sm:$0xf]  ;;  %v1676_v8 = vld [vmem:[%s2625_s1 + $0x1c4] sm:$0xf]  ;;  %v1328_v9 = vld [vmem:[%s2625_s1 + $0x1c8] sm:$0xf0] }
  0x3b   :  { %939 = vmatpush.bf16.msrb.mxu3 %v1567_v55  ;;  %v1208_v55 = vld [vmem:[%s2625_s1 + $0xd8] sm:$0xf0]  ;;  %v1147_v61 = vor.u32 %v1630_v51, %v1144_v52  ;;  %v1642_v16 = vld [vmem:[%s2625_s1 + $0xb4] sm:$0xf]  ;;  %v1331_v18 = vor.u32 %v1676_v8, %v1328_v9  ;;  %v1624_v27 = vld [vmem:[%s2625_s1 + $0x24] sm:$0xf] }
  0x3c   :  { %898 = vmatpush.bf16.msrb.mxu0 %v1367_v63  ;;  %v1211_v62 = vor.u32 %v1646_v53, %v1208_v55  ;;  %v1275_v63 = vor.u32 %v1662_v56, %v1272_v57  ;;  %v1128_v15 = vld [vmem:[%s2625_s1 + $0x38] sm:$0xf0]  ;;  %v1658_v20 = vld [vmem:[%s2625_s1 + $0x134] sm:$0xf]  ;;  %v1184_v31 = vld [vmem:[%s2625_s1 + $0xa8] sm:$0xf0] }
  0x3d   :  { %912 = vmatpush.bf16.msrb.mxu1 %v1431_v5  ;;  %v1200_v5 = vld [vmem:[%s2625_s1 + $0xc8] sm:$0xf0]  ;;  %v1256_v21 = vld [vmem:[%s2625_s1 + $0x138] sm:$0xf0]  ;;  %v1674_v22 = vld [vmem:[%s2625_s1 + $0x1b4] sm:$0xf] }
  0x3e   :  { %926 = vmatpush.bf16.msrb.mxu2 %v1495_v6  ;;  %v1660_v6 = vld [vmem:[%s2625_s1 + $0x144] sm:$0xf]  ;;  %v1203_v12 = vor.u32 %v1644_v3, %v1200_v5  ;;  %v1259_v26 = vor.u32 %v1658_v20, %v1256_v21  ;;  %v1312_v35 = vld [vmem:[%s2625_s1 + $0x1a8] sm:$0xf0]  ;;  %v1622_v40 = vld [vmem:[%s2625_s1 + $0x14] sm:$0xf] }
  0x3f   :  { %940 = vmatpush.bf16.msrb.mxu3 %v1559_v11  ;;  %v1139_v11 = vor.u32 %v1628_v0, %v1136_v2  ;;  %v1267_v13 = vor.u32 %v1660_v6, %v1264_v7  ;;  %v1656_v32 = vld [vmem:[%s2625_s1 + $0x124] sm:$0xf]  ;;  %v1112_v41 = vld [vmem:[%s2625_s1 + $0x18] sm:$0xf0]  ;;  %v1638_v42 = vld [vmem:[%s2625_s1 + $0x94] sm:$0xf] }
  0x40   :  { %899 = vmatpush.bf16.msrb.mxu0 %v1359_v19  ;;  %v1192_v19 = vld [vmem:[%s2625_s1 + $0xb8] sm:$0xf0]  ;;  %v1115_v52 = vor.u32 %v1622_v40, %v1112_v41  ;;  %v1620_v53 = vld [vmem:[%s2625_s1 + $0x4] sm:$0xf]  ;;  %v1168_v59 = vld [vmem:[%s2625_s1 + $0x88] sm:$0xf0] }
  0x41   :  { %913 = vmatpush.bf16.msrb.mxu1 %v1423_v23  ;;  %v1320_v23 = vld [vmem:[%s2625_s1 + $0x1b8] sm:$0xf0]  ;;  %v1195_v25 = vor.u32 %v1642_v16, %v1192_v19  ;;  %v1636_v57 = vld [vmem:[%s2625_s1 + $0x84] sm:$0xf]  ;;  %v1296_v0 = vld [vmem:[%s2625_s1 + $0x188] sm:$0xf0] }
  0x42   :  { %927 = vmatpush.bf16.msrb.mxu2 %v1487_v24  ;;  %v1131_v24 = vor.u32 %v1626_v14, %v1128_v15  ;;  %v1323_v30 = vor.u32 %v1674_v22, %v1320_v23  ;;  %v1176_v46 = vld [vmem:[%s2625_s1 + $0x98] sm:$0xf0]  ;;  %v1652_v60 = vld [vmem:[%s2625_s1 + $0x104] sm:$0xf]  ;;  %v1698_v2 = vld [vmem:[%s2625_s1 + $0x274] sm:$0xf]  ;;  %v1171_v9 = vor.u32 %v1636_v57, %v1168_v59 }
  0x43   :  { %941 = vmatpush.bf16.msrb.mxu3 %v1551_v28  ;;  %900 = vmatmul.bf16.vlgmr.msrb.gmra.mxu0 %v2245_v39  ;;  %v1120_v28 = vld [vmem:[%s2625_s1 + $0x28] sm:$0xf0]  ;;  %v1304_v51 = vld [vmem:[%s2625_s1 + $0x198] sm:$0xf0]  ;;  %v1179_v55 = vor.u32 %v1638_v42, %v1176_v46  ;;  %v1730_v7 = vld [vmem:[%s2625_s1 + $0x374] sm:$0xf] }
  0x44   :  { %948 = vmatpush.bf16.msra.mxu0 %v1163_v29  ;;  %914 = vmatmul.bf16.vlgmr.msrb.gmra.mxu1 %v2258_v44  ;;  %v1640_v29 = vld [vmem:[%s2625_s1 + $0xa4] sm:$0xf]  ;;  %v1123_v36 = vor.u32 %v1624_v27, %v1120_v28  ;;  %v1416_v3 = vld [vmem:[%s2625_s1 + $0x278] sm:$0xf0]  ;;  %v1408_v20 = vld [vmem:[%s2625_s1 + $0x268] sm:$0xf0] }
  0x45   :  { %962 = vmatpush.bf16.msra.mxu1 %v1227_v33  ;;  %928 = vmatmul.bf16.vlgmr.msrb.gmra.mxu2 %v2256_v43  ;;  %v1248_v33 = vld [vmem:[%s2625_s1 + $0x128] sm:$0xf0]  ;;  %v1187_v37 = vor.u32 %v1640_v29, %v1184_v31  ;;  %v1480_v6 = vld [vmem:[%s2625_s1 + $0x2f8] sm:$0xf0]  ;;  %v1419_v15 = vor.u32 %v1698_v2, %v1416_v3  ;;  %v1696_v19 = vld [vmem:[%s2625_s1 + $0x264] sm:$0xf] }
  0x46   :  { %976 = vmatpush.bf16.msra.mxu2 %v1291_v34  ;;  %942 = vmatmul.bf16.vlgmr.msrb.gmra.mxu3 %v2266_v47  ;;  %v1672_v34 = vld [vmem:[%s2625_s1 + $0x1a4] sm:$0xf]  ;;  %v1544_v8 = vld [vmem:[%s2625_s1 + $0x378] sm:$0xf0]  ;;  %v1472_v23 = vld [vmem:[%s2625_s1 + $0x2e8] sm:$0xf0]  ;;  %v1411_v28 = vor.u32 %v1696_v19, %v1408_v20 }
  0x47   :  { %990 = vmatpush.bf16.msra.mxu3 %v1355_v38  ;;  %v1251_v38 = vor.u32 %v1656_v32, %v1248_v33  ;;  %v1315_v45 = vor.u32 %v1672_v34, %v1312_v35  ;;  %v1712_v21 = vld [vmem:[%s2625_s1 + $0x2e4] sm:$0xf]  ;;  %v1600_v27 = vld [vmem:[%s2625_s1 + $0x3e8] sm:$0xf0]  ;;  %v1694_v31 = vld [vmem:[%s2625_s1 + $0x254] sm:$0xf] }
  0x48   :  { %949 = vmatpush.bf16.msra.mxu0 %v1155_v48  ;;  %v1654_v48 = vld [vmem:[%s2625_s1 + $0x114] sm:$0xf]  ;;  %v1475_v29 = vor.u32 %v1712_v21, %v1472_v23  ;;  %v1400_v32 = vld [vmem:[%s2625_s1 + $0x258] sm:$0xf0]  ;;  %v1392_v46 = vld [vmem:[%s2625_s1 + $0x248] sm:$0xf0] }
  0x49   :  { %963 = vmatpush.bf16.msra.mxu1 %v1219_v49  ;;  %v1240_v49 = vld [vmem:[%s2625_s1 + $0x118] sm:$0xf0]  ;;  %v1710_v33 = vld [vmem:[%s2625_s1 + $0x2d4] sm:$0xf]  ;;  %v1403_v40 = vor.u32 %v1694_v31, %v1400_v32  ;;  %v1684_v31 = vld [vmem:[%s2625_s1 + $0x204] sm:$0xf] }
  0x4a   :  { %977 = vmatpush.bf16.msra.mxu2 %v1283_v50  ;;  %v1670_v50 = vld [vmem:[%s2625_s1 + $0x194] sm:$0xf]  ;;  %v1243_v56 = vor.u32 %v1654_v48, %v1240_v49  ;;  %v1464_v35 = vld [vmem:[%s2625_s1 + $0x2d8] sm:$0xf0]  ;;  %v1724_v48 = vld [vmem:[%s2625_s1 + $0x344] sm:$0xf] }
  0x4b   :  { %991 = vmatpush.bf16.msra.mxu3 %v1347_v54  ;;  %v1104_v54 = vld [vmem:[%s2625_s1 + $0x8] sm:$0xf0]  ;;  %v1467_v41 = vor.u32 %v1710_v33, %v1464_v35  ;;  %v1706_v57 = vld [vmem:[%s2625_s1 + $0x2b4] sm:$0xf]  ;;  %v1368_v20 = vld [vmem:[%s2625_s1 + $0x218] sm:$0xf0] }
  0x4c   :  { %950 = vmatpush.bf16.msra.mxu0 %v1147_v61  ;;  %v1307_v61 = vor.u32 %v1670_v50, %v1304_v51  ;;  %v1107_v5 = vor.u32 %v1620_v53, %v1104_v54  ;;  %v1520_v49 = vld [vmem:[%s2625_s1 + $0x348] sm:$0xf0]  ;;  %v1740_v50 = vld [vmem:[%s2625_s1 + $0x3c4] sm:$0xf]  ;;  %v1686_v19 = vld [vmem:[%s2625_s1 + $0x214] sm:$0xf] }
  0x4d   :  { %964 = vmatpush.bf16.msra.mxu1 %v1211_v62  ;;  %v1232_v62 = vld [vmem:[%s2625_s1 + $0x108] sm:$0xf0]  ;;  %v1523_v54 = vor.u32 %v1724_v48, %v1520_v49  ;;  %v1702_v21 = vld [vmem:[%s2625_s1 + $0x294] sm:$0xf]  ;;  %v1432_v23 = vld [vmem:[%s2625_s1 + $0x298] sm:$0xf0] }
  0x4e   :  { %978 = vmatpush.bf16.msra.mxu2 %v1275_v63  ;;  %v1668_v63 = vld [vmem:[%s2625_s1 + $0x184] sm:$0xf]  ;;  %v1584_v51 = vld [vmem:[%s2625_s1 + $0x3c8] sm:$0xf0] }
  0x4f   :  { %992 = vmatpush.bf16.msra.mxu3 %v1339_v4  ;;  %v1714_v4 = vld [vmem:[%s2625_s1 + $0x2f4] sm:$0xf]  ;;  %v1299_v14 = vor.u32 %v1668_v63, %v1296_v0  ;;  %v1587_v59 = vor.u32 %v1740_v50, %v1584_v51  ;;  %v1576_v0 = vld [vmem:[%s2625_s1 + $0x3b8] sm:$0xf0]  ;;  %v1360_v32 = vld [vmem:[%s2625_s1 + $0x208] sm:$0xf0] }
  0x50   :  { %951 = vmatpush.bf16.msra.mxu0 %v1139_v11  ;;  %v1235_v11 = vor.u32 %v1652_v60, %v1232_v62  ;;  %v1483_v16 = vor.u32 %v1714_v4, %v1480_v6  ;;  %v1448_v60 = vld [vmem:[%s2625_s1 + $0x2b8] sm:$0xf0]  ;;  %v1738_v63 = vld [vmem:[%s2625_s1 + $0x3b4] sm:$0xf]  ;;  %v1376_v6 = vld [vmem:[%s2625_s1 + $0x228] sm:$0xf0] }
  0x51   :  { %965 = vmatpush.bf16.msra.mxu1 %v1203_v12  ;;  %v1746_v12 = vld [vmem:[%s2625_s1 + $0x3f4] sm:$0xf]  ;;  %v1512_v62 = vld [vmem:[%s2625_s1 + $0x338] sm:$0xf0]  ;;  %v1451_v3 = vor.u32 %v1706_v57, %v1448_v60  ;;  %v1700_v33 = vld [vmem:[%s2625_s1 + $0x284] sm:$0xf] }
  0x52   :  { %979 = vmatpush.bf16.msra.mxu2 %v1267_v13  ;;  %v1608_v13 = vld [vmem:[%s2625_s1 + $0x3f8] sm:$0xf0]  ;;  %v1424_v35 = vld [vmem:[%s2625_s1 + $0x288] sm:$0xf0] }
  0x53   :  { %993 = vmatpush.bf16.msra.mxu3 %v1331_v18  ;;  %v1547_v18 = vor.u32 %v1730_v7, %v1544_v8  ;;  %v1611_v22 = vor.u32 %v1746_v12, %v1608_v13  ;;  %v1704_v7 = vld [vmem:[%s2625_s1 + $0x2a4] sm:$0xf]  ;;  %v1579_v8 = vor.u32 %v1738_v63, %v1576_v0  ;;  %v1504_v12 = vld [vmem:[%s2625_s1 + $0x328] sm:$0xf0] }
  0x54   :  { %952 = vmatpush.bf16.msra.mxu0 %v1131_v24  ;;  %v1728_v24 = vld [vmem:[%s2625_s1 + $0x364] sm:$0xf] }
  0x55   :  { %966 = vmatpush.bf16.msra.mxu1 %v1195_v25  ;;  %v1536_v25 = vld [vmem:[%s2625_s1 + $0x368] sm:$0xf0]  ;;  %v1736_v13 = vld [vmem:[%s2625_s1 + $0x3a4] sm:$0xf] }
  0x56   :  { %980 = vmatpush.bf16.msra.mxu2 %v1259_v26  ;;  %v1744_v26 = vld [vmem:[%s2625_s1 + $0x3e4] sm:$0xf] }
  0x57   :  { %994 = vmatpush.bf16.msra.mxu3 %v1323_v30  ;;  %v1539_v30 = vor.u32 %v1728_v24, %v1536_v25  ;;  %v1603_v34 = vor.u32 %v1744_v26, %v1600_v27  ;;  %v1718_v24 = vld [vmem:[%s2625_s1 + $0x314] sm:$0xf]  ;;  %v1496_v25 = vld [vmem:[%s2625_s1 + $0x318] sm:$0xf0] }
  0x58   :  { %953 = vmatpush.bf16.msra.mxu0 %v1123_v36  ;;  %v1726_v36 = vld [vmem:[%s2625_s1 + $0x354] sm:$0xf]  ;;  %v1560_v27 = vld [vmem:[%s2625_s1 + $0x398] sm:$0xf0] }
  0x59   :  { %967 = vmatpush.bf16.msra.mxu1 %v1187_v37  ;;  %v1528_v37 = vld [vmem:[%s2625_s1 + $0x358] sm:$0xf0]  ;;  %v1734_v26 = vld [vmem:[%s2625_s1 + $0x394] sm:$0xf] }
  0x5a   :  { %981 = vmatpush.bf16.msra.mxu2 %v1251_v38  ;;  %v1742_v38 = vld [vmem:[%s2625_s1 + $0x3d4] sm:$0xf]  ;;  %v1531_v42 = vor.u32 %v1726_v36, %v1528_v37  ;;  %v1716_v36 = vld [vmem:[%s2625_s1 + $0x304] sm:$0xf]  ;;  %v1488_v37 = vld [vmem:[%s2625_s1 + $0x308] sm:$0xf0] }
  0x5b   :  { %995 = vmatpush.bf16.msra.mxu3 %v1315_v45  ;;  %v1692_v45 = vld [vmem:[%s2625_s1 + $0x244] sm:$0xf] }
  0x5c   :  { %954 = vmatpush.bf16.msra.mxu0 %v1115_v52  ;;  %v1395_v52 = vor.u32 %v1692_v45, %v1392_v46 }
  0x5d   :  { %968 = vmatpush.bf16.msra.mxu1 %v1179_v55  ;;  %v1690_v55 = vld [vmem:[%s2625_s1 + $0x234] sm:$0xf] }
  0x5e   :  { %982 = vmatpush.bf16.msra.mxu2 %v1243_v56  ;;  %v1384_v56 = vld [vmem:[%s2625_s1 + $0x238] sm:$0xf0] }
  0x5f   :  { %996 = vmatpush.bf16.msra.mxu3 %v1307_v61  ;;  %v1722_v61 = vld [vmem:[%s2625_s1 + $0x334] sm:$0xf]  ;;  %v1387_v2 = vor.u32 %v1690_v55, %v1384_v56 }
  0x60   :  { %955 = vmatpush.bf16.msra.mxu0 %v1107_v5  ;;  %v1515_v4 = vor.u32 %v1722_v61, %v1512_v62  ;;  %v1688_v5 = vld [vmem:[%s2625_s1 + $0x224] sm:$0xf] }
  0x61   :  { %969 = vmatpush.bf16.msra.mxu1 %v1171_v9  ;;  %v1440_v9 = vld [vmem:[%s2625_s1 + $0x2a8] sm:$0xf0] }
  0x62   :  { %983 = vmatpush.bf16.msra.mxu2 %v1235_v11  ;;  %v1720_v11 = vld [vmem:[%s2625_s1 + $0x324] sm:$0xf] }
  0x63   :  { %997 = vmatpush.bf16.msra.mxu3 %v1299_v14  ;;  %956 = vmatmul.bf16.vlgmr.msra.gmra.mxu0 %v2023_v58  ;;  %v1708_v58 = vld [vmem:[%s2625_s1 + $0x2c4] sm:$0xf]  ;;  %v1568_v14 = vld [vmem:[%s2625_s1 + $0x3a8] sm:$0xf0] }
  0x64   :  { %1004 = vmatpush.bf16.msrb.mxu0 %v1419_v15  ;;  %970 = vmatmul.bf16.vlgmr.msra.gmra.mxu1 %v2059_v10  ;;  %v1456_v10 = vld [vmem:[%s2625_s1 + $0x2c8] sm:$0xf0]  ;;  %v1379_v15 = vor.u32 %v1688_v5, %v1376_v6 }
  0x65   :  { %1018 = vmatpush.bf16.msrb.mxu1 %v1483_v16  ;;  %984 = vmatmul.bf16.vlgmr.msra.gmra.mxu2 %v2037_v1  ;;  %v1592_v1 = vld [vmem:[%s2625_s1 + $0x3d8] sm:$0xf0]  ;;  %v1459_v53 = vor.u32 %v1708_v58, %v1456_v10  ;;  %v1443_v16 = vor.u32 %v1704_v7, %v1440_v9 }
  0x66   :  { %1032 = vmatpush.bf16.msrb.mxu2 %v1547_v18  ;;  %998 = vmatmul.bf16.vlgmr.msra.gmra.mxu3 %v2073_v17  ;;  %v1595_v17 = vor.u32 %v1742_v38, %v1592_v1  ;;  %v1507_v18 = vor.u32 %v1720_v11, %v1504_v12  ;;  %v1732_v38 = vld [vmem:[%s2625_s1 + $0x384] sm:$0xf]  ;;  %v1552_v1 = vld [vmem:[%s2625_s1 + $0x388] sm:$0xf0] }
  0x67   :  { %1046 = vmatpush.bf16.msrb.mxu3 %v1611_v22  ;;  %v1571_v22 = vor.u32 %v1736_v13, %v1568_v14  ;;  %v1555_v45 = vor.u32 %v1732_v38, %v1552_v1 }
  0x68   :  { %1005 = vmatpush.bf16.msrb.mxu0 %v1411_v28  ;;  %v1371_v28 = vor.u32 %v1686_v19, %v1368_v20 }
  0x69   :  { %1019 = vmatpush.bf16.msrb.mxu1 %v1475_v29  ;;  %v1435_v29 = vor.u32 %v1702_v21, %v1432_v23 }
  0x6a   :  { %1033 = vmatpush.bf16.msrb.mxu2 %v1539_v30  ;;  %v1499_v30 = vor.u32 %v1718_v24, %v1496_v25 }
  0x6b   :  { %1047 = vmatpush.bf16.msrb.mxu3 %v1603_v34  ;;  %v1563_v34 = vor.u32 %v1734_v26, %v1560_v27 }
  0x6c   :  { %1006 = vmatpush.bf16.msrb.mxu0 %v1403_v40  ;;  %v1363_v40 = vor.u32 %v1684_v31, %v1360_v32 }
  0x6d   :  { %1020 = vmatpush.bf16.msrb.mxu1 %v1467_v41  ;;  %v1427_v41 = vor.u32 %v1700_v33, %v1424_v35 }
  0x6e   :  { %1034 = vmatpush.bf16.msrb.mxu2 %v1531_v42  ;;  %v1491_v42 = vor.u32 %v1716_v36, %v1488_v37 }
  0x6f   :  { %1048 = vmatpush.bf16.msrb.mxu3 %v1595_v17 }
  0x70   :  { %1007 = vmatpush.bf16.msrb.mxu0 %v1395_v52 }
  0x71   :  { %1021 = vmatpush.bf16.msrb.mxu1 %v1459_v53 }
  0x72   :  { %1035 = vmatpush.bf16.msrb.mxu2 %v1523_v54 }
  0x73   :  { %1049 = vmatpush.bf16.msrb.mxu3 %v1587_v59 }
  0x74   :  { %1008 = vmatpush.bf16.msrb.mxu0 %v1387_v2 }
  0x75   :  { %1022 = vmatpush.bf16.msrb.mxu1 %v1451_v3 }
  0x76   :  { %1036 = vmatpush.bf16.msrb.mxu2 %v1515_v4 }
  0x77   :  { %1050 = vmatpush.bf16.msrb.mxu3 %v1579_v8 }
  0x78   :  { %1009 = vmatpush.bf16.msrb.mxu0 %v1379_v15 }
  0x79   :  { %1023 = vmatpush.bf16.msrb.mxu1 %v1443_v16 }
  0x7a   :  { %1037 = vmatpush.bf16.msrb.mxu2 %v1507_v18 }
  0x7b   :  { %1051 = vmatpush.bf16.msrb.mxu3 %v1571_v22 }
  0x7c   :  { %1010 = vmatpush.bf16.msrb.mxu0 %v1371_v28 }
  0x7d   :  { %1024 = vmatpush.bf16.msrb.mxu1 %v1435_v29 }
  0x7e   :  { %1038 = vmatpush.bf16.msrb.mxu2 %v1499_v30 }
  0x7f   :  { %1052 = vmatpush.bf16.msrb.mxu3 %v1563_v34 }
  0x80   :  { %1011 = vmatpush.bf16.msrb.mxu0 %v1363_v40 }
  0x81   :  { %1025 = vmatpush.bf16.msrb.mxu1 %v1427_v41 }
  0x82   :  { %1039 = vmatpush.bf16.msrb.mxu2 %v1491_v42 }
  0x83   :  { %1053 = vmatpush.bf16.msrb.mxu3 %v1555_v45  ;;  %1012 = vmatmul.bf16.vlgmr.msrb.gmra.mxu0 %v2245_v39  ;;  %v150_v39 = vld [vmem:[%s2627_s2] sm:$0x3] }
  0x84   :  { %1026 = vmatmul.bf16.vlgmr.msrb.gmra.mxu1 %v2258_v44  ;;  %v152_v44 = vperm.slane %v150_v39, 0  ;;  %v153_v61 = vperm.slane %v150_v39, 1 }
  0x85   :  { %1040 = vmatmul.bf16.vlgmr.msrb.gmra.mxu2 %v2256_v43 }
  0x86   :  { %1054 = vmatmul.bf16.vlgmr.msrb.gmra.mxu3 %v2266_v47 }
  0xa0   :  { %v845_v46 = vpop.f32.mrf.mxu0 }
  0xa1   :  { %v859_v58 = vpop.f32.mrf.mxu1  ;;  %v846_v57 = vadd.f32 %v845_v46, %v152_v44 }
  0xa3   :  { %v860_v63 = vadd.f32 %v859_v58, %v846_v57 }
  0xa8   :  { %v873_v17 = vpop.f32.mrf.mxu2  ;;  %v847_v48 = vpop.f32.mrf.mxu0 }
  0xa9   :  { %v887_v10 = vpop.f32.mrf.mxu3  ;;  %v861_v49 = vpop.f32.mrf.mxu1  ;;  %v874_v3 = vadd.f32 %v873_v17, %v860_v63  ;;  %v848_v5 = vadd.f32 %v847_v48, %v152_v44 }
  0xab   :  { %v888_v8 = vadd.f32 %v887_v10, %v874_v3  ;;  %v862_v11 = vadd.f32 %v861_v49, %v848_v5 }
  0xb0   :  { %v875_v50 = vpop.f32.mrf.mxu2 }
  0xb1   :  { %v889_v51 = vpop.f32.mrf.mxu3  ;;  %v876_v16 = vadd.f32 %v875_v50, %v862_v11 }
  0xb3   :  { %v890_v25 = vadd.f32 %v889_v51, %v876_v16 }
  0xc0   :  { %v901_v52 = vpop.f32.mrf.mxu0 }
  0xc1   :  { %v915_v53 = vpop.f32.mrf.mxu1  ;;  %v902_v14 = vadd.f32 %v901_v52, %v888_v8 }
  0xc3   :  { %v916_v22 = vadd.f32 %v915_v53, %v902_v14 }
  0xc8   :  { %v929_v54 = vpop.f32.mrf.mxu2  ;;  %v903_v56 = vpop.f32.mrf.mxu0 }
  0xc9   :  { %v943_v55 = vpop.f32.mrf.mxu3  ;;  %v917_v43 = vpop.f32.mrf.mxu1  ;;  %v930_v27 = vadd.f32 %v929_v54, %v916_v22  ;;  %v904_v30 = vadd.f32 %v903_v56, %v890_v25 }
  0xcb   :  { %v944_v35 = vadd.f32 %v943_v55, %v930_v27  ;;  %v918_v38 = vadd.f32 %v917_v43, %v904_v30 }
  0xd0   :  { %v931_v47 = vpop.f32.mrf.mxu2 }
  0xd1   :  { %v945_v59 = vpop.f32.mrf.mxu3  ;;  %v932_v41 = vadd.f32 %v931_v47, %v918_v38 }
  0xd3   :  { %v946_v17 = vadd.f32 %v945_v59, %v932_v41 }
  0xe0   :  { %v957_v60 = vpop.f32.mrf.mxu0 }
  0xe1   :  { %v971_v62 = vpop.f32.mrf.mxu1  ;;  %v958_v0 = vadd.f32 %v957_v60, %v153_v61 }
  0xe3   :  { %v972_v6 = vadd.f32 %v971_v62, %v958_v0 }
  0xe8   :  { %v985_v2 = vpop.f32.mrf.mxu2  ;;  %v959_v7 = vpop.f32.mrf.mxu0 }
  0xe9   :  { %v999_v4 = vpop.f32.mrf.mxu3  ;;  %v973_v9 = vpop.f32.mrf.mxu1  ;;  %v986_v12 = vadd.f32 %v985_v2, %v972_v6  ;;  %v960_v13 = vadd.f32 %v959_v7, %v153_v61 }
  0xeb   :  { %v1000_v18 = vadd.f32 %v999_v4, %v986_v12  ;;  %v974_v19 = vadd.f32 %v973_v9, %v960_v13 }
  0xf0   :  { %v987_v15 = vpop.f32.mrf.mxu2 }
  0xf1   :  { %v1001_v20 = vpop.f32.mrf.mxu3  ;;  %v988_v26 = vadd.f32 %v987_v15, %v974_v19 }
  0xf3   :  { %v1002_v31 = vadd.f32 %v1001_v20, %v988_v26 }
 0x100   :  { %v1013_v21 = vpop.f32.mrf.mxu0 }
 0x101   :  { %v1014_v23 = vadd.f32 %v1013_v21, %v1000_v18  ;;  %v1027_v24 = vpop.f32.mrf.mxu1 }
 0x103   :  { %v1028_v28 = vadd.f32 %v1027_v24, %v1014_v23 }
 0x108   :  { %v1041_v29 = vpop.f32.mrf.mxu2  ;;  %v1015_v34 = vpop.f32.mrf.mxu0 }
 0x109   :  { %v1042_v32 = vadd.f32 %v1041_v29, %v1028_v28  ;;  %v1055_v33 = vpop.f32.mrf.mxu3  ;;  %v1016_v37 = vadd.f32 %v1015_v34, %v1002_v31  ;;  %v1029_v40 = vpop.f32.mrf.mxu1 }
 0x10b   :  { %v1056_v36 = vadd.f32 %v1055_v33, %v1042_v32  ;;  %v1030_v42 = vadd.f32 %v1029_v40, %v1016_v37 }
 0x10d   :  { %v1060_v1 = vpack.c.bf16 %v1056_v36, %v944_v35 }
 0x10f   :  { %1062 = vst [vmem:[%s2628_s3] sm:$0xff] %v1060_v1 }
 0x110   :  { %v1043_v45 = vpop.f32.mrf.mxu2 }
 0x111   :  { %v1044_v46 = vadd.f32 %v1043_v45, %v1030_v42  ;;  %v1057_v58 = vpop.f32.mrf.mxu3 }
 0x113   :  { %v1058_v10 = vadd.f32 %v1057_v58, %v1044_v46 }
 0x115   :  { %v1061_v48 = vpack.c.bf16 %v1058_v10, %v946_v17 }
 0x117   :  { %1063 = vst [vmem:[%s2628_s3 + $0x8] sm:$0xff] %v1061_v48 }

// kernel: _lambda_.23
= control target key start
LH: loop header
LB: loop body
LE: loop exit
PB: predicated region body
PF: predicated region fallthrough
CT: control target
= control target key end

     0   :  { %s694_s1 = inlined_call_operand.vmem [shape: bf16[512,128], index: 1, kind: input, shape index: {}]   ;;  %s695_s2 = inlined_call_operand.vmem [shape: f32[1,128], index: 2, kind: input, shape index: {}]   ;;  %s696_s0 = inlined_call_operand.vmem [shape: bf16[16,512], index: 0, kind: input, shape index: {}]   ;;  %s697_s3 = inlined_call_operand.vmem [shape: bf16[16,128], index: 3, kind: output, shape index: {}]  }
   0x1   :  { %v517_v0 = vld [vmem:[%s694_s1 + $0x38] sm:$0xff]  ;;  %v516_v4 = vld [vmem:[%s694_s1 + $0x30] sm:$0xff]  ;;  %v515_v8 = vld [vmem:[%s694_s1 + $0x28] sm:$0xff] }
   0x2   :  { %v525_v1 = vld [vmem:[%s694_s1 + $0x78] sm:$0xff]  ;;  %298 = vmatpush.bf16.msra.mxu0 %v517_v0  ;;  %v524_v5 = vld [vmem:[%s694_s1 + $0x70] sm:$0xff]  ;;  %v523_v9 = vld [vmem:[%s694_s1 + $0x68] sm:$0xff] }
   0x3   :  { %v533_v2 = vld [vmem:[%s694_s1 + $0xb8] sm:$0xff]  ;;  %312 = vmatpush.bf16.msra.mxu1 %v525_v1  ;;  %v532_v6 = vld [vmem:[%s694_s1 + $0xb0] sm:$0xff]  ;;  %v531_v10 = vld [vmem:[%s694_s1 + $0xa8] sm:$0xff] }
   0x4   :  { %v541_v3 = vld [vmem:[%s694_s1 + $0xf8] sm:$0xff]  ;;  %326 = vmatpush.bf16.msra.mxu2 %v533_v2  ;;  %v540_v7 = vld [vmem:[%s694_s1 + $0xf0] sm:$0xff]  ;;  %v539_v11 = vld [vmem:[%s694_s1 + $0xe8] sm:$0xff] }
   0x5   :  { %340 = vmatpush.bf16.msra.mxu3 %v541_v3  ;;  %v514_v12 = vld [vmem:[%s694_s1 + $0x20] sm:$0xff]  ;;  %v513_v16 = vld [vmem:[%s694_s1 + $0x18] sm:$0xff]  ;;  %v512_v20 = vld [vmem:[%s694_s1 + $0x10] sm:$0xff] }
   0x6   :  { %299 = vmatpush.bf16.msra.mxu0 %v516_v4  ;;  %v522_v13 = vld [vmem:[%s694_s1 + $0x60] sm:$0xff]  ;;  %v521_v17 = vld [vmem:[%s694_s1 + $0x58] sm:$0xff]  ;;  %v520_v21 = vld [vmem:[%s694_s1 + $0x50] sm:$0xff] }
   0x7   :  { %313 = vmatpush.bf16.msra.mxu1 %v524_v5  ;;  %v530_v14 = vld [vmem:[%s694_s1 + $0xa0] sm:$0xff]  ;;  %v529_v18 = vld [vmem:[%s694_s1 + $0x98] sm:$0xff]  ;;  %v528_v22 = vld [vmem:[%s694_s1 + $0x90] sm:$0xff] }
   0x8   :  { %327 = vmatpush.bf16.msra.mxu2 %v532_v6  ;;  %v538_v15 = vld [vmem:[%s694_s1 + $0xe0] sm:$0xff]  ;;  %v537_v19 = vld [vmem:[%s694_s1 + $0xd8] sm:$0xff]  ;;  %v536_v23 = vld [vmem:[%s694_s1 + $0xd0] sm:$0xff] }
   0x9   :  { %341 = vmatpush.bf16.msra.mxu3 %v540_v7  ;;  %v511_v24 = vld [vmem:[%s694_s1 + $0x8] sm:$0xff]  ;;  %v510_v28 = vld [vmem:[%s694_s1] sm:$0xff]  ;;  %v508_v33 = vld [vmem:[%s696_s0 + $0xc] sm:$0xf0] }
   0xa   :  { %300 = vmatpush.bf16.msra.mxu0 %v515_v8  ;;  %v519_v25 = vld [vmem:[%s694_s1 + $0x48] sm:$0xff]  ;;  %v518_v29 = vld [vmem:[%s694_s1 + $0x40] sm:$0xff]  ;;  %v366_v35 = vld [vmem:[%s696_s0 + $0x10] sm:$0xf0] }
   0xb   :  { %314 = vmatpush.bf16.msra.mxu1 %v523_v9  ;;  %v527_v26 = vld [vmem:[%s694_s1 + $0x88] sm:$0xff]  ;;  %v526_v30 = vld [vmem:[%s694_s1 + $0x80] sm:$0xff]  ;;  %v509_v37 = vld [vmem:[%s696_s0 + $0x14] sm:$0xf0] }
   0xc   :  { %328 = vmatpush.bf16.msra.mxu2 %v531_v10  ;;  %v535_v27 = vld [vmem:[%s694_s1 + $0xc8] sm:$0xff]  ;;  %v534_v31 = vld [vmem:[%s694_s1 + $0xc0] sm:$0xff]  ;;  %v374_v39 = vld [vmem:[%s696_s0 + $0x18] sm:$0xf0] }
   0xd   :  { %342 = vmatpush.bf16.msra.mxu3 %v539_v11  ;;  %v364_v32 = vld [vmem:[%s696_s0] sm:$0xf]  ;;  %v506_v34 = vld [vmem:[%s696_s0 + $0x4] sm:$0xf]  ;;  %v372_v36 = vld [vmem:[%s696_s0 + $0x8] sm:$0xf] }
   0xe   :  { %301 = vmatpush.bf16.msra.mxu0 %v514_v12  ;;  %v507_v38 = vld [vmem:[%s696_s0 + $0xc] sm:$0xf]  ;;  %v365_v40 = vor.u32 %v508_v33, %v364_v32  ;;  %v369_v41 = vor.u32 %v506_v34, %v366_v35  ;;  %v373_v42 = vor.u32 %v509_v37, %v372_v36  ;;  %v547_v45 = vld [vmem:[%s695_s2] ss:$0 sm:$0xff] }
   0xf   :  { %315 = vmatpush.bf16.msra.mxu1 %v522_v13  ;;  %v377_v43 = vor.u32 %v507_v38, %v374_v39 }
  0x10   :  { %329 = vmatpush.bf16.msra.mxu2 %v530_v14 }
  0x11   :  { %343 = vmatpush.bf16.msra.mxu3 %v538_v15 }
  0x12   :  { %302 = vmatpush.bf16.msra.mxu0 %v513_v16 }
  0x13   :  { %316 = vmatpush.bf16.msra.mxu1 %v521_v17 }
  0x14   :  { %330 = vmatpush.bf16.msra.mxu2 %v529_v18 }
  0x15   :  { %344 = vmatpush.bf16.msra.mxu3 %v537_v19 }
  0x16   :  { %303 = vmatpush.bf16.msra.mxu0 %v512_v20 }
  0x17   :  { %317 = vmatpush.bf16.msra.mxu1 %v520_v21 }
  0x18   :  { %331 = vmatpush.bf16.msra.mxu2 %v528_v22 }
  0x19   :  { %345 = vmatpush.bf16.msra.mxu3 %v536_v23 }
  0x1a   :  { %304 = vmatpush.bf16.msra.mxu0 %v511_v24 }
  0x1b   :  { %318 = vmatpush.bf16.msra.mxu1 %v519_v25 }
  0x1c   :  { %332 = vmatpush.bf16.msra.mxu2 %v527_v26 }
  0x1d   :  { %346 = vmatpush.bf16.msra.mxu3 %v535_v27 }
  0x1e   :  { %305 = vmatpush.bf16.msra.mxu0 %v510_v28 }
  0x1f   :  { %319 = vmatpush.bf16.msra.mxu1 %v518_v29 }
  0x20   :  { %333 = vmatpush.bf16.msra.mxu2 %v526_v30 }
  0x21   :  { %347 = vmatpush.bf16.msra.mxu3 %v534_v31  ;;  %306 = vmatmul.bf16.vlgmr.msra.gmra.mxu0 %v365_v40 }
  0x22   :  { %320 = vmatmul.bf16.vlgmr.msra.gmra.mxu1 %v369_v41 }
  0x23   :  { %334 = vmatmul.bf16.vlgmr.msra.gmra.mxu2 %v373_v42 }
  0x24   :  { %348 = vmatmul.bf16.vlgmr.msra.gmra.mxu3 %v377_v43 }
  0x9e   :  { %v307_v44 = vpop.f32.mrf.mxu0 }
  0x9f   :  { %v321_v46 = vpop.f32.mrf.mxu1  ;;  %v308_v47 = vadd.f32 %v547_v45, %v307_v44 }
  0xa1   :  { %v322_v51 = vadd.f32 %v321_v46, %v308_v47 }
  0xa6   :  { %v335_v48 = vpop.f32.mrf.mxu2  ;;  %v309_v50 = vpop.f32.mrf.mxu0 }
  0xa7   :  { %v349_v49 = vpop.f32.mrf.mxu3  ;;  %v310_v52 = vadd.f32 %v547_v45, %v309_v50  ;;  %v323_v53 = vpop.f32.mrf.mxu1  ;;  %v336_v54 = vadd.f32 %v335_v48, %v322_v51 }
  0xa9   :  { %v324_v55 = vadd.f32 %v323_v53, %v310_v52  ;;  %v350_v59 = vadd.f32 %v349_v49, %v336_v54 }
  0xae   :  { %v337_v56 = vpop.f32.mrf.mxu2 }
  0xaf   :  { %v338_v57 = vadd.f32 %v337_v56, %v324_v55  ;;  %v351_v58 = vpop.f32.mrf.mxu3 }
  0xb1   :  { %v352_v60 = vadd.f32 %v351_v58, %v338_v57 }
  0xb3   :  { %v545_v61 = vpack.c.bf16 %v352_v60, %v350_v59 }
  0xb5   :  { %546 = vst [vmem:[%s697_s3] sm:$0xff] %v545_v61  }

// kernel: _lambda_.24
= control target key start
LH: loop header
LB: loop body
LE: loop exit
PB: predicated region body
PF: predicated region fallthrough
CT: control target
= control target key end

     0   :  { %s612_s12 = smov 0   ;;  %s684_s0 = inlined_call_operand.vmem [shape: bf16[64,256], index: 0, kind: input, shape index: {}]   ;;  %s685_s1 = inlined_call_operand.vmem [shape: bf16[256,128], index: 1, kind: input, shape index: {}]   ;;  %s686_s2 = inlined_call_operand.vmem [shape: f32[1,128], index: 2, kind: input, shape index: {}]   ;;  %s687_s3 = inlined_call_operand.vmem [shape: bf16[64,128], index: 3, kind: output, shape index: {}]  }
   0x1 LB: > { %s435_s13 = sadd.s32 4294967295, %s590_s12   ;;  %p439_p0 = scmp.ge.s32.totalorder %s590_s12, 1  ;;  %s590_s12 = sphi %s612_s12, %s13_s12  }
   0x2   : > { %p139_p1 = scmp.lt.s32.totalorder %s590_s12, 3 }
   0x4   : > { %p140_p2 = pnand %p439_p0, %p139_p1 }
   0x5   : > { %s440_s26 = sshll.u32 (!%p140_p2), %s435_s13, 2 }
   0x6   : > { %143 = sbr.rel (%p140_p2) target bundleno = 190 (0xbe), region = 32  ;;  %p165_p3 = scmp.lt.s32.totalorder (!%p140_p2), %s440_s26, 7 }
   0xb   : > { %v539_v0 = vld [vmem:[%s685_s1 + $0x38] sm:$0xff]  ;;  %v538_v2 = vld [vmem:[%s685_s1 + $0x30] sm:$0xff]  ;;  %v537_v4 = vld [vmem:[%s685_s1 + $0x28] sm:$0xff]  ;;  %s689_s26 = smov (!%p165_p3, %s440_s26), 7 }
   0xc   : > { %v547_v1 = vld [vmem:[%s685_s1 + $0x78] sm:$0xff]  ;;  %333 = vmatpush.bf16.msra.mxu0 %v539_v0  ;;  %559 = vmatpush.bf16.msra.mxu2 %v539_v0  ;;  %v546_v3 = vld [vmem:[%s685_s1 + $0x70] sm:$0xff]  ;;  %v545_v5 = vld [vmem:[%s685_s1 + $0x68] sm:$0xff]  ;;  %s527_s13 = sshll.u32 %s689_s26, 3  ;;  %s444_s28 = sshll.u32 %s689_s26, 2 }
   0xd   : > { %352 = vmatpush.bf16.msra.mxu1 %v547_v1  ;;  %567 = vmatpush.bf16.msra.mxu3 %v547_v1  ;;  %v536_v6 = vld [vmem:[%s685_s1 + $0x20] sm:$0xff]  ;;  %v535_v8 = vld [vmem:[%s685_s1 + $0x18] sm:$0xff]  ;;  %v534_v10 = vld [vmem:[%s685_s1 + $0x10] sm:$0xff]  ;;  %s169_s18 = scalar_lea.vmem %s684_s0, %s527_s13  ;;  %s175_s4 = scalar_lea.vmem %s687_s3, %s444_s28 }
   0xe   : > { %v544_v7 = vld [vmem:[%s685_s1 + $0x60] sm:$0xff]  ;;  %v543_v9 = vld [vmem:[%s685_s1 + $0x58] sm:$0xff]  ;;  %v542_v11 = vld [vmem:[%s685_s1 + $0x50] sm:$0xff] }
   0xf   : > { %v533_v12 = vld [vmem:[%s685_s1 + $0x8] sm:$0xff]  ;;  %v532_v14 = vld [vmem:[%s685_s1] sm:$0xff]  ;;  %v455_v18 = vld [vmem:[%s169_s18 + $0x10] sm:$0xf] }
  0x10   : > { %334 = vmatpush.bf16.msra.mxu0 %v538_v2  ;;  %560 = vmatpush.bf16.msra.mxu2 %v538_v2  ;;  %v541_v13 = vld [vmem:[%s685_s1 + $0x48] sm:$0xff]  ;;  %v540_v15 = vld [vmem:[%s685_s1 + $0x40] sm:$0xff]  ;;  %v531_v19 = vld [vmem:[%s169_s18 + $0x14] sm:$0xf0] }
  0x11   : > { %353 = vmatpush.bf16.msra.mxu1 %v546_v3  ;;  %568 = vmatpush.bf16.msra.mxu3 %v546_v3  ;;  %v447_v16 = vld [vmem:[%s169_s18] sm:$0xf]  ;;  %v529_v17 = vld [vmem:[%s169_s18 + $0x4] sm:$0xf0]  ;;  %v528_v20 = vld [vmem:[%s169_s18 + $0x4] sm:$0xf]  ;;  %v456_v25 = vor.u32 %v531_v19, %v455_v18 }
  0x12   : > { %v449_v21 = vld [vmem:[%s169_s18 + $0x8] sm:$0xf0]  ;;  %v530_v22 = vld [vmem:[%s169_s18 + $0x14] sm:$0xf]  ;;  %v457_v23 = vld [vmem:[%s169_s18 + $0x18] sm:$0xf0]  ;;  %v448_v24 = vor.u32 %v529_v17, %v447_v16 }
  0x13   : > { %v452_v26 = vor.u32 %v528_v20, %v449_v21  ;;  %v460_v27 = vor.u32 %v530_v22, %v457_v23  ;;  %v583_v30 = vld [vmem:[%s686_s2] ss:$0 sm:$0xff] }
  0x14   : > { %335 = vmatpush.bf16.msra.mxu0 %v537_v4  ;;  %561 = vmatpush.bf16.msra.mxu2 %v537_v4 }
  0x15   : > { %354 = vmatpush.bf16.msra.mxu1 %v545_v5  ;;  %569 = vmatpush.bf16.msra.mxu3 %v545_v5 }
  0x18   : > { %336 = vmatpush.bf16.msra.mxu0 %v536_v6  ;;  %562 = vmatpush.bf16.msra.mxu2 %v536_v6 }
  0x19   : > { %355 = vmatpush.bf16.msra.mxu1 %v544_v7  ;;  %570 = vmatpush.bf16.msra.mxu3 %v544_v7 }
  0x1c   : > { %337 = vmatpush.bf16.msra.mxu0 %v535_v8  ;;  %563 = vmatpush.bf16.msra.mxu2 %v535_v8 }
  0x1d   : > { %356 = vmatpush.bf16.msra.mxu1 %v543_v9  ;;  %571 = vmatpush.bf16.msra.mxu3 %v543_v9 }
  0x20   : > { %338 = vmatpush.bf16.msra.mxu0 %v534_v10  ;;  %564 = vmatpush.bf16.msra.mxu2 %v534_v10 }
  0x21   : > { %357 = vmatpush.bf16.msra.mxu1 %v542_v11  ;;  %572 = vmatpush.bf16.msra.mxu3 %v542_v11 }
  0x24   : > { %339 = vmatpush.bf16.msra.mxu0 %v533_v12  ;;  %565 = vmatpush.bf16.msra.mxu2 %v533_v12 }
  0x25   : > { %358 = vmatpush.bf16.msra.mxu1 %v541_v13  ;;  %573 = vmatpush.bf16.msra.mxu3 %v541_v13 }
  0x28   : > { %340 = vmatpush.bf16.msra.mxu0 %v532_v14  ;;  %566 = vmatpush.bf16.msra.mxu2 %v532_v14 }
  0x29   : > { %359 = vmatpush.bf16.msra.mxu1 %v540_v15  ;;  %574 = vmatpush.bf16.msra.mxu3 %v540_v15 }
  0x2b   : > { %341 = vmatmul.bf16.vlgmr.msra.gmra.mxu0 %v448_v24  ;;  %346 = vmatmul.bf16.vlgmr.msra.gmra.mxu2 %v456_v25 }
  0x2c   : > { %360 = vmatmul.bf16.vlgmr.msra.gmra.mxu1 %v452_v26  ;;  %365 = vmatmul.bf16.vlgmr.msra.gmra.mxu3 %v460_v27 }
  0xa8   : > { %v342_v28 = vpop.f32.mrf.mxu0 }
  0xa9   : > { %v361_v29 = vpop.f32.mrf.mxu1  ;;  %v343_v32 = vadd.f32 %v583_v30, %v342_v28 }
  0xab   : > { %v362_v37 = vadd.f32 %v361_v29, %v343_v32 }
  0xae   : > { %v347_v31 = vpop.f32.mrf.mxu2 }
  0xaf   : > { %v366_v33 = vpop.f32.mrf.mxu3  ;;  %v348_v39 = vadd.f32 %v583_v30, %v347_v31 }
  0xb0   : > { %v344_v34 = vpop.f32.mrf.mxu0 }
  0xb1   : > { %v345_v35 = vadd.f32 %v583_v30, %v344_v34  ;;  %v363_v36 = vpop.f32.mrf.mxu1  ;;  %v367_v44 = vadd.f32 %v366_v33, %v348_v39 }
  0xb3   : > { %v364_v38 = vadd.f32 %v363_v36, %v345_v35 }
  0xb5   : > { %v551_v40 = vpack.c.bf16 %v364_v38, %v362_v37 }
  0xb6   : > { %v349_v41 = vpop.f32.mrf.mxu2 }
  0xb7   : > { %552 = vst [vmem:[%s175_s4] sm:$0xff] %v551_v40   ;;  %v350_v42 = vadd.f32 %v583_v30, %v349_v41  ;;  %v368_v43 = vpop.f32.mrf.mxu3 }
  0xb9   : > { %v369_v45 = vadd.f32 %v368_v43, %v350_v42 }
  0xbb   : > { %v556_v46 = vpack.c.bf16 %v369_v45, %v367_v44 }
  0xbd   : > { %558 = vst [vmem:[%s175_s4 + $0x8] sm:$0xff] %v556_v46  }
  0xbe PF: > { %s13_s12 = sadd.s32 1, %s590_s12  }
  0xbf   : > { %p10_p4 = scmp.ge.s32.totalorder %s13_s12, 4  }
  0xc1   :  { %12 = sbr.rel (!%p10_p4) target bundleno = 1 (0x1), region = 62 }

</bundles_post_ra>
